<compile_context>
chip_gen: v7x
topology: tpu7x:2x2x1
jax: 0.10.0
libtpu: 0.0.40
codegen_flags: <defaults>
</compile_context>

<pallas_src>
import numpy as np
import jax
import jax.numpy as jnp
from jax.experimental import pallas as pl
from jax.experimental.pallas import tpu as pltpu

# ---------------------------------------------------------------------------
# Static model configuration
# ---------------------------------------------------------------------------
H = W = 16            # spatial size (scaled down from 100x100 in the reference)
C1, C2, C3 = 4, 8, 8  # conv channel widths (as in the PyTorch module)
D_FLAT = C3 * H * W   # 2048 = Linear input width (8*H*W)
H_FC = 500            # true hidden width of the MLP head
H_PAD = 512           # hidden width zero-padded to a multiple of 128 lanes
O_FC = 5              # true output width
O_PAD = 128           # output width zero-padded to one full lane vector
BN_EPS = 1e-5


# ---------------------------------------------------------------------------
# In-kernel helper: one conv block, fully lane-dense
# ---------------------------------------------------------------------------
def _conv3x3_relu_bn(x3, b_mats, p_row, g_mat, rows_per_branch):
    """ReflectionPad(1) + Conv2d(3x3) + ReLU + BatchNorm2d (per-branch batch stats).

    x3:     (M, H, W*Cin) activations, lane order (w, cin).
    b_mats: (3, W*Cin, W*Cout): conv weights with the 3 horizontal taps, the
            horizontal reflection padding and the channel mix folded into one
            matrix per vertical tap dy (built host-side in prepare_params).
    p_row:  (3, W*Cout): [conv bias, BN gamma, BN beta], each tiled over w.
    g_mat:  (W*Cout, W*Cout) 0/1 matrix summing the w-strided lanes of a channel
            (turns a per-lane row-sum into per-channel stats, still lane-shaped).
    rows_per_branch: N*H — the first/second row halves are the two siamese branches.
    Returns (M*H, W*Cout).
    """
    m, h, wcin = x3.shape
    # Vertical reflection pad, then 3 lane-dense matmuls (one per vertical tap).
    xp = jnp.concatenate([x3[:, 1:2, :], x3, x3[:, h - 2:h - 1, :]], axis=1)
    acc = jnp.dot(xp[:, 0:h, :].reshape(m * h, wcin), b_mats[0],
                  preferred_element_type=jnp.float32)
    acc = acc + jnp.dot(xp[:, 1:h + 1, :].reshape(m * h, wcin), b_mats[1],
                        preferred_element_type=jnp.float32)
    acc = acc + jnp.dot(xp[:, 2:h + 2, :].reshape(m * h, wcin), b_mats[2],
                        preferred_element_type=jnp.float32)
    y = jnp.maximum(acc + p_row[0:1, :], 0.0)            # conv bias + ReLU (before BN)

    gamma, beta = p_row[1:2, :], p_row[2:3, :]
    inv_count = 1.0 / (rows_per_branch * W)              # biased training-mode stats
    halves = []
    for br in range(2):                                  # per-branch BatchNorm
        yb = y[br * rows_per_branch:(br + 1) * rows_per_branch, :]
        s1 = jnp.sum(yb, axis=0, keepdims=True)
        mean = jnp.dot(s1, g_mat, preferred_element_type=jnp.float32) * inv_count
        d = yb - mean
        s2 = jnp.sum(d * d, axis=0, keepdims=True)
        var = jnp.dot(s2, g_mat, preferred_element_type=jnp.float32) * inv_count
        halves.append(d * (gamma * jax.lax.rsqrt(var + BN_EPS)) + beta)
    return jnp.concatenate(halves, axis=0)


# ---------------------------------------------------------------------------
# Fused kernel: both siamese branches in one invocation
# ---------------------------------------------------------------------------
def siamese_kernel(x_ref,
                   b1_ref, p1_ref, b2_ref, p2_ref, b3_ref, p3_ref,
                   g4_ref, g8_ref,
                   fw1_ref, fb1_ref, fw2_ref, fb2_ref, fw3_ref, fb3_ref,
                   o_ref):
    m = x_ref.shape[0]                    # 2N (branch 0 = rows [:N], branch 1 = rows [N:])
    rows_half = (m // 2) * H
    g4, g8 = g4_ref[...], g8_ref[...]

    y = _conv3x3_relu_bn(x_ref[...], b1_ref[...], p1_ref[...], g4, rows_half)
    y = _conv3x3_relu_bn(y.reshape(m, H, W * C1), b2_ref[...], p2_ref[...], g8, rows_half)
    y = _conv3x3_relu_bn(y.reshape(m, H, W * C2), b3_ref[...], p3_ref[...], g8, rows_half)

    # Flatten to (M, H*W*C3) in (h, w, c) order: conv output is already lane-dense
    # (W*C3 = 128), so this is 16 full-lane-tile block copies (no lane shuffles).
    y3 = y.reshape(m, H, W * C3)
    xf = jnp.concatenate([y3[:, hh, :] for hh in range(H)], axis=-1)   # (M, 2048)

    h1 = jnp.maximum(
        jnp.dot(xf.astype(jnp.bfloat16), fw1_ref[...],
                preferred_element_type=jnp.float32) + fb1_ref[...], 0.0)
    h2 = jnp.maximum(
        jnp.dot(h1.astype(jnp.bfloat16), fw2_ref[...],
                preferred_element_type=jnp.float32) + fb2_ref[...], 0.0)
    o_ref[...] = (jnp.dot(h2, fw3_ref[...], preferred_element_type=jnp.float32)
                  + fb3_ref[...])


def _full_spec(shape):
    zeros = (0,) * len(shape)
    return pl.BlockSpec(shape, lambda i: zeros)


def _siamese_pallas_call(x, kp):
    m = x.shape[0]
    weight_bytes = sum(int(np.prod(v.shape)) * v.dtype.itemsize for v in kp.values())
    flops = 2 * (m * H * W * 9 * (1 * C1 + C1 * C2 + C2 * C3)
                 + m * (D_FLAT * H_PAD + H_PAD * H_PAD + H_PAD * O_PAD))
    cost = pl.CostEstimate(
        flops=flops,
        transcendentals=2 * 3 * W * C3,                 # rsqrt lanes per BN per branch
        bytes_accessed=weight_bytes + 4 * (int(np.prod(x.shape)) + m * O_PAD))

    return pl.pallas_call(
        siamese_kernel,
        out_shape=jax.ShapeDtypeStruct((m, O_PAD), jnp.float32),
        grid=(1,),                                      # single step: weights DMA'd once
        in_specs=[
            _full_spec((m, H, W)),
            _full_spec((3, W * 1, W * C1)), _full_spec((3, W * C1)),
            _full_spec((3, W * C1, W * C2)), _full_spec((3, W * C2)),
            _full_spec((3, W * C2, W * C3)), _full_spec((3, W * C3)),
            _full_spec((W * C1, W * C1)), _full_spec((W * C3, W * C3)),
            _full_spec((D_FLAT, H_PAD)), _full_spec((1, H_PAD)),
            _full_spec((H_PAD, H_PAD)), _full_spec((1, H_PAD)),
            _full_spec((H_PAD, O_PAD)), _full_spec((1, O_PAD)),
        ],
        out_specs=pl.BlockSpec((m, O_PAD), lambda i: (0, 0)),
        compiler_params=pltpu.CompilerParams(
            dimension_semantics=("arbitrary",),
            # ~3.2 MiB of weights (fw1/fw2 in bf16) x2 pipeline buffers + tiny
            # activations; comfortable on v5e / v6e / v7x scoped-VMEM defaults.
            vmem_limit_bytes=16 * 1024 * 1024,
        ),
        cost_estimate=cost,
    )(x,
      kp["b1"], kp["p1"], kp["b2"], kp["p2"], kp["b3"], kp["p3"],
      kp["g4"], kp["g8"],
      kp["fw1"], kp["fb1"], kp["fw2"], kp["fb2"], kp["fw3"], kp["fb3"])


@jax.jit
def siamese_forward(input1, input2, kparams):
    """Matches SiameseNetwork.forward: two branches through shared weights."""
    n = input1.shape[0]
    x = jnp.concatenate([input1, input2], axis=0).reshape(2 * n, H, W)   # drop C=1
    out = _siamese_pallas_call(x, kparams)                               # (2N, O_PAD)
    return out[:n, :O_FC], out[n:, :O_FC]


# ---------------------------------------------------------------------------
# Parameters: created in PyTorch layouts, converted once into kernel layouts
# ---------------------------------------------------------------------------
def init_params(key):
    """Deterministic random params in PyTorch layouts:
    conv weight (Cout, Cin, 3, 3); linear weight (out, in)."""
    ks = jax.random.split(key, 18)
    p = {}
    p["cw1"] = 0.1 * jax.random.normal(ks[0], (C1, 1, 3, 3), jnp.float32)
    p["cb1"] = 0.05 * jax.random.normal(ks[1], (C1,), jnp.float32)
    p["g1"] = 1.0 + 0.1 * jax.random.normal(ks[2], (C1,), jnp.float32)
    p["be1"] = 0.1 * jax.random.normal(ks[3], (C1,), jnp.float32)
    p["cw2"] = 0.1 * jax.random.normal(ks[4], (C2, C1, 3, 3), jnp.float32)
    p["cb2"] = 0.05 * jax.random.normal(ks[5], (C2,), jnp.float32)
    p["g2"] = 1.0 + 0.1 * jax.random.normal(ks[6], (C2,), jnp.float32)
    p["be2"] = 0.1 * jax.random.normal(ks[7], (C2,), jnp.float32)
    p["cw3"] = 0.1 * jax.random.normal(ks[8], (C3, C2, 3, 3), jnp.float32)
    p["cb3"] = 0.05 * jax.random.normal(ks[9], (C3,), jnp.float32)
    p["g3"] = 1.0 + 0.1 * jax.random.normal(ks[10], (C3,), jnp.float32)
    p["be3"] = 0.1 * jax.random.normal(ks[11], (C3,), jnp.float32)
    p["fw1"] = 0.02 * jax.random.normal(ks[12], (H_FC, D_FLAT), jnp.float32)
    p["fb1"] = 0.02 * jax.random.normal(ks[13], (H_FC,), jnp.float32)
    p["fw2"] = 0.02 * jax.random.normal(ks[14], (H_FC, H_FC), jnp.float32)
    p["fb2"] = 0.02 * jax.random.normal(ks[15], (H_FC,), jnp.float32)
    p["fw3"] = 0.02 * jax.random.normal(ks[16], (O_FC, H_FC), jnp.float32)
    p["fb3"] = 0.02 * jax.random.normal(ks[17], (O_FC,), jnp.float32)
    return p


def prepare_params(p):
    """One-time conversion of PyTorch-layout params into kernel layouts:
      * each conv layer folded into 3 (W*Cin, W*Cout) matrices (one per vertical
        tap dy) that absorb the 3 horizontal taps, the horizontal reflection pad
        and the channel mix, so the kernel's conv is 3 lane-dense matmuls;
      * conv bias / BN gamma / BN beta tiled over w into (3, W*Cout) rows;
      * 0/1 channel-sum matrices g4/g8 for in-kernel BatchNorm statistics;
      * FC weights pre-transposed to (in, out); fw1 rows permuted from the PyTorch
        NCHW flatten order (c,h,w) to the kernel's (h,w,c) order; hidden dims
        zero-padded 500->512 and the 5-wide output padded to 128 (exact: zeros);
      * fw1/fw2 stored in bfloat16 (DMA-dominant), fw3 and all biases stay f32."""
    kp = {}
    for i, cin in zip((1, 2, 3), (1, C1, C2)):
        w = np.asarray(p[f"cw{i}"], np.float32)           # (Cout, Cin, 3, 3)
        cout = w.shape[0]
        bm = np.zeros((3, W * cin, W * cout), np.float32)
        for dy in range(3):
            for wo in range(W):
                for dx in range(3):
                    wi = wo + dx - 1
                    wi = 1 if wi < 0 else (W - 2 if wi >= W else wi)   # reflect pad in w
                    bm[dy, wi * cin:(wi + 1) * cin,
                       wo * cout:(wo + 1) * cout] += w[:, :, dy, dx].T
        kp[f"b{i}"] = jnp.asarray(bm)
        kp[f"p{i}"] = jnp.stack([jnp.tile(p[f"cb{i}"], W),
                                 jnp.tile(p[f"g{i}"], W),
                                 jnp.tile(p[f"be{i}"], W)], axis=0)    # (3, W*Cout)
    kp["g4"] = jnp.asarray(np.kron(np.ones((W, W), np.float32),
                                   np.eye(C1, dtype=np.float32)))      # (64, 64)
    kp["g8"] = jnp.asarray(np.kron(np.ones((W, W), np.float32),
                                   np.eye(C3, dtype=np.float32)))      # (128, 128)
    # fw1: (500, D) -> (D, 500), rows reordered (c,h,w) -> (h,w,c), pad 500->512, bf16.
    w1 = p["fw1"].T.reshape(C3, H, W, H_FC)
    w1 = jnp.transpose(w1, (1, 2, 0, 3)).reshape(H * W * C3, H_FC)
    kp["fw1"] = jnp.pad(w1, ((0, 0), (0, H_PAD - H_FC))).astype(jnp.bfloat16)
    kp["fb1"] = jnp.pad(p["fb1"], (0, H_PAD - H_FC)).reshape(1, H_PAD)
    kp["fw2"] = jnp.pad(p["fw2"].T,
                        ((0, H_PAD - H_FC), (0, H_PAD - H_FC))).astype(jnp.bfloat16)
    kp["fb2"] = jnp.pad(p["fb2"], (0, H_PAD - H_FC)).reshape(1, H_PAD)
    kp["fw3"] = jnp.pad(p["fw3"].T, ((0, H_PAD - H_FC), (0, O_PAD - O_FC)))  # f32 (small)
    kp["fb3"] = jnp.pad(p["fb3"], (0, O_PAD - O_FC)).reshape(1, O_PAD)
    return kp


# ---------------------------------------------------------------------------
# Pure-JAX reference (mirrors the PyTorch module) for a numerical sanity check
# ---------------------------------------------------------------------------
def _reference_forward_once(x_nchw, p):
    hp = jax.lax.Precision.HIGHEST

    def conv_block(x, w, b, g, be):
        xp = jnp.pad(x, ((0, 0), (0, 0), (1, 1), (1, 1)), mode="reflect")
        y = jax.lax.conv_general_dilated(
            xp, w, window_strides=(1, 1), padding="VALID",
            dimension_numbers=("NCHW", "OIHW", "NCHW"), precision=hp)
        y = jnp.maximum(y + b.reshape(1, -1, 1, 1), 0.0)
        mean = jnp.mean(y, axis=(0, 2, 3), keepdims=True)
        var = jnp.mean(jnp.square(y - mean), axis=(0, 2, 3), keepdims=True)
        return ((y - mean) * jax.lax.rsqrt(var + BN_EPS)
                * g.reshape(1, -1, 1, 1) + be.reshape(1, -1, 1, 1))

    x = conv_block(x_nchw, p["cw1"], p["cb1"], p["g1"], p["be1"])
    x = conv_block(x, p["cw2"], p["cb2"], p["g2"], p["be2"])
    x = conv_block(x, p["cw3"], p["cb3"], p["g3"], p["be3"])
    xf = x.reshape(x.shape[0], -1)                  # NCHW flatten, like .view(N, -1)
    h1 = jnp.maximum(jnp.dot(xf, p["fw1"].T, precision=hp) + p["fb1"], 0.0)
    h2 = jnp.maximum(jnp.dot(h1, p["fw2"].T, precision=hp) + p["fb2"], 0.0)
    return jnp.dot(h2, p["fw3"].T, precision=hp) + p["fb3"]


if __name__ == "__main__":
    N = 2
    key = jax.random.PRNGKey(0)
    k1, k2, kp_key = jax.random.split(key, 3)
    input1 = jax.random.normal(k1, (N, 1, H, W), jnp.float32)
    input2 = jax.random.normal(k2, (N, 1, H, W), jnp.float32)

    params = init_params(kp_key)             # PyTorch-layout params
    kparams = prepare_params(params)         # one-time kernel-layout conversion

    out1, out2 = siamese_forward(input1, input2, kparams)
    jax.block_until_ready((out1, out2))
    assert out1.shape == (N, O_FC) and out2.shape == (N, O_FC)

    # Sanity check against a pure-JAX reference of the PyTorch forward.
    ref1 = _reference_forward_once(input1, params)
    ref2 = _reference_forward_once(input2, params)
    np.testing.assert_allclose(np.asarray(out1), np.asarray(ref1), rtol=5e-2, atol=5e-2)
    np.testing.assert_allclose(np.asarray(out2), np.asarray(ref2), rtol=5e-2, atol=5e-2)

    print("KERNEL_OK")
</pallas_src>

<mosaic_0001>
module attributes {stable_mosaic.version = 11 : i64} {
  func.func @siamese_kernel(%arg0: i32, %arg1: memref<4x16x16xf32, #tpu.memory_space<vmem>>, %arg2: memref<3x16x64xf32, #tpu.memory_space<vmem>>, %arg3: memref<3x64xf32, #tpu.memory_space<vmem>>, %arg4: memref<3x64x128xf32, #tpu.memory_space<vmem>>, %arg5: memref<3x128xf32, #tpu.memory_space<vmem>>, %arg6: memref<3x128x128xf32, #tpu.memory_space<vmem>>, %arg7: memref<3x128xf32, #tpu.memory_space<vmem>>, %arg8: memref<64x64xf32, #tpu.memory_space<vmem>>, %arg9: memref<128x128xf32, #tpu.memory_space<vmem>>, %arg10: memref<2048x512xbf16, #tpu.memory_space<vmem>>, %arg11: memref<1x512xf32, #tpu.memory_space<vmem>>, %arg12: memref<512x512xbf16, #tpu.memory_space<vmem>>, %arg13: memref<1x512xf32, #tpu.memory_space<vmem>>, %arg14: memref<512x128xf32, #tpu.memory_space<vmem>>, %arg15: memref<1x128xf32, #tpu.memory_space<vmem>>, %arg16: memref<4x128xf32, #tpu.memory_space<vmem>>) attributes {dimension_semantics = [#tpu.dimension_semantics<arbitrary>], iteration_bounds = array<i64: 1>, scalar_prefetch = 0 : i64, scratch_operands = 0 : i64, tpu.core_type = #tpu.core_type<tc>, window_params = [{pipeline_mode = #tpu.pipeline_mode<synchronous>, transform_indices = @transform_0, window_bounds = array<i64: 4, 16, 16>}, {pipeline_mode = #tpu.pipeline_mode<synchronous>, transform_indices = @transform_1, window_bounds = array<i64: 3, 16, 64>}, {pipeline_mode = #tpu.pipeline_mode<synchronous>, transform_indices = @transform_2, window_bounds = array<i64: 3, 64>}, {pipeline_mode = #tpu.pipeline_mode<synchronous>, transform_indices = @transform_3, window_bounds = array<i64: 3, 64, 128>}, {pipeline_mode = #tpu.pipeline_mode<synchronous>, transform_indices = @transform_4, window_bounds = array<i64: 3, 128>}, {pipeline_mode = #tpu.pipeline_mode<synchronous>, transform_indices = @transform_5, window_bounds = array<i64: 3, 128, 128>}, {pipeline_mode = #tpu.pipeline_mode<synchronous>, transform_indices = @transform_6, window_bounds = array<i64: 3, 128>}, {pipeline_mode = #tpu.pipeline_mode<synchronous>, transform_indices = @transform_7, window_bounds = array<i64: 64, 64>}, {pipeline_mode = #tpu.pipeline_mode<synchronous>, transform_indices = @transform_8, window_bounds = array<i64: 128, 128>}, {pipeline_mode = #tpu.pipeline_mode<synchronous>, transform_indices = @transform_9, window_bounds = array<i64: 2048, 512>}, {pipeline_mode = #tpu.pipeline_mode<synchronous>, transform_indices = @transform_10, window_bounds = array<i64: 1, 512>}, {pipeline_mode = #tpu.pipeline_mode<synchronous>, transform_indices = @transform_11, window_bounds = array<i64: 512, 512>}, {pipeline_mode = #tpu.pipeline_mode<synchronous>, transform_indices = @transform_12, window_bounds = array<i64: 1, 512>}, {pipeline_mode = #tpu.pipeline_mode<synchronous>, transform_indices = @transform_13, window_bounds = array<i64: 512, 128>}, {pipeline_mode = #tpu.pipeline_mode<synchronous>, transform_indices = @transform_14, window_bounds = array<i64: 1, 128>}, {pipeline_mode = #tpu.pipeline_mode<synchronous>, transform_indices = @transform_15, window_bounds = array<i64: 4, 128>}]} {
    %c0 = arith.constant 0 : index
    %c0_0 = arith.constant 0 : index
    %0 = vector.load %arg8[%c0, %c0_0] : memref<64x64xf32, #tpu.memory_space<vmem>>, vector<64x64xf32>
    %c0_1 = arith.constant 0 : index
    %c0_2 = arith.constant 0 : index
    %1 = vector.load %arg9[%c0_1, %c0_2] : memref<128x128xf32, #tpu.memory_space<vmem>>, vector<128x128xf32>
    %c0_3 = arith.constant 0 : index
    %c0_4 = arith.constant 0 : index
    %c0_5 = arith.constant 0 : index
    %2 = vector.load %arg1[%c0_3, %c0_4, %c0_5] : memref<4x16x16xf32, #tpu.memory_space<vmem>>, vector<4x16x16xf32>
    %c0_6 = arith.constant 0 : index
    %c0_7 = arith.constant 0 : index
    %c0_8 = arith.constant 0 : index
    %3 = vector.load %arg2[%c0_6, %c0_7, %c0_8] : memref<3x16x64xf32, #tpu.memory_space<vmem>>, vector<3x16x64xf32>
    %c0_9 = arith.constant 0 : index
    %c0_10 = arith.constant 0 : index
    %4 = vector.load %arg3[%c0_9, %c0_10] : memref<3x64xf32, #tpu.memory_space<vmem>>, vector<3x64xf32>
    %5 = vector.extract_strided_slice %2 {offsets = [0, 1, 0], sizes = [4, 1, 16], strides = [1, 1, 1]} : vector<4x16x16xf32> to vector<4x1x16xf32>
    %6 = vector.extract_strided_slice %2 {offsets = [0, 14, 0], sizes = [4, 1, 16], strides = [1, 1, 1]} : vector<4x16x16xf32> to vector<4x1x16xf32>
    %7 = tpu.concatenate %5, %2, %6 in 1 : vector<4x1x16xf32>, vector<4x16x16xf32>, vector<4x1x16xf32> -> vector<4x18x16xf32>
    %8 = vector.extract_strided_slice %7 {offsets = [0, 0, 0], sizes = [4, 16, 16], strides = [1, 1, 1]} : vector<4x18x16xf32> to vector<4x16x16xf32>
    %9 = vector.shape_cast %8 : vector<4x16x16xf32> to vector<64x16xf32>
    %10 = vector.extract_strided_slice %3 {offsets = [0, 0, 0], sizes = [1, 16, 64], strides = [1, 1, 1]} : vector<3x16x64xf32> to vector<1x16x64xf32>
    %11 = vector.shape_cast %10 : vector<1x16x64xf32> to vector<16x64xf32>
    %cst = arith.constant dense<0.000000e+00> : vector<64x64xf32>
    %12 = tpu.matmul %9, %11, %cst {dimension_numbers = #tpu.dot_dimension_numbers<[1], [0], [0], [1], [0, 0, 1, 1], [], []>} : vector<64x16xf32>, vector<16x64xf32>, vector<64x64xf32> -> vector<64x64xf32>
    %13 = vector.extract_strided_slice %7 {offsets = [0, 1, 0], sizes = [4, 16, 16], strides = [1, 1, 1]} : vector<4x18x16xf32> to vector<4x16x16xf32>
    %14 = vector.shape_cast %13 : vector<4x16x16xf32> to vector<64x16xf32>
    %15 = vector.extract_strided_slice %3 {offsets = [1, 0, 0], sizes = [1, 16, 64], strides = [1, 1, 1]} : vector<3x16x64xf32> to vector<1x16x64xf32>
    %16 = vector.shape_cast %15 : vector<1x16x64xf32> to vector<16x64xf32>
    %cst_11 = arith.constant dense<0.000000e+00> : vector<64x64xf32>
    %17 = tpu.matmul %14, %16, %cst_11 {dimension_numbers = #tpu.dot_dimension_numbers<[1], [0], [0], [1], [0, 0, 1, 1], [], []>} : vector<64x16xf32>, vector<16x64xf32>, vector<64x64xf32> -> vector<64x64xf32>
    %18 = arith.addf %12, %17 : vector<64x64xf32>
    %19 = vector.extract_strided_slice %7 {offsets = [0, 2, 0], sizes = [4, 16, 16], strides = [1, 1, 1]} : vector<4x18x16xf32> to vector<4x16x16xf32>
    %20 = vector.shape_cast %19 : vector<4x16x16xf32> to vector<64x16xf32>
    %21 = vector.extract_strided_slice %3 {offsets = [2, 0, 0], sizes = [1, 16, 64], strides = [1, 1, 1]} : vector<3x16x64xf32> to vector<1x16x64xf32>
    %22 = vector.shape_cast %21 : vector<1x16x64xf32> to vector<16x64xf32>
    %cst_12 = arith.constant dense<0.000000e+00> : vector<64x64xf32>
    %23 = tpu.matmul %20, %22, %cst_12 {dimension_numbers = #tpu.dot_dimension_numbers<[1], [0], [0], [1], [0, 0, 1, 1], [], []>} : vector<64x16xf32>, vector<16x64xf32>, vector<64x64xf32> -> vector<64x64xf32>
    %24 = arith.addf %18, %23 : vector<64x64xf32>
    %25 = vector.extract_strided_slice %4 {offsets = [0, 0], sizes = [1, 64], strides = [1, 1]} : vector<3x64xf32> to vector<1x64xf32>
    %26 = vector.broadcast %25 : vector<1x64xf32> to vector<64x64xf32>
    %27 = arith.addf %24, %26 : vector<64x64xf32>
    %cst_13 = arith.constant 0.000000e+00 : f32
    %28 = vector.broadcast %cst_13 : f32 to vector<64x64xf32>
    %29 = arith.maximumf %27, %28 : vector<64x64xf32>
    %30 = vector.extract_strided_slice %4 {offsets = [1, 0], sizes = [1, 64], strides = [1, 1]} : vector<3x64xf32> to vector<1x64xf32>
    %31 = vector.extract_strided_slice %4 {offsets = [2, 0], sizes = [1, 64], strides = [1, 1]} : vector<3x64xf32> to vector<1x64xf32>
    %32 = vector.extract_strided_slice %29 {offsets = [0, 0], sizes = [32, 64], strides = [1, 1]} : vector<64x64xf32> to vector<32x64xf32>
    %cst_14 = arith.constant dense<0.000000e+00> : vector<64xf32>
    %33 = vector.multi_reduction <add>, %32, %cst_14 [0] : vector<32x64xf32> to vector<64xf32>
    %34 = vector.shape_cast %33 : vector<64xf32> to vector<1x64xf32>
    %cst_15 = arith.constant dense<0.000000e+00> : vector<1x64xf32>
    %35 = tpu.matmul %34, %0, %cst_15 {dimension_numbers = #tpu.dot_dimension_numbers<[1], [0], [0], [1], [0, 0, 1, 1], [], []>} : vector<1x64xf32>, vector<64x64xf32>, vector<1x64xf32> -> vector<1x64xf32>
    %cst_16 = arith.constant 0.001953125 : f32
    %36 = vector.broadcast %cst_16 : f32 to vector<1x64xf32>
    %37 = arith.mulf %35, %36 : vector<1x64xf32>
    %38 = vector.broadcast %37 : vector<1x64xf32> to vector<32x64xf32>
    %39 = arith.subf %32, %38 : vector<32x64xf32>
    %40 = arith.mulf %39, %39 : vector<32x64xf32>
    %cst_17 = arith.constant dense<0.000000e+00> : vector<64xf32>
    %41 = vector.multi_reduction <add>, %40, %cst_17 [0] : vector<32x64xf32> to vector<64xf32>
    %42 = vector.shape_cast %41 : vector<64xf32> to vector<1x64xf32>
    %cst_18 = arith.constant dense<0.000000e+00> : vector<1x64xf32>
    %43 = tpu.matmul %42, %0, %cst_18 {dimension_numbers = #tpu.dot_dimension_numbers<[1], [0], [0], [1], [0, 0, 1, 1], [], []>} : vector<1x64xf32>, vector<64x64xf32>, vector<1x64xf32> -> vector<1x64xf32>
    %cst_19 = arith.constant 0.001953125 : f32
    %44 = vector.broadcast %cst_19 : f32 to vector<1x64xf32>
    %45 = arith.mulf %43, %44 : vector<1x64xf32>
    %cst_20 = arith.constant 9.99999974E-6 : f32
    %46 = vector.broadcast %cst_20 : f32 to vector<1x64xf32>
    %47 = arith.addf %45, %46 : vector<1x64xf32>
    %48 = math.rsqrt %47 : vector<1x64xf32>
    %49 = arith.mulf %30, %48 : vector<1x64xf32>
    %50 = vector.broadcast %49 : vector<1x64xf32> to vector<32x64xf32>
    %51 = arith.mulf %39, %50 : vector<32x64xf32>
    %52 = vector.broadcast %31 : vector<1x64xf32> to vector<32x64xf32>
    %53 = arith.addf %51, %52 : vector<32x64xf32>
    %54 = vector.extract_strided_slice %29 {offsets = [32, 0], sizes = [32, 64], strides = [1, 1]} : vector<64x64xf32> to vector<32x64xf32>
    %cst_21 = arith.constant dense<0.000000e+00> : vector<64xf32>
    %55 = vector.multi_reduction <add>, %54, %cst_21 [0] : vector<32x64xf32> to vector<64xf32>
    %56 = vector.shape_cast %55 : vector<64xf32> to vector<1x64xf32>
    %cst_22 = arith.constant dense<0.000000e+00> : vector<1x64xf32>
    %57 = tpu.matmul %56, %0, %cst_22 {dimension_numbers = #tpu.dot_dimension_numbers<[1], [0], [0], [1], [0, 0, 1, 1], [], []>} : vector<1x64xf32>, vector<64x64xf32>, vector<1x64xf32> -> vector<1x64xf32>
    %cst_23 = arith.constant 0.001953125 : f32
    %58 = vector.broadcast %cst_23 : f32 to vector<1x64xf32>
    %59 = arith.mulf %57, %58 : vector<1x64xf32>
    %60 = vector.broadcast %59 : vector<1x64xf32> to vector<32x64xf32>
    %61 = arith.subf %54, %60 : vector<32x64xf32>
    %62 = arith.mulf %61, %61 : vector<32x64xf32>
    %cst_24 = arith.constant dense<0.000000e+00> : vector<64xf32>
    %63 = vector.multi_reduction <add>, %62, %cst_24 [0] : vector<32x64xf32> to vector<64xf32>
    %64 = vector.shape_cast %63 : vector<64xf32> to vector<1x64xf32>
    %cst_25 = arith.constant dense<0.000000e+00> : vector<1x64xf32>
    %65 = tpu.matmul %64, %0, %cst_25 {dimension_numbers = #tpu.dot_dimension_numbers<[1], [0], [0], [1], [0, 0, 1, 1], [], []>} : vector<1x64xf32>, vector<64x64xf32>, vector<1x64xf32> -> vector<1x64xf32>
    %cst_26 = arith.constant 0.001953125 : f32
    %66 = vector.broadcast %cst_26 : f32 to vector<1x64xf32>
    %67 = arith.mulf %65, %66 : vector<1x64xf32>
    %cst_27 = arith.constant 9.99999974E-6 : f32
    %68 = vector.broadcast %cst_27 : f32 to vector<1x64xf32>
    %69 = arith.addf %67, %68 : vector<1x64xf32>
    %70 = math.rsqrt %69 : vector<1x64xf32>
    %71 = arith.mulf %30, %70 : vector<1x64xf32>
    %72 = vector.broadcast %71 : vector<1x64xf32> to vector<32x64xf32>
    %73 = arith.mulf %61, %72 : vector<32x64xf32>
    %74 = vector.broadcast %31 : vector<1x64xf32> to vector<32x64xf32>
    %75 = arith.addf %73, %74 : vector<32x64xf32>
    %76 = tpu.concatenate %53, %75 in 0 : vector<32x64xf32>, vector<32x64xf32> -> vector<64x64xf32>
    %77 = vector.shape_cast %76 : vector<64x64xf32> to vector<4x16x64xf32>
    %c0_28 = arith.constant 0 : index
    %c0_29 = arith.constant 0 : index
    %c0_30 = arith.constant 0 : index
    %78 = vector.load %arg4[%c0_28, %c0_29, %c0_30] : memref<3x64x128xf32, #tpu.memory_space<vmem>>, vector<3x64x128xf32>
    %c0_31 = arith.constant 0 : index
    %c0_32 = arith.constant 0 : index
    %79 = vector.load %arg5[%c0_31, %c0_32] : memref<3x128xf32, #tpu.memory_space<vmem>>, vector<3x128xf32>
    %80 = vector.extract_strided_slice %77 {offsets = [0, 1, 0], sizes = [4, 1, 64], strides = [1, 1, 1]} : vector<4x16x64xf32> to vector<4x1x64xf32>
    %81 = vector.extract_strided_slice %77 {offsets = [0, 14, 0], sizes = [4, 1, 64], strides = [1, 1, 1]} : vector<4x16x64xf32> to vector<4x1x64xf32>
    %82 = tpu.concatenate %80, %77, %81 in 1 : vector<4x1x64xf32>, vector<4x16x64xf32>, vector<4x1x64xf32> -> vector<4x18x64xf32>
    %83 = vector.extract_strided_slice %82 {offsets = [0, 0, 0], sizes = [4, 16, 64], strides = [1, 1, 1]} : vector<4x18x64xf32> to vector<4x16x64xf32>
    %84 = vector.shape_cast %83 : vector<4x16x64xf32> to vector<64x64xf32>
    %85 = vector.extract_strided_slice %78 {offsets = [0, 0, 0], sizes = [1, 64, 128], strides = [1, 1, 1]} : vector<3x64x128xf32> to vector<1x64x128xf32>
    %86 = vector.shape_cast %85 : vector<1x64x128xf32> to vector<64x128xf32>
    %cst_33 = arith.constant dense<0.000000e+00> : vector<64x128xf32>
    %87 = tpu.matmul %84, %86, %cst_33 {dimension_numbers = #tpu.dot_dimension_numbers<[1], [0], [0], [1], [0, 0, 1, 1], [], []>} : vector<64x64xf32>, vector<64x128xf32>, vector<64x128xf32> -> vector<64x128xf32>
    %88 = vector.extract_strided_slice %82 {offsets = [0, 1, 0], sizes = [4, 16, 64], strides = [1, 1, 1]} : vector<4x18x64xf32> to vector<4x16x64xf32>
    %89 = vector.shape_cast %88 : vector<4x16x64xf32> to vector<64x64xf32>
    %90 = vector.extract_strided_slice %78 {offsets = [1, 0, 0], sizes = [1, 64, 128], strides = [1, 1, 1]} : vector<3x64x128xf32> to vector<1x64x128xf32>
    %91 = vector.shape_cast %90 : vector<1x64x128xf32> to vector<64x128xf32>
    %cst_34 = arith.constant dense<0.000000e+00> : vector<64x128xf32>
    %92 = tpu.matmul %89, %91, %cst_34 {dimension_numbers = #tpu.dot_dimension_numbers<[1], [0], [0], [1], [0, 0, 1, 1], [], []>} : vector<64x64xf32>, vector<64x128xf32>, vector<64x128xf32> -> vector<64x128xf32>
    %93 = arith.addf %87, %92 : vector<64x128xf32>
    %94 = vector.extract_strided_slice %82 {offsets = [0, 2, 0], sizes = [4, 16, 64], strides = [1, 1, 1]} : vector<4x18x64xf32> to vector<4x16x64xf32>
    %95 = vector.shape_cast %94 : vector<4x16x64xf32> to vector<64x64xf32>
    %96 = vector.extract_strided_slice %78 {offsets = [2, 0, 0], sizes = [1, 64, 128], strides = [1, 1, 1]} : vector<3x64x128xf32> to vector<1x64x128xf32>
    %97 = vector.shape_cast %96 : vector<1x64x128xf32> to vector<64x128xf32>
    %cst_35 = arith.constant dense<0.000000e+00> : vector<64x128xf32>
    %98 = tpu.matmul %95, %97, %cst_35 {dimension_numbers = #tpu.dot_dimension_numbers<[1], [0], [0], [1], [0, 0, 1, 1], [], []>} : vector<64x64xf32>, vector<64x128xf32>, vector<64x128xf32> -> vector<64x128xf32>
    %99 = arith.addf %93, %98 : vector<64x128xf32>
    %100 = vector.extract_strided_slice %79 {offsets = [0, 0], sizes = [1, 128], strides = [1, 1]} : vector<3x128xf32> to vector<1x128xf32>
    %101 = vector.broadcast %100 : vector<1x128xf32> to vector<64x128xf32>
    %102 = arith.addf %99, %101 : vector<64x128xf32>
    %cst_36 = arith.constant 0.000000e+00 : f32
    %103 = vector.broadcast %cst_36 : f32 to vector<64x128xf32>
    %104 = arith.maximumf %102, %103 : vector<64x128xf32>
    %105 = vector.extract_strided_slice %79 {offsets = [1, 0], sizes = [1, 128], strides = [1, 1]} : vector<3x128xf32> to vector<1x128xf32>
    %106 = vector.extract_strided_slice %79 {offsets = [2, 0], sizes = [1, 128], strides = [1, 1]} : vector<3x128xf32> to vector<1x128xf32>
    %107 = vector.extract_strided_slice %104 {offsets = [0, 0], sizes = [32, 128], strides = [1, 1]} : vector<64x128xf32> to vector<32x128xf32>
    %cst_37 = arith.constant dense<0.000000e+00> : vector<128xf32>
    %108 = vector.multi_reduction <add>, %107, %cst_37 [0] : vector<32x128xf32> to vector<128xf32>
    %109 = vector.shape_cast %108 : vector<128xf32> to vector<1x128xf32>
    %cst_38 = arith.constant dense<0.000000e+00> : vector<1x128xf32>
    %110 = tpu.matmul %109, %1, %cst_38 {dimension_numbers = #tpu.dot_dimension_numbers<[1], [0], [0], [1], [0, 0, 1, 1], [], []>} : vector<1x128xf32>, vector<128x128xf32>, vector<1x128xf32> -> vector<1x128xf32>
    %cst_39 = arith.constant 0.001953125 : f32
    %111 = vector.broadcast %cst_39 : f32 to vector<1x128xf32>
    %112 = arith.mulf %110, %111 : vector<1x128xf32>
    %113 = vector.broadcast %112 : vector<1x128xf32> to vector<32x128xf32>
    %114 = arith.subf %107, %113 : vector<32x128xf32>
    %115 = arith.mulf %114, %114 : vector<32x128xf32>
    %cst_40 = arith.constant dense<0.000000e+00> : vector<128xf32>
    %116 = vector.multi_reduction <add>, %115, %cst_40 [0] : vector<32x128xf32> to vector<128xf32>
    %117 = vector.shape_cast %116 : vector<128xf32> to vector<1x128xf32>
    %cst_41 = arith.constant dense<0.000000e+00> : vector<1x128xf32>
    %118 = tpu.matmul %117, %1, %cst_41 {dimension_numbers = #tpu.dot_dimension_numbers<[1], [0], [0], [1], [0, 0, 1, 1], [], []>} : vector<1x128xf32>, vector<128x128xf32>, vector<1x128xf32> -> vector<1x128xf32>
    %cst_42 = arith.constant 0.001953125 : f32
    %119 = vector.broadcast %cst_42 : f32 to vector<1x128xf32>
    %120 = arith.mulf %118, %119 : vector<1x128xf32>
    %cst_43 = arith.constant 9.99999974E-6 : f32
    %121 = vector.broadcast %cst_43 : f32 to vector<1x128xf32>
    %122 = arith.addf %120, %121 : vector<1x128xf32>
    %123 = math.rsqrt %122 : vector<1x128xf32>
    %124 = arith.mulf %105, %123 : vector<1x128xf32>
    %125 = vector.broadcast %124 : vector<1x128xf32> to vector<32x128xf32>
    %126 = arith.mulf %114, %125 : vector<32x128xf32>
    %127 = vector.broadcast %106 : vector<1x128xf32> to vector<32x128xf32>
    %128 = arith.addf %126, %127 : vector<32x128xf32>
    %129 = vector.extract_strided_slice %104 {offsets = [32, 0], sizes = [32, 128], strides = [1, 1]} : vector<64x128xf32> to vector<32x128xf32>
    %cst_44 = arith.constant dense<0.000000e+00> : vector<128xf32>
    %130 = vector.multi_reduction <add>, %129, %cst_44 [0] : vector<32x128xf32> to vector<128xf32>
    %131 = vector.shape_cast %130 : vector<128xf32> to vector<1x128xf32>
    %cst_45 = arith.constant dense<0.000000e+00> : vector<1x128xf32>
    %132 = tpu.matmul %131, %1, %cst_45 {dimension_numbers = #tpu.dot_dimension_numbers<[1], [0], [0], [1], [0, 0, 1, 1], [], []>} : vector<1x128xf32>, vector<128x128xf32>, vector<1x128xf32> -> vector<1x128xf32>
    %cst_46 = arith.constant 0.001953125 : f32
    %133 = vector.broadcast %cst_46 : f32 to vector<1x128xf32>
    %134 = arith.mulf %132, %133 : vector<1x128xf32>
    %135 = vector.broadcast %134 : vector<1x128xf32> to vector<32x128xf32>
    %136 = arith.subf %129, %135 : vector<32x128xf32>
    %137 = arith.mulf %136, %136 : vector<32x128xf32>
    %cst_47 = arith.constant dense<0.000000e+00> : vector<128xf32>
    %138 = vector.multi_reduction <add>, %137, %cst_47 [0] : vector<32x128xf32> to vector<128xf32>
    %139 = vector.shape_cast %138 : vector<128xf32> to vector<1x128xf32>
    %cst_48 = arith.constant dense<0.000000e+00> : vector<1x128xf32>
    %140 = tpu.matmul %139, %1, %cst_48 {dimension_numbers = #tpu.dot_dimension_numbers<[1], [0], [0], [1], [0, 0, 1, 1], [], []>} : vector<1x128xf32>, vector<128x128xf32>, vector<1x128xf32> -> vector<1x128xf32>
    %cst_49 = arith.constant 0.001953125 : f32
    %141 = vector.broadcast %cst_49 : f32 to vector<1x128xf32>
    %142 = arith.mulf %140, %141 : vector<1x128xf32>
    %cst_50 = arith.constant 9.99999974E-6 : f32
    %143 = vector.broadcast %cst_50 : f32 to vector<1x128xf32>
    %144 = arith.addf %142, %143 : vector<1x128xf32>
    %145 = math.rsqrt %144 : vector<1x128xf32>
    %146 = arith.mulf %105, %145 : vector<1x128xf32>
    %147 = vector.broadcast %146 : vector<1x128xf32> to vector<32x128xf32>
    %148 = arith.mulf %136, %147 : vector<32x128xf32>
    %149 = vector.broadcast %106 : vector<1x128xf32> to vector<32x128xf32>
    %150 = arith.addf %148, %149 : vector<32x128xf32>
    %151 = tpu.concatenate %128, %150 in 0 : vector<32x128xf32>, vector<32x128xf32> -> vector<64x128xf32>
    %152 = vector.shape_cast %151 : vector<64x128xf32> to vector<4x16x128xf32>
    %c0_51 = arith.constant 0 : index
    %c0_52 = arith.constant 0 : index
    %c0_53 = arith.constant 0 : index
    %153 = vector.load %arg6[%c0_51, %c0_52, %c0_53] : memref<3x128x128xf32, #tpu.memory_space<vmem>>, vector<3x128x128xf32>
    %c0_54 = arith.constant 0 : index
    %c0_55 = arith.constant 0 : index
    %154 = vector.load %arg7[%c0_54, %c0_55] : memref<3x128xf32, #tpu.memory_space<vmem>>, vector<3x128xf32>
    %155 = vector.extract_strided_slice %152 {offsets = [0, 1, 0], sizes = [4, 1, 128], strides = [1, 1, 1]} : vector<4x16x128xf32> to vector<4x1x128xf32>
    %156 = vector.extract_strided_slice %152 {offsets = [0, 14, 0], sizes = [4, 1, 128], strides = [1, 1, 1]} : vector<4x16x128xf32> to vector<4x1x128xf32>
    %157 = tpu.concatenate %155, %152, %156 in 1 : vector<4x1x128xf32>, vector<4x16x128xf32>, vector<4x1x128xf32> -> vector<4x18x128xf32>
    %158 = vector.extract_strided_slice %157 {offsets = [0, 0, 0], sizes = [4, 16, 128], strides = [1, 1, 1]} : vector<4x18x128xf32> to vector<4x16x128xf32>
    %159 = vector.shape_cast %158 : vector<4x16x128xf32> to vector<64x128xf32>
    %160 = vector.extract_strided_slice %153 {offsets = [0, 0, 0], sizes = [1, 128, 128], strides = [1, 1, 1]} : vector<3x128x128xf32> to vector<1x128x128xf32>
    %161 = vector.shape_cast %160 : vector<1x128x128xf32> to vector<128x128xf32>
    %cst_56 = arith.constant dense<0.000000e+00> : vector<64x128xf32>
    %162 = tpu.matmul %159, %161, %cst_56 {dimension_numbers = #tpu.dot_dimension_numbers<[1], [0], [0], [1], [0, 0, 1, 1], [], []>} : vector<64x128xf32>, vector<128x128xf32>, vector<64x128xf32> -> vector<64x128xf32>
    %163 = vector.extract_strided_slice %157 {offsets = [0, 1, 0], sizes = [4, 16, 128], strides = [1, 1, 1]} : vector<4x18x128xf32> to vector<4x16x128xf32>
    %164 = vector.shape_cast %163 : vector<4x16x128xf32> to vector<64x128xf32>
    %165 = vector.extract_strided_slice %153 {offsets = [1, 0, 0], sizes = [1, 128, 128], strides = [1, 1, 1]} : vector<3x128x128xf32> to vector<1x128x128xf32>
    %166 = vector.shape_cast %165 : vector<1x128x128xf32> to vector<128x128xf32>
    %cst_57 = arith.constant dense<0.000000e+00> : vector<64x128xf32>
    %167 = tpu.matmul %164, %166, %cst_57 {dimension_numbers = #tpu.dot_dimension_numbers<[1], [0], [0], [1], [0, 0, 1, 1], [], []>} : vector<64x128xf32>, vector<128x128xf32>, vector<64x128xf32> -> vector<64x128xf32>
    %168 = arith.addf %162, %167 : vector<64x128xf32>
    %169 = vector.extract_strided_slice %157 {offsets = [0, 2, 0], sizes = [4, 16, 128], strides = [1, 1, 1]} : vector<4x18x128xf32> to vector<4x16x128xf32>
    %170 = vector.shape_cast %169 : vector<4x16x128xf32> to vector<64x128xf32>
    %171 = vector.extract_strided_slice %153 {offsets = [2, 0, 0], sizes = [1, 128, 128], strides = [1, 1, 1]} : vector<3x128x128xf32> to vector<1x128x128xf32>
    %172 = vector.shape_cast %171 : vector<1x128x128xf32> to vector<128x128xf32>
    %cst_58 = arith.constant dense<0.000000e+00> : vector<64x128xf32>
    %173 = tpu.matmul %170, %172, %cst_58 {dimension_numbers = #tpu.dot_dimension_numbers<[1], [0], [0], [1], [0, 0, 1, 1], [], []>} : vector<64x128xf32>, vector<128x128xf32>, vector<64x128xf32> -> vector<64x128xf32>
    %174 = arith.addf %168, %173 : vector<64x128xf32>
    %175 = vector.extract_strided_slice %154 {offsets = [0, 0], sizes = [1, 128], strides = [1, 1]} : vector<3x128xf32> to vector<1x128xf32>
    %176 = vector.broadcast %175 : vector<1x128xf32> to vector<64x128xf32>
    %177 = arith.addf %174, %176 : vector<64x128xf32>
    %cst_59 = arith.constant 0.000000e+00 : f32
    %178 = vector.broadcast %cst_59 : f32 to vector<64x128xf32>
    %179 = arith.maximumf %177, %178 : vector<64x128xf32>
    %180 = vector.extract_strided_slice %154 {offsets = [1, 0], sizes = [1, 128], strides = [1, 1]} : vector<3x128xf32> to vector<1x128xf32>
    %181 = vector.extract_strided_slice %154 {offsets = [2, 0], sizes = [1, 128], strides = [1, 1]} : vector<3x128xf32> to vector<1x128xf32>
    %182 = vector.extract_strided_slice %179 {offsets = [0, 0], sizes = [32, 128], strides = [1, 1]} : vector<64x128xf32> to vector<32x128xf32>
    %cst_60 = arith.constant dense<0.000000e+00> : vector<128xf32>
    %183 = vector.multi_reduction <add>, %182, %cst_60 [0] : vector<32x128xf32> to vector<128xf32>
    %184 = vector.shape_cast %183 : vector<128xf32> to vector<1x128xf32>
    %cst_61 = arith.constant dense<0.000000e+00> : vector<1x128xf32>
    %185 = tpu.matmul %184, %1, %cst_61 {dimension_numbers = #tpu.dot_dimension_numbers<[1], [0], [0], [1], [0, 0, 1, 1], [], []>} : vector<1x128xf32>, vector<128x128xf32>, vector<1x128xf32> -> vector<1x128xf32>
    %cst_62 = arith.constant 0.001953125 : f32
    %186 = vector.broadcast %cst_62 : f32 to vector<1x128xf32>
    %187 = arith.mulf %185, %186 : vector<1x128xf32>
    %188 = vector.broadcast %187 : vector<1x128xf32> to vector<32x128xf32>
    %189 = arith.subf %182, %188 : vector<32x128xf32>
    %190 = arith.mulf %189, %189 : vector<32x128xf32>
    %cst_63 = arith.constant dense<0.000000e+00> : vector<128xf32>
    %191 = vector.multi_reduction <add>, %190, %cst_63 [0] : vector<32x128xf32> to vector<128xf32>
    %192 = vector.shape_cast %191 : vector<128xf32> to vector<1x128xf32>
    %cst_64 = arith.constant dense<0.000000e+00> : vector<1x128xf32>
    %193 = tpu.matmul %192, %1, %cst_64 {dimension_numbers = #tpu.dot_dimension_numbers<[1], [0], [0], [1], [0, 0, 1, 1], [], []>} : vector<1x128xf32>, vector<128x128xf32>, vector<1x128xf32> -> vector<1x128xf32>
    %cst_65 = arith.constant 0.001953125 : f32
    %194 = vector.broadcast %cst_65 : f32 to vector<1x128xf32>
    %195 = arith.mulf %193, %194 : vector<1x128xf32>
    %cst_66 = arith.constant 9.99999974E-6 : f32
    %196 = vector.broadcast %cst_66 : f32 to vector<1x128xf32>
    %197 = arith.addf %195, %196 : vector<1x128xf32>
    %198 = math.rsqrt %197 : vector<1x128xf32>
    %199 = arith.mulf %180, %198 : vector<1x128xf32>
    %200 = vector.broadcast %199 : vector<1x128xf32> to vector<32x128xf32>
    %201 = arith.mulf %189, %200 : vector<32x128xf32>
    %202 = vector.broadcast %181 : vector<1x128xf32> to vector<32x128xf32>
    %203 = arith.addf %201, %202 : vector<32x128xf32>
    %204 = vector.extract_strided_slice %179 {offsets = [32, 0], sizes = [32, 128], strides = [1, 1]} : vector<64x128xf32> to vector<32x128xf32>
    %cst_67 = arith.constant dense<0.000000e+00> : vector<128xf32>
    %205 = vector.multi_reduction <add>, %204, %cst_67 [0] : vector<32x128xf32> to vector<128xf32>
    %206 = vector.shape_cast %205 : vector<128xf32> to vector<1x128xf32>
    %cst_68 = arith.constant dense<0.000000e+00> : vector<1x128xf32>
    %207 = tpu.matmul %206, %1, %cst_68 {dimension_numbers = #tpu.dot_dimension_numbers<[1], [0], [0], [1], [0, 0, 1, 1], [], []>} : vector<1x128xf32>, vector<128x128xf32>, vector<1x128xf32> -> vector<1x128xf32>
    %cst_69 = arith.constant 0.001953125 : f32
    %208 = vector.broadcast %cst_69 : f32 to vector<1x128xf32>
    %209 = arith.mulf %207, %208 : vector<1x128xf32>
    %210 = vector.broadcast %209 : vector<1x128xf32> to vector<32x128xf32>
    %211 = arith.subf %204, %210 : vector<32x128xf32>
    %212 = arith.mulf %211, %211 : vector<32x128xf32>
    %cst_70 = arith.constant dense<0.000000e+00> : vector<128xf32>
    %213 = vector.multi_reduction <add>, %212, %cst_70 [0] : vector<32x128xf32> to vector<128xf32>
    %214 = vector.shape_cast %213 : vector<128xf32> to vector<1x128xf32>
    %cst_71 = arith.constant dense<0.000000e+00> : vector<1x128xf32>
    %215 = tpu.matmul %214, %1, %cst_71 {dimension_numbers = #tpu.dot_dimension_numbers<[1], [0], [0], [1], [0, 0, 1, 1], [], []>} : vector<1x128xf32>, vector<128x128xf32>, vector<1x128xf32> -> vector<1x128xf32>
    %cst_72 = arith.constant 0.001953125 : f32
    %216 = vector.broadcast %cst_72 : f32 to vector<1x128xf32>
    %217 = arith.mulf %215, %216 : vector<1x128xf32>
    %cst_73 = arith.constant 9.99999974E-6 : f32
    %218 = vector.broadcast %cst_73 : f32 to vector<1x128xf32>
    %219 = arith.addf %217, %218 : vector<1x128xf32>
    %220 = math.rsqrt %219 : vector<1x128xf32>
    %221 = arith.mulf %180, %220 : vector<1x128xf32>
    %222 = vector.broadcast %221 : vector<1x128xf32> to vector<32x128xf32>
    %223 = arith.mulf %211, %222 : vector<32x128xf32>
    %224 = vector.broadcast %181 : vector<1x128xf32> to vector<32x128xf32>
    %225 = arith.addf %223, %224 : vector<32x128xf32>
    %226 = tpu.concatenate %203, %225 in 0 : vector<32x128xf32>, vector<32x128xf32> -> vector<64x128xf32>
    %227 = vector.shape_cast %226 : vector<64x128xf32> to vector<4x16x128xf32>
    %228 = vector.extract_strided_slice %227 {offsets = [0, 0, 0], sizes = [4, 1, 128], strides = [1, 1, 1]} : vector<4x16x128xf32> to vector<4x1x128xf32>
    %229 = vector.shape_cast %228 : vector<4x1x128xf32> to vector<4x128xf32>
    %230 = vector.extract_strided_slice %227 {offsets = [0, 1, 0], sizes = [4, 1, 128], strides = [1, 1, 1]} : vector<4x16x128xf32> to vector<4x1x128xf32>
    %231 = vector.shape_cast %230 : vector<4x1x128xf32> to vector<4x128xf32>
    %232 = vector.extract_strided_slice %227 {offsets = [0, 2, 0], sizes = [4, 1, 128], strides = [1, 1, 1]} : vector<4x16x128xf32> to vector<4x1x128xf32>
    %233 = vector.shape_cast %232 : vector<4x1x128xf32> to vector<4x128xf32>
    %234 = vector.extract_strided_slice %227 {offsets = [0, 3, 0], sizes = [4, 1, 128], strides = [1, 1, 1]} : vector<4x16x128xf32> to vector<4x1x128xf32>
    %235 = vector.shape_cast %234 : vector<4x1x128xf32> to vector<4x128xf32>
    %236 = vector.extract_strided_slice %227 {offsets = [0, 4, 0], sizes = [4, 1, 128], strides = [1, 1, 1]} : vector<4x16x128xf32> to vector<4x1x128xf32>
    %237 = vector.shape_cast %236 : vector<4x1x128xf32> to vector<4x128xf32>
    %238 = vector.extract_strided_slice %227 {offsets = [0, 5, 0], sizes = [4, 1, 128], strides = [1, 1, 1]} : vector<4x16x128xf32> to vector<4x1x128xf32>
    %239 = vector.shape_cast %238 : vector<4x1x128xf32> to vector<4x128xf32>
    %240 = vector.extract_strided_slice %227 {offsets = [0, 6, 0], sizes = [4, 1, 128], strides = [1, 1, 1]} : vector<4x16x128xf32> to vector<4x1x128xf32>
    %241 = vector.shape_cast %240 : vector<4x1x128xf32> to vector<4x128xf32>
    %242 = vector.extract_strided_slice %227 {offsets = [0, 7, 0], sizes = [4, 1, 128], strides = [1, 1, 1]} : vector<4x16x128xf32> to vector<4x1x128xf32>
    %243 = vector.shape_cast %242 : vector<4x1x128xf32> to vector<4x128xf32>
    %244 = vector.extract_strided_slice %227 {offsets = [0, 8, 0], sizes = [4, 1, 128], strides = [1, 1, 1]} : vector<4x16x128xf32> to vector<4x1x128xf32>
    %245 = vector.shape_cast %244 : vector<4x1x128xf32> to vector<4x128xf32>
    %246 = vector.extract_strided_slice %227 {offsets = [0, 9, 0], sizes = [4, 1, 128], strides = [1, 1, 1]} : vector<4x16x128xf32> to vector<4x1x128xf32>
    %247 = vector.shape_cast %246 : vector<4x1x128xf32> to vector<4x128xf32>
    %248 = vector.extract_strided_slice %227 {offsets = [0, 10, 0], sizes = [4, 1, 128], strides = [1, 1, 1]} : vector<4x16x128xf32> to vector<4x1x128xf32>
    %249 = vector.shape_cast %248 : vector<4x1x128xf32> to vector<4x128xf32>
    %250 = vector.extract_strided_slice %227 {offsets = [0, 11, 0], sizes = [4, 1, 128], strides = [1, 1, 1]} : vector<4x16x128xf32> to vector<4x1x128xf32>
    %251 = vector.shape_cast %250 : vector<4x1x128xf32> to vector<4x128xf32>
    %252 = vector.extract_strided_slice %227 {offsets = [0, 12, 0], sizes = [4, 1, 128], strides = [1, 1, 1]} : vector<4x16x128xf32> to vector<4x1x128xf32>
    %253 = vector.shape_cast %252 : vector<4x1x128xf32> to vector<4x128xf32>
    %254 = vector.extract_strided_slice %227 {offsets = [0, 13, 0], sizes = [4, 1, 128], strides = [1, 1, 1]} : vector<4x16x128xf32> to vector<4x1x128xf32>
    %255 = vector.shape_cast %254 : vector<4x1x128xf32> to vector<4x128xf32>
    %256 = vector.extract_strided_slice %227 {offsets = [0, 14, 0], sizes = [4, 1, 128], strides = [1, 1, 1]} : vector<4x16x128xf32> to vector<4x1x128xf32>
    %257 = vector.shape_cast %256 : vector<4x1x128xf32> to vector<4x128xf32>
    %258 = vector.extract_strided_slice %227 {offsets = [0, 15, 0], sizes = [4, 1, 128], strides = [1, 1, 1]} : vector<4x16x128xf32> to vector<4x1x128xf32>
    %259 = vector.shape_cast %258 : vector<4x1x128xf32> to vector<4x128xf32>
    %260 = tpu.concatenate %229, %231, %233, %235, %237, %239, %241, %243, %245, %247, %249, %251, %253, %255, %257, %259 in 1 : vector<4x128xf32>, vector<4x128xf32>, vector<4x128xf32>, vector<4x128xf32>, vector<4x128xf32>, vector<4x128xf32>, vector<4x128xf32>, vector<4x128xf32>, vector<4x128xf32>, vector<4x128xf32>, vector<4x128xf32>, vector<4x128xf32>, vector<4x128xf32>, vector<4x128xf32>, vector<4x128xf32>, vector<4x128xf32> -> vector<4x2048xf32>
    %261 = arith.truncf %260 : vector<4x2048xf32> to vector<4x2048xbf16>
    %c0_74 = arith.constant 0 : index
    %c0_75 = arith.constant 0 : index
    %262 = vector.load %arg10[%c0_74, %c0_75] : memref<2048x512xbf16, #tpu.memory_space<vmem>>, vector<2048x512xbf16>
    %cst_76 = arith.constant dense<0.000000e+00> : vector<4x512xf32>
    %263 = tpu.matmul %261, %262, %cst_76 {dimension_numbers = #tpu.dot_dimension_numbers<[1], [0], [0], [1], [0, 0, 1, 1], [], []>} : vector<4x2048xbf16>, vector<2048x512xbf16>, vector<4x512xf32> -> vector<4x512xf32>
    %c0_77 = arith.constant 0 : index
    %c0_78 = arith.constant 0 : index
    %264 = vector.load %arg11[%c0_77, %c0_78] : memref<1x512xf32, #tpu.memory_space<vmem>>, vector<1x512xf32>
    %265 = vector.broadcast %264 : vector<1x512xf32> to vector<4x512xf32>
    %266 = arith.addf %263, %265 : vector<4x512xf32>
    %cst_79 = arith.constant 0.000000e+00 : f32
    %267 = vector.broadcast %cst_79 : f32 to vector<4x512xf32>
    %268 = arith.maximumf %266, %267 : vector<4x512xf32>
    %269 = arith.truncf %268 : vector<4x512xf32> to vector<4x512xbf16>
    %c0_80 = arith.constant 0 : index
    %c0_81 = arith.constant 0 : index
    %270 = vector.load %arg12[%c0_80, %c0_81] : memref<512x512xbf16, #tpu.memory_space<vmem>>, vector<512x512xbf16>
    %cst_82 = arith.constant dense<0.000000e+00> : vector<4x512xf32>
    %271 = tpu.matmul %269, %270, %cst_82 {dimension_numbers = #tpu.dot_dimension_numbers<[1], [0], [0], [1], [0, 0, 1, 1], [], []>} : vector<4x512xbf16>, vector<512x512xbf16>, vector<4x512xf32> -> vector<4x512xf32>
    %c0_83 = arith.constant 0 : index
    %c0_84 = arith.constant 0 : index
    %272 = vector.load %arg13[%c0_83, %c0_84] : memref<1x512xf32, #tpu.memory_space<vmem>>, vector<1x512xf32>
    %273 = vector.broadcast %272 : vector<1x512xf32> to vector<4x512xf32>
    %274 = arith.addf %271, %273 : vector<4x512xf32>
    %cst_85 = arith.constant 0.000000e+00 : f32
    %275 = vector.broadcast %cst_85 : f32 to vector<4x512xf32>
    %276 = arith.maximumf %274, %275 : vector<4x512xf32>
    %c0_86 = arith.constant 0 : index
    %c0_87 = arith.constant 0 : index
    %277 = vector.load %arg14[%c0_86, %c0_87] : memref<512x128xf32, #tpu.memory_space<vmem>>, vector<512x128xf32>
    %cst_88 = arith.constant dense<0.000000e+00> : vector<4x128xf32>
    %278 = tpu.matmul %276, %277, %cst_88 {dimension_numbers = #tpu.dot_dimension_numbers<[1], [0], [0], [1], [0, 0, 1, 1], [], []>} : vector<4x512xf32>, vector<512x128xf32>, vector<4x128xf32> -> vector<4x128xf32>
    %c0_89 = arith.constant 0 : index
    %c0_90 = arith.constant 0 : index
    %279 = vector.load %arg15[%c0_89, %c0_90] : memref<1x128xf32, #tpu.memory_space<vmem>>, vector<1x128xf32>
    %280 = vector.broadcast %279 : vector<1x128xf32> to vector<4x128xf32>
    %281 = arith.addf %278, %280 : vector<4x128xf32>
    %c0_91 = arith.constant 0 : index
    %c0_92 = arith.constant 0 : index
    %282 = vector.load %arg16[%c0_91, %c0_92] : memref<4x128xf32, #tpu.memory_space<vmem>>, vector<4x128xf32>
    tpu.vector_store %arg16[%c0_91, %c0_92], %281 {strides = array<i32>} : memref<4x128xf32, #tpu.memory_space<vmem>>, vector<4x128xf32>,
    return
  }
  func.func @transform_0(%arg0: i32) -> (i32, i32, i32) {
    %c0_i32 = arith.constant 0 : i32
    %c0_i32_0 = arith.constant 0 : i32
    %c0_i32_1 = arith.constant 0 : i32
    %c0_i32_2 = arith.constant 0 : i32
    return %c0_i32, %c0_i32_0, %c0_i32_1 : i32, i32, i32
  }
  func.func @transform_1(%arg0: i32) -> (i32, i32, i32) {
    %c0_i32 = arith.constant 0 : i32
    %c0_i32_0 = arith.constant 0 : i32
    %c0_i32_1 = arith.constant 0 : i32
    %c0_i32_2 = arith.constant 0 : i32
    return %c0_i32, %c0_i32_0, %c0_i32_1 : i32, i32, i32
  }
  func.func @transform_2(%arg0: i32) -> (i32, i32) {
    %c0_i32 = arith.constant 0 : i32
    %c0_i32_0 = arith.constant 0 : i32
    %c0_i32_1 = arith.constant 0 : i32
    return %c0_i32, %c0_i32_0 : i32, i32
  }
  func.func @transform_3(%arg0: i32) -> (i32, i32, i32) {
    %c0_i32 = arith.constant 0 : i32
    %c0_i32_0 = arith.constant 0 : i32
    %c0_i32_1 = arith.constant 0 : i32
    %c0_i32_2 = arith.constant 0 : i32
    return %c0_i32, %c0_i32_0, %c0_i32_1 : i32, i32, i32
  }
  func.func @transform_4(%arg0: i32) -> (i32, i32) {
    %c0_i32 = arith.constant 0 : i32
    %c0_i32_0 = arith.constant 0 : i32
    %c0_i32_1 = arith.constant 0 : i32
    return %c0_i32, %c0_i32_0 : i32, i32
  }
  func.func @transform_5(%arg0: i32) -> (i32, i32, i32) {
    %c0_i32 = arith.constant 0 : i32
    %c0_i32_0 = arith.constant 0 : i32
    %c0_i32_1 = arith.constant 0 : i32
    %c0_i32_2 = arith.constant 0 : i32
    return %c0_i32, %c0_i32_0, %c0_i32_1 : i32, i32, i32
  }
  func.func @transform_6(%arg0: i32) -> (i32, i32) {
    %c0_i32 = arith.constant 0 : i32
    %c0_i32_0 = arith.constant 0 : i32
    %c0_i32_1 = arith.constant 0 : i32
    return %c0_i32, %c0_i32_0 : i32, i32
  }
  func.func @transform_7(%arg0: i32) -> (i32, i32) {
    %c0_i32 = arith.constant 0 : i32
    %c0_i32_0 = arith.constant 0 : i32
    %c0_i32_1 = arith.constant 0 : i32
    return %c0_i32, %c0_i32_0 : i32, i32
  }
  func.func @transform_8(%arg0: i32) -> (i32, i32) {
    %c0_i32 = arith.constant 0 : i32
    %c0_i32_0 = arith.constant 0 : i32
    %c0_i32_1 = arith.constant 0 : i32
    return %c0_i32, %c0_i32_0 : i32, i32
  }
  func.func @transform_9(%arg0: i32) -> (i32, i32) {
    %c0_i32 = arith.constant 0 : i32
    %c0_i32_0 = arith.constant 0 : i32
    %c0_i32_1 = arith.constant 0 : i32
    return %c0_i32, %c0_i32_0 : i32, i32
  }
  func.func @transform_10(%arg0: i32) -> (i32, i32) {
    %c0_i32 = arith.constant 0 : i32
    %c0_i32_0 = arith.constant 0 : i32
    %c0_i32_1 = arith.constant 0 : i32
    return %c0_i32, %c0_i32_0 : i32, i32
  }
  func.func @transform_11(%arg0: i32) -> (i32, i32) {
    %c0_i32 = arith.constant 0 : i32
    %c0_i32_0 = arith.constant 0 : i32
    %c0_i32_1 = arith.constant 0 : i32
    return %c0_i32, %c0_i32_0 : i32, i32
  }
  func.func @transform_12(%arg0: i32) -> (i32, i32) {
    %c0_i32 = arith.constant 0 : i32
    %c0_i32_0 = arith.constant 0 : i32
    %c0_i32_1 = arith.constant 0 : i32
    return %c0_i32, %c0_i32_0 : i32, i32
  }
  func.func @transform_13(%arg0: i32) -> (i32, i32) {
    %c0_i32 = arith.constant 0 : i32
    %c0_i32_0 = arith.constant 0 : i32
    %c0_i32_1 = arith.constant 0 : i32
    return %c0_i32, %c0_i32_0 : i32, i32
  }
  func.func @transform_14(%arg0: i32) -> (i32, i32) {
    %c0_i32 = arith.constant 0 : i32
    %c0_i32_0 = arith.constant 0 : i32
    %c0_i32_1 = arith.constant 0 : i32
    return %c0_i32, %c0_i32_0 : i32, i32
  }
  func.func @transform_15(%arg0: i32) -> (i32, i32) {
    %c0_i32 = arith.constant 0 : i32
    %c0_i32_0 = arith.constant 0 : i32
    %c0_i32_1 = arith.constant 0 : i32
    return %c0_i32, %c0_i32_0 : i32, i32
  }
}

</mosaic_0001>

<bundles_post_ra>
// kernel: siamese_forward.1
= control target key start
LH: loop header
LB: loop body
LE: loop exit
PB: predicated region body
PF: predicated region fallthrough
CT: control target
= control target key end

     0   :  { %20 = vsyncpa [#allocation3], 0  ;;  %s12960_s0 = inlined_call_operand.vmem [shape: f32[4,16,16], index: 0, kind: input, shape index: {}]   ;;  %s12961_s1 = inlined_call_operand.hbm [shape: f32[3,16,64], index: 1, kind: input, shape index: {}]   ;;  %s12962_s2 = inlined_call_operand.hbm [shape: f32[3,64], index: 2, kind: input, shape index: {}]   ;;  %s12963_s3 = inlined_call_operand.hbm [shape: f32[3,64,128], index: 3, kind: input, shape index: {}]   ;;  %s12964_s4 = inlined_call_operand.hbm [shape: f32[3,128], index: 4, kind: input, shape index: {}]   ;;  %s12965_s5 = inlined_call_operand.hbm [shape: f32[3,128,128], index: 5, kind: input, shape index: {}]   ;;  %s12966_s6 = inlined_call_operand.hbm [shape: f32[3,128], index: 6, kind: input, shape index: {}]   ;;  %s12967_s7 = inlined_call_operand.hbm [shape: f32[64,64], index: 7, kind: input, shape index: {}]   ;;  %s12968_s8 = inlined_call_operand.hbm [shape: f32[128,128], index: 8, kind: input, shape index: {}]   ;;  %s12969_s9 = inlined_call_operand.hbm [shape: bf16[2048,512], index: 9, kind: input, shape index: {}]   ;;  %s12970_s10 = inlined_call_operand.hbm [shape: f32[1,512], index: 10, kind: input, shape index: {}]   ;;  %s12971_s11 = inlined_call_operand.hbm [shape: bf16[512,512], index: 11, kind: input, shape index: {}]   ;;  %s12972_s12 = inlined_call_operand.hbm [shape: f32[1,512], index: 12, kind: input, shape index: {}]   ;;  %s12973_s13 = inlined_call_operand.hbm [shape: f32[512,128], index: 13, kind: input, shape index: {}]   ;;  %s12974_s14 = inlined_call_operand.hbm [shape: f32[1,128], index: 14, kind: input, shape index: {}]   ;;  %s12975_s15 = inlined_call_operand.vmem [shape: f32[4,128], index: 15, kind: output, shape index: {}]  }
   0x1   :  { %21 = vsyncpa [#allocation5], 0 }
   0x2   :  { %22 = vsyncpa [#allocation8], 0 }
   0x3   :  { %23 = vsyncpa [#allocation11], 0 }
   0x4   :  { %24 = vsyncpa [#allocation14], 0 }
   0x5   :  { %25 = vsyncpa [#allocation17], 0 }
   0x6   :  { %26 = vsyncpa [#allocation20], 0 }
   0x7   :  { %27 = vsyncpa [#allocation23], 0  ;;  %s11660_s18 = smov [#allocation4]   ;;  %s11661_s20 = smov [#allocation7]  }
   0x8   :  { %s48_s19 = sshll.u32 %s11660_s18, 4  ;;  %s70_s21 = sshll.u32 %s11661_s20, 4  ;;  %s49_s19 = int_to_ptr.vmem [resolvable:$true] %s48_s19  ;;  %s71_s21 = int_to_ptr.vmem [resolvable:$true] %s70_s21 }
   0x9   :  { %s11336_s24 = scalar_lea.hbm %s12962_s2, 64 }
   0xa   :  { %p11337_p0 = scmp.ne.s32.totalorder %s12962_s2, %s11336_s24  ;;  %p11340_p1 = scmp.lt.u32.totalorder %s11336_s24, %s12962_s2 }
   0xc   :  { %p11342_p2 = pnand %p11340_p1, %p11337_p0 }
   0xe   :  { %11345 = shalt.err (!%p11342_p2)
}
   0xf   :  { %s11346_s29 = scalar_lea.vmem %s49_s19, 64  ;;  %p11351_p4 = scmp.lt.s32.totalorder %s49_s19, %s49_s19 }
  0x10   :  { %p11347_p3 = scmp.ne.s32.totalorder %s49_s19, %s11346_s29  ;;  %p11352_p5 = scmp.lt.s32.totalorder %s11346_s29, %s11346_s29 }
  0x12   :  { %p11353_p6 = por %p11352_p5, %p11351_p4 }
  0x14   :  { %p11354_p7 = pnand %p11353_p6, %p11347_p3 }
  0x16   :  { %11357 = shalt.err (!%p11354_p7)
}
  0x17   :  { %51 = dma.hbm_to_vmem [thread:$0]  %s12962_s2, 64, %s49_s19, [#allocation5]  }
  0x18   :  { %s11358_s20 = scalar_lea.hbm %s12964_s4, 64 }
  0x19   :  { %p11359_p8 = scmp.ne.s32.totalorder %s12964_s4, %s11358_s20  ;;  %p11362_p9 = scmp.lt.u32.totalorder %s11358_s20, %s12964_s4 }
  0x1b   :  { %p11364_p10 = pnand %p11362_p9, %p11359_p8 }
  0x1d   :  { %11367 = shalt.err (!%p11364_p10)
}
  0x1e   :  { %s11368_s26 = scalar_lea.vmem %s71_s21, 64  ;;  %p11373_p12 = scmp.lt.s32.totalorder %s71_s21, %s71_s21 }
  0x1f   :  { %p11369_p11 = scmp.ne.s32.totalorder %s71_s21, %s11368_s26  ;;  %p11374_p13 = scmp.lt.s32.totalorder %s11368_s26, %s11368_s26 }
  0x21   :  { %p11375_p0 = por %p11374_p13, %p11373_p12 }
  0x23   :  { %p11376_p1 = pnand %p11375_p0, %p11369_p11 }
  0x25   :  { %11379 = shalt.err (!%p11376_p1)
}
  0x26   :  { %73 = dma.hbm_to_vmem [thread:$0]  %s12964_s4, 64, %s71_s21, [#allocation8]  }
  0x27   :  { %s11662_s27 = smov [#allocation10]   ;;  %s11380_s16 = scalar_lea.hbm %s12966_s6, 64 }
  0x28   :  { %s92_s28 = sshll.u32 %s11662_s27, 4  ;;  %p11381_p2 = scmp.ne.s32.totalorder %s12966_s6, %s11380_s16  ;;  %s93_s28 = int_to_ptr.vmem [resolvable:$true] %s92_s28 }
  0x29   :  { %p11384_p3 = scmp.lt.u32.totalorder %s11380_s16, %s12966_s6 }
  0x2b   :  { %p11386_p4 = pnand %p11384_p3, %p11381_p2 }
  0x2d   :  { %11389 = shalt.err (!%p11386_p4)
}
  0x2e   :  { %s11390_s23 = scalar_lea.vmem %s93_s28, 64  ;;  %p11395_p6 = scmp.lt.s32.totalorder %s93_s28, %s93_s28 }
  0x2f   :  { %p11391_p5 = scmp.ne.s32.totalorder %s93_s28, %s11390_s23  ;;  %p11396_p7 = scmp.lt.s32.totalorder %s11390_s23, %s11390_s23 }
  0x31   :  { %p11397_p8 = por %p11396_p7, %p11395_p6 }
  0x33   :  { %p11398_p9 = pnand %p11397_p8, %p11391_p5 }
  0x35   :  { %11401 = shalt.err (!%p11398_p9)
}
  0x36   :  { %95 = dma.hbm_to_vmem [thread:$0]  %s12966_s6, 64, %s93_s28, [#allocation11]  }
  0x37   :  { %s11663_s24 = smov [#allocation13]   ;;  %s11664_s26 = smov [#allocation16]  }
  0x38   :  { %s113_s25 = sshll.u32 %s11663_s24, 4  ;;  %s138_s2 = sshll.u32 %s11664_s26, 4  ;;  %s114_s25 = int_to_ptr.vmem [resolvable:$true] %s113_s25  ;;  %s139_s2 = int_to_ptr.vmem [resolvable:$true] %s138_s2 }
  0x39   :  { %s11402_s29 = scalar_lea.hbm %s12968_s8, 2048 }
  0x3a   :  { %p11403_p10 = scmp.ne.s32.totalorder %s12968_s8, %s11402_s29  ;;  %p11406_p11 = scmp.lt.u32.totalorder %s11402_s29, %s12968_s8 }
  0x3c   :  { %p11408_p12 = pnand %p11406_p11, %p11403_p10 }
  0x3e   :  { %11411 = shalt.err (!%p11408_p12)
}
  0x3f   :  { %s11412_s6 = scalar_lea.vmem %s114_s25, 2048  ;;  %p11417_p0 = scmp.lt.s32.totalorder %s114_s25, %s114_s25 }
  0x40   :  { %p11413_p13 = scmp.ne.s32.totalorder %s114_s25, %s11412_s6  ;;  %p11418_p1 = scmp.lt.s32.totalorder %s11412_s6, %s11412_s6 }
  0x42   :  { %p11419_p2 = por %p11418_p1, %p11417_p0 }
  0x44   :  { %p11420_p3 = pnand %p11419_p2, %p11413_p13 }
  0x46   :  { %11423 = shalt.err (!%p11420_p3)
}
  0x47   :  { %s11665_s28 = smov 128   ;;  %s11666_s20 = smov 8  }
  0x48   :  { %119 = dma.hbm_to_vmem [thread:$0]  %s12968_s8, 2048, %s114_s25, [#allocation14], %s11665_s28, %s11665_s28, %s11666_s20  }
  0x49   :  { %s11424_s24 = scalar_lea.hbm %s12970_s10, 64 }
  0x4a   :  { %p11425_p4 = scmp.ne.s32.totalorder %s12970_s10, %s11424_s24  ;;  %p11428_p5 = scmp.lt.u32.totalorder %s11424_s24, %s12970_s10 }
  0x4c   :  { %p11430_p6 = pnand %p11428_p5, %p11425_p4 }
  0x4e   :  { %11433 = shalt.err (!%p11430_p6)
}
  0x4f   :  { %s11434_s30 = scalar_lea.vmem %s139_s2, 64  ;;  %p11439_p8 = scmp.lt.s32.totalorder %s139_s2, %s139_s2 }
  0x50   :  { %p11435_p7 = scmp.ne.s32.totalorder %s139_s2, %s11434_s30  ;;  %p11440_p9 = scmp.lt.s32.totalorder %s11434_s30, %s11434_s30 }
  0x52   :  { %p11441_p10 = por %p11440_p9, %p11439_p8 }
  0x54   :  { %p11442_p11 = pnand %p11441_p10, %p11435_p7 }
  0x56   :  { %11445 = shalt.err (!%p11442_p11)
}
  0x57   :  { %141 = dma.hbm_to_vmem [thread:$0]  %s12970_s10, 64, %s139_s2, [#allocation17]  }
  0x58   :  { %s11667_s16 = smov [#allocation19]   ;;  %s11668_s18 = smov [#allocation2]  }
  0x59   :  { %s160_s17 = sshll.u32 %s11667_s16, 4  ;;  %s35_s6 = sshll.u32 %s11668_s18, 4  ;;  %s161_s17 = int_to_ptr.vmem [resolvable:$true] %s160_s17  ;;  %s36_s6 = int_to_ptr.vmem [resolvable:$true] %s35_s6 }
  0x5a   :  { %s11446_s4 = scalar_lea.hbm %s12972_s12, 64 }
  0x5b   :  { %p11447_p12 = scmp.ne.s32.totalorder %s12972_s12, %s11446_s4  ;;  %p11450_p13 = scmp.lt.u32.totalorder %s11446_s4, %s12972_s12 }
  0x5d   :  { %p11452_p0 = pnand %p11450_p13, %p11447_p12 }
  0x5f   :  { %11455 = shalt.err (!%p11452_p0)
}
  0x60   :  { %s11456_s10 = scalar_lea.vmem %s161_s17, 64  ;;  %p11461_p2 = scmp.lt.s32.totalorder %s161_s17, %s161_s17 }
  0x61   :  { %p11457_p1 = scmp.ne.s32.totalorder %s161_s17, %s11456_s10  ;;  %p11462_p3 = scmp.lt.s32.totalorder %s11456_s10, %s11456_s10 }
  0x63   :  { %p11463_p4 = por %p11462_p3, %p11461_p2 }
  0x65   :  { %p11464_p5 = pnand %p11463_p4, %p11457_p1 }
  0x67   :  { %11467 = shalt.err (!%p11464_p5)
}
  0x68   :  { %163 = dma.hbm_to_vmem [thread:$0]  %s12972_s12, 64, %s161_s17, [#allocation20]  }
  0x69   :  { %s11468_s8 = scalar_lea.hbm %s12961_s1, 768 }
  0x6a   :  { %p11469_p6 = scmp.ne.s32.totalorder %s12961_s1, %s11468_s8  ;;  %p11472_p7 = scmp.lt.u32.totalorder %s11468_s8, %s12961_s1 }
  0x6c   :  { %p11474_p8 = pnand %p11472_p7, %p11469_p6 }
  0x6e   :  { %11477 = shalt.err (!%p11474_p8)
}
  0x6f   :  { %s11478_s23 = scalar_lea.vmem %s36_s6, 768  ;;  %p11483_p10 = scmp.lt.s32.totalorder %s36_s6, %s36_s6 }
  0x70   :  { %p11479_p9 = scmp.ne.s32.totalorder %s36_s6, %s11478_s23  ;;  %p11484_p11 = scmp.lt.s32.totalorder %s11478_s23, %s11478_s23 }
  0x72   :  { %p11485_p12 = por %p11484_p11, %p11483_p10 }
  0x74   :  { %p11486_p13 = pnand %p11485_p12, %p11479_p9 }
  0x76   :  { %11489 = shalt.err (!%p11486_p13)
}
  0x77   :  { %41 = dma.hbm_to_vmem [thread:$0]  %s12961_s1, 768, %s36_s6, [#allocation3], %s11665_s28, %s11665_s28, %s11666_s20  }
  0x78   :  { %s11669_s4 = smov [#allocation6]   ;;  %s11670_s24 = smov [#allocation9]  }
  0x79   :  { %s57_s21 = sshll.u32 %s11669_s4, 4  ;;  %s79_s26 = sshll.u32 %s11670_s24, 4  ;;  %s58_s21 = int_to_ptr.vmem [resolvable:$true] %s57_s21  ;;  %s80_s26 = int_to_ptr.vmem [resolvable:$true] %s79_s26 }
  0x7a   :  { %s11490_s2 = scalar_lea.hbm %s12963_s3, 3072 }
  0x7b   :  { %p11491_p0 = scmp.ne.s32.totalorder %s12963_s3, %s11490_s2  ;;  %p11494_p1 = scmp.lt.u32.totalorder %s11490_s2, %s12963_s3 }
  0x7d   :  { %p11496_p2 = pnand %p11494_p1, %p11491_p0 }
  0x7f   :  { %11499 = shalt.err (!%p11496_p2)
}
  0x80   :  { %s11500_s1 = scalar_lea.vmem %s58_s21, 3072  ;;  %p11505_p4 = scmp.lt.s32.totalorder %s58_s21, %s58_s21 }
  0x81   :  { %p11501_p3 = scmp.ne.s32.totalorder %s58_s21, %s11500_s1  ;;  %p11506_p5 = scmp.lt.s32.totalorder %s11500_s1, %s11500_s1 }
  0x83   :  { %p11507_p6 = por %p11506_p5, %p11505_p4 }
  0x85   :  { %p11508_p7 = pnand %p11507_p6, %p11501_p3 }
  0x87   :  { %11511 = shalt.err (!%p11508_p7)
}
  0x88   :  { %63 = dma.hbm_to_vmem [thread:$0]  %s12963_s3, 3072, %s58_s21, [#allocation5], %s11665_s28, %s11665_s28, %s11666_s20  }
  0x89   :  { %s11512_s22 = scalar_lea.hbm %s12965_s5, 6144 }
  0x8a   :  { %p11513_p8 = scmp.ne.s32.totalorder %s12965_s5, %s11512_s22  ;;  %p11516_p9 = scmp.lt.u32.totalorder %s11512_s22, %s12965_s5 }
  0x8c   :  { %p11518_p10 = pnand %p11516_p9, %p11513_p8 }
  0x8e   :  { %11521 = shalt.err (!%p11518_p10)
}
  0x8f   :  { %s11522_s24 = scalar_lea.vmem %s80_s26, 6144  ;;  %p11527_p12 = scmp.lt.s32.totalorder %s80_s26, %s80_s26 }
  0x90   :  { %p11523_p11 = scmp.ne.s32.totalorder %s80_s26, %s11522_s24  ;;  %p11528_p13 = scmp.lt.s32.totalorder %s11522_s24, %s11522_s24 }
  0x92   :  { %p11529_p0 = por %p11528_p13, %p11527_p12 }
  0x94   :  { %p11530_p1 = pnand %p11529_p0, %p11523_p11 }
  0x96   :  { %11533 = shalt.err (!%p11530_p1)
}
  0x97   :  { %85 = dma.hbm_to_vmem [thread:$0]  %s12965_s5, 6144, %s80_s26, [#allocation8], %s11665_s28, %s11665_s28, %s11666_s20  }
  0x98   :  { %s11671_s19 = smov [#allocation12]   ;;  %s11672_s2 = smov [#allocation15]  }
  0x99   :  { %s101_s10 = sshll.u32 %s11671_s19, 4  ;;  %s125_s27 = sshll.u32 %s11672_s2, 4  ;;  %s102_s10 = int_to_ptr.vmem [resolvable:$true] %s101_s10  ;;  %s126_s27 = int_to_ptr.vmem [resolvable:$true] %s125_s27 }
  0x9a   :  { %s11534_s8 = scalar_lea.hbm %s12967_s7, 1024 }
  0x9b   :  { %p11535_p2 = scmp.ne.s32.totalorder %s12967_s7, %s11534_s8  ;;  %p11538_p3 = scmp.lt.u32.totalorder %s11534_s8, %s12967_s7 }
  0x9d   :  { %p11540_p4 = pnand %p11538_p3, %p11535_p2 }
  0x9f   :  { %11543 = shalt.err (!%p11540_p4)
}
  0xa0   :  { %s11544_s5 = scalar_lea.vmem %s102_s10, 1024  ;;  %p11549_p6 = scmp.lt.s32.totalorder %s102_s10, %s102_s10 }
  0xa1   :  { %p11545_p5 = scmp.ne.s32.totalorder %s102_s10, %s11544_s5  ;;  %p11550_p7 = scmp.lt.s32.totalorder %s11544_s5, %s11544_s5 }
  0xa3   :  { %p11551_p8 = por %p11550_p7, %p11549_p6 }
  0xa5   :  { %p11552_p9 = pnand %p11551_p8, %p11545_p5 }
  0xa7   :  { %11555 = shalt.err (!%p11552_p9)
}
  0xa8   :  { %107 = dma.hbm_to_vmem [thread:$0]  %s12967_s7, 1024, %s102_s10, [#allocation11], %s11665_s28, %s11665_s28, %s11666_s20  }
  0xa9   :  { %s11556_s12 = scalar_lea.hbm %s12969_s9, 65536 }
  0xaa   :  { %p11557_p10 = scmp.ne.s32.totalorder %s12969_s9, %s11556_s12  ;;  %p11560_p11 = scmp.lt.u32.totalorder %s11556_s12, %s12969_s9 }
  0xac   :  { %p11562_p12 = pnand %p11560_p11, %p11557_p10 }
  0xae   :  { %11565 = shalt.err (!%p11562_p12)
}
  0xaf   :  { %s11566_s21 = scalar_lea.vmem %s126_s27, 65536  ;;  %p11571_p0 = scmp.lt.s32.totalorder %s126_s27, %s126_s27 }
  0xb0   :  { %p11567_p13 = scmp.ne.s32.totalorder %s126_s27, %s11566_s21  ;;  %p11572_p1 = scmp.lt.s32.totalorder %s11566_s21, %s11566_s21 }
  0xb2   :  { %p11573_p2 = por %p11572_p1, %p11571_p0 }
  0xb4   :  { %p11574_p3 = pnand %p11573_p2, %p11567_p13 }
  0xb6   :  { %11577 = shalt.err (!%p11574_p3)
}
  0xb7   :  { %s11673_s7 = smov 256   ;;  %s11674_s19 = smov 16  }
  0xb8   :  { %131 = dma.hbm_to_vmem [thread:$0]  %s12969_s9, 65536, %s126_s27, [#allocation14], %s11673_s7, %s11673_s7, %s11674_s19  }
  0xb9   :  { %s11675_s29 = smov [#allocation18]   ;;  %s11676_s8 = smov [#allocation21]  }
  0xba   :  { %s147_s30 = sshll.u32 %s11675_s29, 4  ;;  %s169_s1 = sshll.u32 %s11676_s8, 4  ;;  %s148_s30 = int_to_ptr.vmem [resolvable:$true] %s147_s30  ;;  %s170_s1 = int_to_ptr.vmem [resolvable:$true] %s169_s1 }
  0xbb   :  { %s11578_s16 = scalar_lea.hbm %s12971_s11, 16384 }
  0xbc   :  { %p11579_p4 = scmp.ne.s32.totalorder %s12971_s11, %s11578_s16  ;;  %p11582_p5 = scmp.lt.u32.totalorder %s11578_s16, %s12971_s11 }
  0xbe   :  { %p11584_p6 = pnand %p11582_p5, %p11579_p4 }
  0xc0   :  { %11587 = shalt.err (!%p11584_p6)
}
  0xc1   :  { %s11588_s9 = scalar_lea.vmem %s148_s30, 16384  ;;  %p11593_p8 = scmp.lt.s32.totalorder %s148_s30, %s148_s30 }
  0xc2   :  { %p11589_p7 = scmp.ne.s32.totalorder %s148_s30, %s11588_s9  ;;  %p11594_p9 = scmp.lt.s32.totalorder %s11588_s9, %s11588_s9 }
  0xc4   :  { %p11595_p10 = por %p11594_p9, %p11593_p8 }
  0xc6   :  { %p11596_p11 = pnand %p11595_p10, %p11589_p7 }
  0xc8   :  { %11599 = shalt.err (!%p11596_p11)
}
  0xc9   :  { %153 = dma.hbm_to_vmem [thread:$0]  %s12971_s11, 16384, %s148_s30, [#allocation17], %s11673_s7, %s11673_s7, %s11674_s19  }
  0xca   :  { %s11600_s4 = scalar_lea.hbm %s12973_s13, 8192 }
  0xcb   :  { %p11601_p12 = scmp.ne.s32.totalorder %s12973_s13, %s11600_s4  ;;  %p11604_p13 = scmp.lt.u32.totalorder %s11600_s4, %s12973_s13 }
  0xcd   :  { %p11606_p0 = pnand %p11604_p13, %p11601_p12 }
  0xcf   :  { %11609 = shalt.err (!%p11606_p0)
}
  0xd0   :  { %s11610_s2 = scalar_lea.vmem %s170_s1, 8192  ;;  %p11615_p2 = scmp.lt.s32.totalorder %s170_s1, %s170_s1 }
  0xd1   :  { %p11611_p1 = scmp.ne.s32.totalorder %s170_s1, %s11610_s2  ;;  %p11616_p3 = scmp.lt.s32.totalorder %s11610_s2, %s11610_s2 }
  0xd3   :  { %p11617_p4 = por %p11616_p3, %p11615_p2 }
  0xd5   :  { %p11618_p5 = pnand %p11617_p4, %p11611_p1 }
  0xd7   :  { %11621 = shalt.err (!%p11618_p5)
}
  0xd8   :  { %175 = dma.hbm_to_vmem [thread:$0]  %s12973_s13, 8192, %s170_s1, [#allocation20], %s11665_s28, %s11665_s28, %s11666_s20  }
  0xd9   :  { %s11677_s19 = smov [#allocation22]   ;;  %s11622_s6 = scalar_lea.hbm %s12974_s14, 16 }
  0xda   :  { %s182_s29 = sshll.u32 %s11677_s19, 4  ;;  %p11623_p6 = scmp.ne.s32.totalorder %s12974_s14, %s11622_s6  ;;  %s183_s29 = int_to_ptr.vmem [resolvable:$true] %s182_s29 }
  0xdb   :  { %p11626_p7 = scmp.lt.u32.totalorder %s11622_s6, %s12974_s14 }
  0xdd   :  { %p11628_p8 = pnand %p11626_p7, %p11623_p6 }
  0xdf   :  { %11631 = shalt.err (!%p11628_p8)
}
  0xe0   :  { %s11632_s18 = scalar_lea.vmem %s183_s29, 16  ;;  %s11636_s13 = scalar_lea.vmem %s183_s29, 32 }
  0xe1   :  { %p11633_p9 = scmp.ne.s32.totalorder %s183_s29, %s11632_s18  ;;  %p11637_p10 = scmp.lt.s32.totalorder %s183_s29, %s183_s29 }
  0xe2   :  { %p11638_p11 = scmp.lt.s32.totalorder %s11636_s13, %s11632_s18 }
  0xe4   :  { %p11639_p12 = por %p11638_p11, %p11637_p10 }
  0xe6   :  { %p11640_p13 = pnand %p11639_p12, %p11633_p9 }
  0xe8   :  { %11643 = shalt.err (!%p11640_p13)
}
  0xe9   :  { %185 = dma.hbm_to_vmem [thread:$0]  %s12974_s14, 16, %s183_s29, [#allocation23]  }
  0xea   :  { %11644 = dma.done.wait [#allocation3], 768  }
  0xeb   :  { %11645 = vsyncadd [#allocation3], 4294966528 }
  0xec   :  { %11646 = dma.done.wait [#allocation5], 3136  }
  0xed   :  { %11647 = vsyncadd [#allocation5], 4294964160 }
  0xee   :  { %11648 = dma.done.wait [#allocation8], 6208  }
  0xef   :  { %11649 = vsyncadd [#allocation8], 4294961088 }
  0xf0   :  { %11650 = dma.done.wait [#allocation11], 1088  }
  0xf1   :  { %11651 = vsyncadd [#allocation11], 4294966208 }
  0xf2   :  { %11652 = dma.done.wait [#allocation14], 67584  }
  0xf3   :  { %11653 = vsyncadd [#allocation14], 4294899712 }
  0xf4   :  { %11654 = dma.done.wait [#allocation17], 16448  }
  0xf5   :  { %11655 = vsyncadd [#allocation17], 4294950848 }
  0xf6   :  { %11656 = dma.done.wait [#allocation20], 8256  }
  0xf7   :  { %11657 = vsyncadd [#allocation20], 4294959040 }
  0xf8   :  { %11658 = dma.done.wait [#allocation23], 16  }
  0xf9   :  { %11659 = vsyncadd [#allocation23], 4294967280  ;;  %v262_v0 = vld [vmem:[#allocation2 + $0x10] sm:$0xff]  ;;  %v263_v1 = vld [vmem:[#allocation2 + $0x18] sm:$0xff]  ;;  %vm283_vm0 = vcmask 1040384   ;;  %vm328_vm1 = vcmask 1046528  }
  0xfa   :  { %v252_v2 = vld [vmem:[%s12960_s0] sm:$0xff]  ;;  %v9763_v3 = vpack.c.bf16 %v263_v1, %v262_v0  ;;  %v253_v4 = vld [vmem:[%s12960_s0 + $0x8] sm:$0xff]  ;;  %v254_v12 = vld [vmem:[%s12960_s0 + $0x10] sm:$0xff]  ;;  %vm349_vm2 = vcmask 130048   ;;  %vm592_vm3 = vcmask 1045504   ;;  %vm11679_vm4 = vmmov 0  }
  0xfb   :  { %v271_v5 = vrot.slane %v252_v2, 1  ;;  %v284_v6 = vrot.slane %v252_v2, 7  ;;  %v260_v7 = vld [vmem:[#allocation2] sm:$0xff]  ;;  %v261_v8 = vld [vmem:[#allocation2 + $0x8] sm:$0xff]  ;;  %v285_v9 = vrot.slane %v253_v4, 7  ;;  %v304_v11 = vrot.slane %v253_v4, 5 }
  0xfc   :  { %v9767_v10 = vpack.c.bf16 %v261_v8, %v260_v7  ;;  %v255_v13 = vld [vmem:[%s12960_s0 + $0x18] sm:$0xff]  ;;  %9764 = vmatprep.subr.bf16.mxu0 %v9763_v3  ;;  %v272_v15 = vrot.slane %v254_v12, 1  ;;  %v287_v16 = vrot.slane %v254_v12, 7  ;;  %v256_v18 = vld [vmem:[%s12960_s0 + $0x20] sm:$0xff]  ;;  %v257_v23 = vld [vmem:[%s12960_s0 + $0x28] sm:$0xff]  ;;  %vm762_vm5 = vcmask 523264  }
  0xfd   :  { %v11960_v14 = vsel %vm283_vm0, %v271_v5, %v284_v6  ;;  %v288_v17 = vrot.slane %v255_v13, 7  ;;  %9766 = vmatpush3.bf16.msra.mxu0 %v9763_v3  ;;  %v11966_v19 = vsel %vm283_vm0, %v284_v6, %v285_v9  ;;  %v11970_v21 = vsel %vm283_vm0, %v285_v9, %v304_v11  ;;  %v258_v24 = vld [vmem:[%s12960_s0 + $0x30] sm:$0xff]  ;;  %v259_v25 = vld [vmem:[%s12960_s0 + $0x38] sm:$0xff]  ;;  %v264_v37 = vld [vmem:[#allocation2 + $0x20] sm:$0xff] }
  0xfe   :  { %v329_v20 = vrot.slane %v11960_v14, 1  ;;  %v305_v22 = vrot.slane %v255_v13, 5  ;;  %v330_v26 = vrot.slane %v11966_v19, 1  ;;  %9768 = vmatprep.subr.bf16.mxu0 %v9767_v10  ;;  %v332_v27 = vrot.slane %v11970_v21, 1  ;;  %v265_v38 = vld [vmem:[#allocation2 + $0x28] sm:$0xff] }
  0xff   :  { %v11984_v28 = vsel %vm283_vm0, %v287_v16, %v288_v17  ;;  %v11987_v29 = vsel %vm283_vm0, %v272_v15, %v287_v16  ;;  %v273_v32 = vrot.slane %v256_v18, 1  ;;  %v290_v39 = vrot.slane %v256_v18, 7 }
 0x100   :  { %v335_v30 = vrot.slane %v11984_v28, 1  ;;  %v11991_v31 = vsel %vm283_vm0, %v288_v17, %v305_v22  ;;  %v331_v33 = vsel %vm328_vm1, %v329_v20, %v330_v26  ;;  %v333_v34 = vsel %vm328_vm1, %v330_v26, %v332_v27  ;;  %v229_v22 = vld [vmem:[#allocation12 + $0x8] sm:$0xff]  ;;  %v231_v26 = vld [vmem:[#allocation12 + $0x18] sm:$0xff] }
 0x101   :  { %v334_v35 = vrot.slane %v11987_v29, 1  ;;  %v337_v36 = vrot.slane %v11991_v31, 1  ;;  %9147 = vmatprep.mubr.msk.f32.mxu0 %vm349_vm2, %v331_v33  ;;  %v291_v40 = vrot.slane %v257_v23, 7  ;;  %v306_v41 = vrot.slane %v257_v23, 5 }
 0x102   :  { %v274_v42 = vrot.slane %v258_v24, 1  ;;  %9148 = vmatmul.mubr.msk.f32.vlgmr.msra.gmra.mrb[0].mxu0 %vm349_vm2, %v333_v34  ;;  %v293_v45 = vrot.slane %v258_v24, 7  ;;  %v294_v46 = vrot.slane %v259_v25, 7  ;;  %v314_v48 = vsel %vm283_vm0, %v273_v32, %v290_v39  ;;  %v235_v32 = vld [vmem:[#allocation12 + $0x38] sm:$0xff] }
 0x103   :  { %v336_v43 = vsel %vm328_vm1, %v334_v35, %v335_v30  ;;  %v338_v44 = vsel %vm328_vm1, %v335_v30, %v337_v36  ;;  %9770 = vmatpush3.bf16.msra.mxu0 %v9767_v10  ;;  %v292_v47 = vsel %vm283_vm0, %v290_v39, %v291_v40  ;;  %v318_v49 = vsel %vm283_vm0, %v291_v40, %v306_v41 }
 0x104   :  { %9150 = vmatprep.mubr.msk.f32.mxu0 %vm349_vm2, %v336_v43  ;;  %v307_v50 = vrot.slane %v259_v25, 5  ;;  %v339_v51 = vrot.slane %v314_v48, 1  ;;  %v340_v52 = vrot.slane %v292_v47, 1  ;;  %v342_v53 = vrot.slane %v318_v49, 1  ;;  %v230_v25 = vld [vmem:[#allocation12 + $0x10] sm:$0xff] }
 0x105   :  { %v295_v54 = vsel %vm283_vm0, %v293_v45, %v294_v46  ;;  %v315_v55 = vsel %vm283_vm0, %v274_v42, %v293_v45  ;;  %v9771_v58 = vpack.c.bf16 %v265_v38, %v264_v37  ;;  %v593_v1 = vrot.slane %v11960_v14, 2  ;;  %v12086_v38 = vld [vmem:[#allocation4] sm:$0x7] }
 0x106   :  { %v345_v56 = vrot.slane %v295_v54, 1  ;;  %v319_v57 = vsel %vm283_vm0, %v294_v46, %v307_v50  ;;  %9151 = vmatmul.mubr.msk.f32.gmra.mrb[2].mxu0 %vm349_vm2, %v338_v44  ;;  %v341_v59 = vsel %vm328_vm1, %v339_v51, %v340_v52  ;;  %v344_v60 = vrot.slane %v315_v55, 1 }
 0x107   :  { %9153 = vmatprep.mubr.msk.f32.mxu0 %vm349_vm2, %v341_v59  ;;  %v343_v61 = vsel %vm328_vm1, %v340_v52, %v342_v53  ;;  %v347_v62 = vrot.slane %v319_v57, 1  ;;  %9772 = vmatprep.subr.bf16.mxu0 %v9771_v58  ;;  %v594_v2 = vrot.slane %v11966_v19, 2  ;;  %v596_v3 = vrot.slane %v11970_v21, 2  ;;  %v228_v21 = vld [vmem:[#allocation12] sm:$0xff] }
 0x108   :  { %v346_v63 = vsel %vm328_vm1, %v344_v60, %v345_v56  ;;  %v598_v5 = vrot.slane %v11987_v29, 2  ;;  %v599_v6 = vrot.slane %v11984_v28, 2  ;;  %v601_v8 = vrot.slane %v11991_v31, 2  ;;  %v234_v31 = vld [vmem:[#allocation12 + $0x30] sm:$0xff] }
 0x109   :  { %v348_v0 = vsel %vm328_vm1, %v345_v56, %v347_v62  ;;  %v595_v4 = vsel %vm592_vm3, %v593_v1, %v594_v2  ;;  %v597_v7 = vsel %vm592_vm3, %v594_v2, %v596_v3  ;;  %v603_v10 = vrot.slane %v314_v48, 2 }
 0x10a   :  { %9154 = vmatmul.mubr.msk.f32.gmra.mrb[4].mxu0 %vm349_vm2, %v343_v61  ;;  %v600_v9 = vsel %vm592_vm3, %v598_v5, %v599_v6  ;;  %v604_v11 = vrot.slane %v292_v47, 2  ;;  %v602_v12 = vsel %vm592_vm3, %v599_v6, %v601_v8  ;;  %v606_v13 = vrot.slane %v318_v49, 2 }
 0x10b   :  { %9156 = vmatprep.mubr.msk.f32.mxu0 %vm349_vm2, %v346_v63  ;;  %v608_v15 = vrot.slane %v315_v55, 2  ;;  %v609_v16 = vrot.slane %v295_v54, 2  ;;  %v611_v18 = vrot.slane %v319_v57, 2  ;;  %v12051_v23 = vpack.c.bf16 %v229_v22, %v228_v21 }
 0x10c   :  { %v607_v17 = vsel %vm592_vm3, %v604_v11, %v606_v13  ;;  %v11678_v24 = vmov 0.0|0.0   ;;  %v12059_v27 = vpack.c.bf16 %v231_v26, %v230_v25  ;;  %v12071_v33 = vpack.c.bf16 %v235_v32, %v234_v31 }
 0x10d   :  { %v612_v20 = vsel %vm592_vm3, %v609_v16, %v611_v18  ;;  %9775 = vmatprep.subr.bf16.mxu1 %v11678_v24  ;;  %v11680_v34 = vmov 0.0   ;;  %v742_v35 = vlaneseq  ;;  %vm2976_vm6 = vcmask 1041409  }
 0x10e   :  { %9157 = vmatmul.mubr.msk.f32.gmra.mrb[6].mxu0 %vm349_vm2, %v348_v0  ;;  %9777 = vmatpush3.bf16.msra.mxu1 %v12051_v23  ;;  %vm2979_vm7 = vcmask 1042434   ;;  %vm2982_vm8 = vcmask 1043459  }
 0x10f   :  { %9163 = vmatprep.mubr.msk.f32.mxu0 %vm349_vm2, %v11960_v14  ;;  %v605_v14 = vsel %vm592_vm3, %v603_v10, %v604_v11  ;;  %9778 = vmatprep.subr.bf16.mxu1 %v11678_v24  ;;  %v12081_v36 = vshrl.u32 %v742_v35, 7 }
 0x110   :  { %9207 = vmatprep.mubr.msk.f32.mxu1 %vm11679_vm4, %v11680_v34 }
 0x111   :  { %v12084_v37 = vsub.s32 0, %v12081_v36 }
 0x112   :  { %9164 = vmatmul.mubr.msk.f32.vlgmr.msra.gmra.mrb[0].mxu0 %vm349_vm2, %v11966_v19  ;;  %v610_v19 = vsel %vm592_vm3, %v608_v15, %v609_v16  ;;  %9780 = vmatpush3.bf16.msra.mxu1 %v12059_v27 }
 0x113   :  { %9774 = vmatpush3.bf16.msra.mxu0 %v9771_v58  ;;  %9166 = vmatprep.mubr.msk.f32.mxu0 %vm349_vm2, %v11987_v29  ;;  %v233_v29 = vld [vmem:[#allocation12 + $0x28] sm:$0xff]  ;;  %v745_v39 = vrot.slane %v12086_v38, %v12084_v37 }
 0x114   :  { %9811 = vmatprep.subr.bf16.mxu0 %v11678_v24  ;;  %9781 = vmatprep.subr.bf16.mxu1 %v11678_v24 }
 0x116   :  { %9167 = vmatmul.mubr.msk.f32.gmra.mrb[2].mxu0 %vm349_vm2, %v11984_v28  ;;  %v232_v28 = vld [vmem:[#allocation12 + $0x20] sm:$0xff] }
 0x117   :  { %9169 = vmatprep.mubr.msk.f32.mxu0 %vm349_vm2, %v314_v48  ;;  %v12065_v30 = vpack.c.bf16 %v233_v29, %v232_v28 }
 0x119   :  { %9783 = vmatpush3.bf16.msra.mxu1 %v12065_v30 }
 0x11a   :  { %9170 = vmatmul.mubr.msk.f32.gmra.mrb[4].mxu0 %vm349_vm2, %v292_v47  ;;  %9784 = vmatprep.subr.bf16.mxu1 %v11678_v24 }
 0x11b   :  { %9172 = vmatprep.mubr.msk.f32.mxu0 %vm349_vm2, %v315_v55 }
 0x11d   :  { %9786 = vmatpush3.bf16.msra.mxu1 %v12071_v33 }
 0x11e   :  { %9173 = vmatmul.mubr.msk.f32.gmra.mrb[6].mxu0 %vm349_vm2, %v295_v54  ;;  %9787 = vmatprep.subr.bf16.mxu1 %v11678_v24 }
 0x11f   :  { %9179 = vmatprep.mubr.msk.f32.mxu0 %vm349_vm2, %v595_v4 }
 0x122   :  { %9180 = vmatmul.mubr.msk.f32.vlgmr.msra.gmra.mrb[0].mxu0 %vm349_vm2, %v597_v7 }
 0x123   :  { %9182 = vmatprep.mubr.msk.f32.mxu0 %vm349_vm2, %v600_v9  ;;  %9813 = vmatpush3.bf16.msra.mxu0 %v12051_v23 }
 0x124   :  { %9814 = vmatprep.subr.bf16.mxu0 %v11678_v24 }
 0x126   :  { %9183 = vmatmul.mubr.msk.f32.gmra.mrb[2].mxu0 %vm349_vm2, %v602_v12 }
 0x127   :  { %9185 = vmatprep.mubr.msk.f32.mxu0 %vm349_vm2, %v605_v14  ;;  %9816 = vmatpush3.bf16.msra.mxu0 %v12059_v27 }
 0x128   :  { %9817 = vmatprep.subr.bf16.mxu0 %v11678_v24 }
 0x12a   :  { %9186 = vmatmul.mubr.msk.f32.gmra.mrb[4].mxu0 %vm349_vm2, %v607_v17 }
 0x12b   :  { %9188 = vmatprep.mubr.msk.f32.mxu0 %vm349_vm2, %v610_v19  ;;  %9819 = vmatpush3.bf16.msra.mxu0 %v12065_v30 }
 0x12c   :  { %9820 = vmatprep.subr.bf16.mxu0 %v11678_v24 }
 0x12e   :  { %9189 = vmatmul.mubr.msk.f32.gmra.mrb[6].mxu0 %vm349_vm2, %v612_v20 }
 0x12f   :  { %9822 = vmatpush3.bf16.msra.mxu0 %v12071_v33  ;;  %9264 = vmatprep.mubr.msk.f32.mxu0 %vm11679_vm4, %v11680_v34 }
 0x130   :  { %9871 = vmatprep.subr.bf16.mxu0 %v11678_v24 }
 0x1f5   :  { %v9181_v40 = vpop.f32.mrb[0].mxu0 }
 0x1f6   :  { %v747_v41 = vadd.f32 %v9181_v40, %v745_v39  ;;  %v695_v42 = vpop.f32.mrb[1].mxu0 }
 0x1f7   :  { %v746_v43 = vadd.f32 %v745_v39, %v695_v42 }
 0x1f8   :  { %v755_v44 = vmax.f32 %v747_v41, 0.0 }
 0x1f9   :  { %v754_v45 = vmax.f32 %v746_v43, 0.0  ;;  %v9184_v46 = vpop.f32.mrb[2].mxu0 }
 0x1fa   :  { %v749_v47 = vadd.f32 %v9184_v46, %v745_v39  ;;  %v705_v48 = vpop.f32.mrb[3].mxu0  ;;  %v764_v49 = vsel %vm762_vm5, %v755_v44, 0.0 }
 0x1fb   :  { %v763_v50 = vsel %vm762_vm5, %v754_v45, 0.0  ;;  %v748_v51 = vadd.f32 %v745_v39, %v705_v48 }
 0x1fc   :  { %v757_v52 = vmax.f32 %v749_v47, 0.0  ;;  %v765_v55 = vadd.f32 %v764_v49, %v763_v50 }
 0x1fd   :  { %v756_v53 = vmax.f32 %v748_v51, 0.0  ;;  %v9187_v54 = vpop.f32.mrb[4].mxu0 }
 0x1fe   :  { %v12092_v56 = vadd.f32 %v9187_v54, %v745_v39  ;;  %v715_v57 = vpop.f32.mrb[5].mxu0  ;;  %v768_v61 = vsel %vm762_vm5, %v757_v52, 0.0 }
 0x1ff   :  { %v766_v58 = vsel %vm762_vm5, %v756_v53, 0.0  ;;  %v12095_v59 = vadd.f32 %v745_v39, %v715_v57 }
 0x200   :  { %v767_v60 = vadd.f32 %v766_v58, %v765_v55  ;;  %v759_v13 = vmax.f32 %v12092_v56, 0.0 }
 0x201   :  { %v9190_v62 = vpop.f32.mrb[6].mxu0  ;;  %v758_v14 = vmax.f32 %v12095_v59, 0.0 }
 0x202   :  { %v769_v63 = vadd.f32 %v768_v61, %v767_v60  ;;  %v12098_v0 = vadd.f32 %v9190_v62, %v745_v39  ;;  %v725_v1 = vpop.f32.mrb[7].mxu0  ;;  %v972_v25 = vsel %vm762_vm5, %v759_v13, 0.0  ;;  %v1184_v62 = vld [vmem:[#allocation6 + $0x48] sm:$0xff] }
 0x203   :  { %v12100_v2 = vadd.f32 %v745_v39, %v725_v1  ;;  %v971_v26 = vsel %vm762_vm5, %v758_v14, 0.0  ;;  %v1185_v1 = vld [vmem:[#allocation6 + $0x50] sm:$0xff] }
 0x204   :  { %v770_v3 = vrot.slane %v769_v63, 4  ;;  %v973_v40 = vadd.f32 %v972_v25, %v971_v26  ;;  %v761_v42 = vmax.f32 %v12098_v0, 0.0 }
 0x205   :  { %v760_v19 = vmax.f32 %v12100_v2, 0.0 }
 0x206   :  { %v771_v4 = vadd.f32 %v770_v3, %v769_v63  ;;  %v976_v47 = vsel %vm762_vm5, %v761_v42, 0.0 }
 0x207   :  { %v974_v35 = vsel %vm762_vm5, %v760_v19, 0.0 }
 0x208   :  { %v772_v5 = vrot.slane %v771_v4, 2 }
 0x20a   :  { %v773_v6 = vadd.f32 %v772_v5, %v771_v4  ;;  %v1187_v4 = vld [vmem:[#allocation6 + $0x60] sm:$0xff] }
 0x20c   :  { %v774_v7 = vrot.slane %v773_v6, 1 }
 0x20e   :  { %v775_v8 = vadd.f32 %v774_v7, %v773_v6  ;;  %v1189_v6 = vld [vmem:[#allocation6 + $0x70] sm:$0xff] }
 0x210   :  { %9208 = vmatmul.mubr.msk.f32.vlgmr.msra.gmra.mrb[0].mxu1 %vm762_vm5, %v775_v8 }
 0x211   :  { %9789 = vmatpush3.bf16.msra.mxu1 %v12051_v23  ;;  %9226 = vmatprep.mubr.msk.f32.mxu1 %vm11679_vm4, %v11680_v34 }
 0x212   :  { %9790 = vmatprep.subr.bf16.mxu1 %v11678_v24 }
 0x215   :  { %9792 = vmatpush3.bf16.msra.mxu1 %v12059_v27 }
 0x216   :  { %9793 = vmatprep.subr.bf16.mxu1 %v11678_v24 }
 0x219   :  { %9795 = vmatpush3.bf16.msra.mxu1 %v12065_v30 }
 0x21a   :  { %9796 = vmatprep.subr.bf16.mxu1 %v11678_v24 }
 0x21d   :  { %9798 = vmatpush3.bf16.msra.mxu1 %v12071_v33 }
 0x21e   :  { %9799 = vmatprep.subr.bf16.mxu1 %v11678_v24 }
 0x2e3   :  { %v845_v9 = vpop.f32.mrb[0].mxu1 }
 0x2e4   :  { %v849_v10 = vmul.f32 0.001953125, %v845_v9  ;;  %v9209_v11 = vpop.f32.mrb[1].mxu1 }
 0x2e6   :  { %v853_v12 = vrot.slane %v849_v10, %v12084_v37 }
 0x2e8   :  { %v12116_v15 = vsub.f32 %v754_v45, %v853_v12  ;;  %v12118_v16 = vsub.f32 %v755_v44, %v853_v12  ;;  %v12120_v17 = vsub.f32 %v756_v53, %v853_v12  ;;  %v12122_v18 = vsub.f32 %v757_v52, %v853_v12 }
 0x2e9   :  { %v975_v44 = vadd.f32 %v974_v35, %v973_v40 }
 0x2ea   :  { %v858_v20 = vmul.f32 %v12116_v15, %v12116_v15  ;;  %v859_v21 = vmul.f32 %v12118_v16, %v12118_v16  ;;  %v860_v22 = vmul.f32 %v12120_v17, %v12120_v17  ;;  %v861_v28 = vmul.f32 %v12122_v18, %v12122_v18 }
 0x2eb   :  { %v977_v48 = vadd.f32 %v976_v47, %v975_v44 }
 0x2ec   :  { %v862_v29 = vsel %vm762_vm5, %v858_v20, 0.0  ;;  %v863_v31 = vsel %vm762_vm5, %v859_v21, 0.0  ;;  %v865_v39 = vsel %vm762_vm5, %v860_v22, 0.0  ;;  %v867_v43 = vsel %vm762_vm5, %v861_v28, 0.0 }
 0x2ed   :  { %v864_v32 = vadd.f32 %v863_v31, %v862_v29  ;;  %v978_v51 = vrot.slane %v977_v48, 4  ;;  %v12162_v20 = vsub.s32 2, %v12081_v36  ;;  %v12165_v22 = vsub.s32 1, %v12081_v36 }
 0x2ef   :  { %v866_v41 = vadd.f32 %v865_v39, %v864_v32  ;;  %v979_v54 = vadd.f32 %v978_v51, %v977_v48  ;;  %v12171_v32 = vrot.slane %v12086_v38, %v12162_v20 }
 0x2f1   :  { %v868_v45 = vadd.f32 %v867_v43, %v866_v41  ;;  %v980_v57 = vrot.slane %v979_v54, 2 }
 0x2f3   :  { %v869_v46 = vrot.slane %v868_v45, 4  ;;  %v981_v58 = vadd.f32 %v980_v57, %v979_v54 }
 0x2f5   :  { %v870_v49 = vadd.f32 %v869_v46, %v868_v45  ;;  %v982_v60 = vrot.slane %v981_v58, 1 }
 0x2f7   :  { %v871_v50 = vrot.slane %v870_v49, 2  ;;  %v983_v61 = vadd.f32 %v982_v60, %v981_v58 }
 0x2f9   :  { %v872_v52 = vadd.f32 %v871_v50, %v870_v49 }
 0x2fb   :  { %v873_v53 = vrot.slane %v872_v52, 1 }
 0x2fd   :  { %v874_v55 = vadd.f32 %v873_v53, %v872_v52 }
 0x2ff   :  { %9227 = vmatmul.mubr.msk.f32.vlgmr.msra.gmra.mrb[2].mxu1 %vm762_vm5, %v874_v55 }
 0x300   :  { %9801 = vmatpush3.bf16.msra.mxu1 %v12051_v23  ;;  %9245 = vmatprep.mubr.msk.f32.mxu1 %vm11679_vm4, %v11680_v34  ;;  %v1183_v23 = vld [vmem:[#allocation6 + $0x40] sm:$0xff] }
 0x301   :  { %9802 = vmatprep.subr.bf16.mxu1 %v11678_v24  ;;  %v9823_v63 = vpack.c.bf16 %v1184_v62, %v1183_v23 }
 0x304   :  { %9804 = vmatpush3.bf16.msra.mxu1 %v12059_v27  ;;  %v1186_v27 = vld [vmem:[#allocation6 + $0x58] sm:$0xff] }
 0x305   :  { %9805 = vmatprep.subr.bf16.mxu1 %v11678_v24  ;;  %v9827_v3 = vpack.c.bf16 %v1186_v27, %v1185_v1 }
 0x308   :  { %9807 = vmatpush3.bf16.msra.mxu1 %v12065_v30  ;;  %v1188_v30 = vld [vmem:[#allocation6 + $0x68] sm:$0xff] }
 0x309   :  { %9808 = vmatprep.subr.bf16.mxu1 %v11678_v24  ;;  %v9831_v5 = vpack.c.bf16 %v1188_v30, %v1187_v4 }
 0x30c   :  { %9810 = vmatpush3.bf16.msra.mxu1 %v12071_v33  ;;  %v1190_v33 = vld [vmem:[#allocation6 + $0x78] sm:$0xff] }
 0x30d   :  { %9824 = vmatprep.subr.bf16.mxu1 %v9823_v63  ;;  %v9835_v7 = vpack.c.bf16 %v1190_v33, %v1189_v6 }
 0x30f   :  { %9246 = vmatmul.mubr.msk.f32.vlgmr.msra.gmra.mrb[4].mxu1 %vm762_vm5, %v983_v61 }
 0x310   :  { %9826 = vmatpush3.bf16.msra.mxu1 %v9823_v63 }
 0x311   :  { %9828 = vmatprep.subr.bf16.mxu1 %v9827_v3 }
 0x314   :  { %9830 = vmatpush3.bf16.msra.mxu1 %v9827_v3 }
 0x315   :  { %9832 = vmatprep.subr.bf16.mxu1 %v9831_v5 }
 0x318   :  { %9834 = vmatpush3.bf16.msra.mxu1 %v9831_v5 }
 0x319   :  { %9836 = vmatprep.subr.bf16.mxu1 %v9835_v7 }
 0x31c   :  { %9838 = vmatpush3.bf16.msra.mxu1 %v9835_v7 }
 0x3d2   :  { %v944_v8 = vpop.f32.mrb[2].mxu1 }
 0x3d3   :  { %v948_v9 = vmul.f32 0.001953125, %v944_v8  ;;  %v9228_v10 = vpop.f32.mrb[3].mxu1 }
 0x3d5   :  { %v949_v11 = vadd.f32 1e-05, %v948_v9 }
 0x3d7   :  { %11324 = vrsqrt.f32 %v949_v11 }
 0x3e1   :  { %v11325_v12 = vpop.eup %11324 }
 0x3e2   :  { %v952_v21 = vrot.slane %v11325_v12, 7  ;;  %v1053_v25 = vpop.f32.mrb[4].mxu1 }
 0x3e3   :  { %v1057_v26 = vmul.f32 0.001953125, %v1053_v25  ;;  %v9247_v28 = vpop.f32.mrb[5].mxu1 }
 0x3e4   :  { %v954_v29 = vmul.f32 %v952_v21, %v12086_v38 }
 0x3e5   :  { %v1061_v31 = vrot.slane %v1057_v26, %v12084_v37 }
 0x3e6   :  { %v958_v35 = vrot.slane %v954_v29, %v12165_v22  ;;  %v1175_v29 = vld [vmem:[#allocation6] sm:$0xff] }
 0x3e7   :  { %v12176_v39 = vsub.f32 %v758_v14, %v1061_v31  ;;  %v12180_v40 = vsub.f32 %v759_v13, %v1061_v31  ;;  %v12184_v41 = vsub.f32 %v760_v19, %v1061_v31  ;;  %v12188_v43 = vsub.f32 %v761_v42, %v1061_v31  ;;  %v1176_v31 = vld [vmem:[#allocation6 + $0x8] sm:$0xff] }
 0x3e8   :  { %v959_v44 = vmul.f32 %v958_v35, %v12116_v15  ;;  %v960_v45 = vmul.f32 %v958_v35, %v12118_v16  ;;  %v961_v59 = vmul.f32 %v958_v35, %v12120_v17  ;;  %v962_v14 = vmul.f32 %v958_v35, %v12122_v18  ;;  %v1177_v35 = vld [vmem:[#allocation6 + $0x10] sm:$0xff] }
 0x3e9   :  { %v1066_v56 = vmul.f32 %v12176_v39, %v12176_v39  ;;  %v1067_v2 = vmul.f32 %v12180_v40, %v12180_v40  ;;  %v1068_v13 = vmul.f32 %v12184_v41, %v12184_v41  ;;  %v1069_v0 = vmul.f32 %v12188_v43, %v12188_v43 }
 0x3ea   :  { %v967_v15 = vadd.f32 %v12171_v32, %v959_v44  ;;  %v968_v16 = vadd.f32 %v12171_v32, %v960_v45  ;;  %v969_v17 = vadd.f32 %v12171_v32, %v961_v59  ;;  %v970_v18 = vadd.f32 %v12171_v32, %v962_v14  ;;  %v1178_v45 = vld [vmem:[#allocation6 + $0x18] sm:$0xff]  ;;  %v1179_v14 = vld [vmem:[#allocation6 + $0x20] sm:$0xff] }
 0x3eb   :  { %v1070_v19 = vsel %vm762_vm5, %v1066_v56, 0.0  ;;  %v1071_v42 = vsel %vm762_vm5, %v1067_v2, 0.0  ;;  %v1073_v46 = vsel %vm762_vm5, %v1068_v13, 0.0  ;;  %v1075_v47 = vsel %vm762_vm5, %v1069_v0, 0.0  ;;  %v1180_v56 = vld [vmem:[#allocation6 + $0x28] sm:$0xff]  ;;  %v1181_v13 = vld [vmem:[#allocation6 + $0x30] sm:$0xff] }
 0x3ec   :  { %v1072_v48 = vadd.f32 %v1071_v42, %v1070_v19  ;;  %v1204_v49 = vrot.slane %v967_v15, 1  ;;  %v1216_v50 = vrot.slane %v967_v15, 7  ;;  %v1217_v51 = vrot.slane %v968_v16, 7  ;;  %v1182_v0 = vld [vmem:[#allocation6 + $0x38] sm:$0xff]  ;;  %v236_v19 = vld [vmem:[#allocation13] sm:$0xff]  ;;  %v237_v42 = vld [vmem:[#allocation13 + $0x8] sm:$0xff] }
 0x3ed   :  { %v1236_v52 = vrot.slane %v968_v16, 5  ;;  %v1205_v53 = vrot.slane %v969_v17, 1  ;;  %v1219_v54 = vrot.slane %v969_v17, 7  ;;  %v1220_v55 = vrot.slane %v970_v18, 7  ;;  %v1191_v16 = vld [vmem:[#allocation6 + $0x80] sm:$0xff]  ;;  %v1192_v17 = vld [vmem:[#allocation6 + $0x88] sm:$0xff] }
 0x3ee   :  { %v1074_v57 = vadd.f32 %v1073_v46, %v1072_v48  ;;  %v12211_v58 = vsel %vm283_vm0, %v1216_v50, %v1217_v51  ;;  %v12214_v60 = vsel %vm283_vm0, %v1204_v49, %v1216_v50  ;;  %v1237_v61 = vrot.slane %v970_v18, 5  ;;  %v238_v46 = vld [vmem:[#allocation13 + $0x10] sm:$0xff]  ;;  %v239_v48 = vld [vmem:[#allocation13 + $0x18] sm:$0xff] }
 0x3ef   :  { %v1260_v23 = vrot.slane %v12214_v60, 1  ;;  %v1261_v62 = vrot.slane %v12211_v58, 1  ;;  %v12219_v63 = vsel %vm283_vm0, %v1217_v51, %v1236_v52  ;;  %v12222_v1 = vsel %vm283_vm0, %v1219_v54, %v1220_v55 }
 0x3f0   :  { %v1076_v27 = vadd.f32 %v1075_v47, %v1074_v57  ;;  %v1263_v3 = vrot.slane %v12219_v63, 1  ;;  %v12226_v4 = vsel %vm283_vm0, %v1205_v53, %v1219_v54  ;;  %v1266_v6 = vrot.slane %v12222_v1, 1 }
 0x3f1   :  { %v1262_v30 = vsel %vm328_vm1, %v1260_v23, %v1261_v62  ;;  %v1265_v5 = vrot.slane %v12226_v4, 1  ;;  %v12232_v33 = vsel %vm283_vm0, %v1220_v55, %v1237_v61  ;;  %v9839_v44 = vpack.c.bf16 %v1176_v31, %v1175_v29 }
 0x3f2   :  { %v1077_v7 = vrot.slane %v1076_v27, 4  ;;  %9283 = vmatprep.mubr.msk.f32.mxu1 %vm762_vm5, %v1262_v30  ;;  %v1264_v8 = vsel %vm328_vm1, %v1261_v62, %v1263_v3  ;;  %v1268_v9 = vrot.slane %v12232_v33, 1  ;;  %v9843_v59 = vpack.c.bf16 %v1178_v45, %v1177_v35 }
 0x3f3   :  { %9284 = vmatmul.mubr.msk.f32.vlgmr.msra.gmra.mrb[6].mxu1 %vm762_vm5, %v1264_v8  ;;  %v1267_v10 = vsel %vm328_vm1, %v1265_v5, %v1266_v6  ;;  %9840 = vmatprep.subr.bf16.mxu1 %v9839_v44  ;;  %v9847_v2 = vpack.c.bf16 %v1180_v56, %v1179_v14  ;;  %v9851_v15 = vpack.c.bf16 %v1182_v0, %v1181_v13  ;;  %v1193_v13 = vld [vmem:[#allocation6 + $0x90] sm:$0xff]  ;;  %v1194_v0 = vld [vmem:[#allocation6 + $0x98] sm:$0xff] }
 0x3f4   :  { %v1078_v11 = vadd.f32 %v1077_v7, %v1076_v27  ;;  %9286 = vmatprep.mubr.msk.f32.mxu1 %vm762_vm5, %v1267_v10  ;;  %v1269_v21 = vsel %vm328_vm1, %v1266_v6, %v1268_v9  ;;  %9842 = vmatpush3.bf16.msra.mxu1 %v9839_v44  ;;  %v12245_v18 = vpack.c.bf16 %v1192_v17, %v1191_v16  ;;  %v1195_v16 = vld [vmem:[#allocation6 + $0xa0] sm:$0xff]  ;;  %v1196_v17 = vld [vmem:[#allocation6 + $0xa8] sm:$0xff] }
 0x3f5   :  { %9844 = vmatprep.subr.bf16.mxu1 %v9843_v59  ;;  %v12248_v47 = vpack.c.bf16 %v237_v42, %v236_v19  ;;  %v12251_v49 = vpack.c.bf16 %v239_v48, %v238_v46  ;;  %v9863_v19 = vpack.c.bf16 %v1196_v17, %v1195_v16  ;;  %v1197_v42 = vld [vmem:[#allocation6 + $0xb0] sm:$0xff]  ;;  %v1198_v46 = vld [vmem:[#allocation6 + $0xb8] sm:$0xff] }
 0x3f6   :  { %v1079_v12 = vrot.slane %v1078_v11, 2  ;;  %v9867_v48 = vpack.c.bf16 %v1198_v46, %v1197_v42 }
 0x3f7   :  { %9287 = vmatmul.mubr.msk.f32.gmra.mrb[8].mxu1 %vm762_vm5, %v1269_v21 }
 0x3f8   :  { %v1080_v25 = vadd.f32 %v1079_v12, %v1078_v11  ;;  %9846 = vmatpush3.bf16.msra.mxu1 %v9843_v59 }
 0x3f9   :  { %9848 = vmatprep.subr.bf16.mxu1 %v9847_v2 }
 0x3fa   :  { %v1081_v26 = vrot.slane %v1080_v25, 1 }
 0x3fc   :  { %v1082_v28 = vadd.f32 %v1081_v26, %v1080_v25  ;;  %9850 = vmatpush3.bf16.msra.mxu1 %v9847_v2 }
 0x3fd   :  { %9852 = vmatprep.subr.bf16.mxu1 %v9851_v15 }
 0x3fe   :  { %9265 = vmatmul.mubr.msk.f32.vlgmr.msra.gmra.mrb[8].mxu0 %vm762_vm5, %v1082_v28 }
 0x3ff   :  { %9383 = vmatprep.mubr.msk.f32.mxu0 %vm11679_vm4, %v11680_v34  ;;  %9873 = vmatpush3.bf16.msra.mxu0 %v12248_v47 }
 0x400   :  { %9854 = vmatpush3.bf16.msra.mxu1 %v9851_v15  ;;  %9874 = vmatprep.subr.bf16.mxu0 %v11678_v24  ;;  %v9859_v15 = vpack.c.bf16 %v1194_v0, %v1193_v13 }
 0x401   :  { %9856 = vmatprep.subr.bf16.mxu1 %v12245_v18 }
 0x403   :  { %9876 = vmatpush3.bf16.msra.mxu0 %v12251_v49 }
 0x404   :  { %9877 = vmatprep.subr.bf16.mxu0 %v11678_v24 }
 0x4d1   :  { %v1152_v50 = vpop.f32.mrb[8].mxu0 }
 0x4d2   :  { %v1156_v51 = vmul.f32 0.001953125, %v1152_v50  ;;  %v9266_v52 = vpop.f32.mrb[9].mxu0  ;;  %v1523_v50 = vrot.slane %v12211_v58, 2 }
 0x4d4   :  { %v1157_v53 = vadd.f32 1e-05, %v1156_v51  ;;  %v1525_v51 = vrot.slane %v12219_v63, 2 }
 0x4d6   :  { %11326 = vrsqrt.f32 %v1157_v53  ;;  %v1527_v53 = vrot.slane %v12226_v4, 2 }
 0x4e0   :  { %v11327_v54 = vpop.eup %11326 }
 0x4e1   :  { %v1160_v55 = vrot.slane %v11327_v54, 7  ;;  %v1528_v54 = vrot.slane %v12222_v1, 2 }
 0x4e3   :  { %v1162_v57 = vmul.f32 %v1160_v55, %v12086_v38  ;;  %v1529_v63 = vsel %vm592_vm3, %v1527_v53, %v1528_v54 }
 0x4e5   :  { %v1166_v61 = vrot.slane %v1162_v57, %v12165_v22 }
 0x4e7   :  { %v1167_v23 = vmul.f32 %v1166_v61, %v12176_v39  ;;  %v1168_v62 = vmul.f32 %v1166_v61, %v12180_v40  ;;  %v1169_v27 = vmul.f32 %v1166_v61, %v12184_v41  ;;  %v1170_v3 = vmul.f32 %v1166_v61, %v12188_v43 }
 0x4e9   :  { %v1171_v30 = vadd.f32 %v1167_v23, %v12171_v32  ;;  %v1172_v5 = vadd.f32 %v1168_v62, %v12171_v32  ;;  %v1173_v6 = vadd.f32 %v1169_v27, %v12171_v32  ;;  %v1174_v7 = vadd.f32 %v1170_v3, %v12171_v32 }
 0x4eb   :  { %v1206_v8 = vrot.slane %v1171_v30, 1  ;;  %v1222_v38 = vrot.slane %v1171_v30, 7  ;;  %v1223_v9 = vrot.slane %v1172_v5, 7  ;;  %v1238_v10 = vrot.slane %v1172_v5, 5  ;;  %v240_v5 = vld [vmem:[#allocation13 + $0x20] sm:$0xff] }
 0x4ec   :  { %v1207_v11 = vrot.slane %v1173_v6, 1  ;;  %v1225_v39 = vrot.slane %v1173_v6, 7  ;;  %v1226_v12 = vrot.slane %v1174_v7, 7  ;;  %v1239_v40 = vrot.slane %v1174_v7, 5  ;;  %v241_v6 = vld [vmem:[#allocation13 + $0x28] sm:$0xff] }
 0x4ed   :  { %v12267_v41 = vsel %vm283_vm0, %v1222_v38, %v1223_v9  ;;  %v12270_v43 = vsel %vm283_vm0, %v1206_v8, %v1222_v38  ;;  %v12273_v21 = vsel %vm283_vm0, %v1223_v9, %v1238_v10  ;;  %v12350_v7 = vpack.c.bf16 %v241_v6, %v240_v5  ;;  %v242_v8 = vld [vmem:[#allocation13 + $0x30] sm:$0xff]  ;;  %v243_v38 = vld [vmem:[#allocation13 + $0x38] sm:$0xff]  ;;  %v244_v10 = vld [vmem:[#allocation13 + $0x40] sm:$0xff] }
 0x4ee   :  { %v1270_v25 = vrot.slane %v12270_v43, 1  ;;  %v1271_v32 = vrot.slane %v12267_v41, 1  ;;  %v1273_v26 = vrot.slane %v12273_v21, 1  ;;  %v12279_v28 = vsel %vm283_vm0, %v1225_v39, %v1226_v12 }
 0x4ef   :  { %v12282_v29 = vsel %vm283_vm0, %v1207_v11, %v1225_v39  ;;  %v1276_v31 = vrot.slane %v12279_v28, 1  ;;  %v12286_v35 = vsel %vm283_vm0, %v1226_v12, %v1239_v40  ;;  %v1532_v55 = vrot.slane %v12270_v43, 2  ;;  %9879 = vmatpush3.bf16.msra.mxu0 %v12350_v7  ;;  %v245_v11 = vld [vmem:[#allocation13 + $0x48] sm:$0xff]  ;;  %v246_v12 = vld [vmem:[#allocation13 + $0x50] sm:$0xff]  ;;  %v247_v40 = vld [vmem:[#allocation13 + $0x58] sm:$0xff] }
 0x4f0   :  { %v1272_v44 = vsel %vm328_vm1, %v1270_v25, %v1271_v32  ;;  %v1274_v45 = vsel %vm328_vm1, %v1271_v32, %v1273_v26  ;;  %v1275_v59 = vrot.slane %v12282_v29, 1  ;;  %v1278_v14 = vrot.slane %v12286_v35, 1  ;;  %9880 = vmatprep.subr.bf16.mxu0 %v11678_v24  ;;  %v250_v32 = vld [vmem:[#allocation13 + $0x70] sm:$0xff]  ;;  %v251_v26 = vld [vmem:[#allocation13 + $0x78] sm:$0xff] }
 0x4f1   :  { %9289 = vmatprep.mubr.msk.f32.mxu1 %vm762_vm5, %v1272_v44  ;;  %v1533_v57 = vrot.slane %v12267_v41, 2  ;;  %v1537_v61 = vrot.slane %v12282_v29, 2  ;;  %v1538_v23 = vrot.slane %v12279_v28, 2  ;;  %v1540_v27 = vrot.slane %v12286_v35, 2 }
 0x4f2   :  { %9290 = vmatmul.mubr.msk.f32.gmra.mrb[10].mxu1 %vm762_vm5, %v1274_v45  ;;  %v1277_v56 = vsel %vm328_vm1, %v1275_v59, %v1276_v31  ;;  %v1279_v2 = vsel %vm328_vm1, %v1276_v31, %v1278_v14  ;;  %v12356_v9 = vpack.c.bf16 %v243_v38, %v242_v8  ;;  %v12362_v39 = vpack.c.bf16 %v245_v11, %v244_v10 }
 0x4f3   :  { %9292 = vmatprep.mubr.msk.f32.mxu1 %vm762_vm5, %v1277_v56  ;;  %v1539_v3 = vsel %vm592_vm3, %v1537_v61, %v1538_v23  ;;  %v1541_v30 = vsel %vm592_vm3, %v1538_v23, %v1540_v27 }
 0x4f4   :  { %9882 = vmatpush3.bf16.msra.mxu0 %v12356_v9 }
 0x4f5   :  { %9883 = vmatprep.subr.bf16.mxu0 %v11678_v24 }
 0x4f6   :  { %9293 = vmatmul.mubr.msk.f32.gmra.mrb[12].mxu1 %vm762_vm5, %v1279_v2 }
 0x4f7   :  { %9311 = vmatprep.mubr.msk.f32.mxu1 %vm762_vm5, %v12214_v60 }
 0x4f8   :  { %9885 = vmatpush3.bf16.msra.mxu0 %v12362_v39 }
 0x4f9   :  { %9886 = vmatprep.subr.bf16.mxu0 %v11678_v24 }
 0x4fa   :  { %9312 = vmatmul.mubr.msk.f32.vlgmr.msra.gmra.mrb[6].mxu1 %vm762_vm5, %v12211_v58  ;;  %v1526_v58 = vsel %vm592_vm3, %v1523_v50, %v1525_v51 }
 0x4fb   :  { %9858 = vmatpush3.bf16.msra.mxu1 %v12245_v18  ;;  %9314 = vmatprep.mubr.msk.f32.mxu1 %vm762_vm5, %v12226_v4  ;;  %v1522_v18 = vrot.slane %v12214_v60, 2  ;;  %v1530_v60 = vrot.slane %v12232_v33, 2  ;;  %v1535_v4 = vrot.slane %v12273_v21, 2  ;;  %v1534_v33 = vsel %vm592_vm3, %v1532_v55, %v1533_v57  ;;  %v249_v21 = vld [vmem:[#allocation13 + $0x68] sm:$0xff] }
 0x4fc   :  { %9860 = vmatprep.subr.bf16.mxu1 %v9859_v15 }
 0x4fd   :  { %v1524_v52 = vsel %vm592_vm3, %v1522_v18, %v1523_v50  ;;  %v1536_v62 = vsel %vm592_vm3, %v1533_v57, %v1535_v4 }
 0x4fe   :  { %9315 = vmatmul.mubr.msk.f32.gmra.mrb[8].mxu1 %vm762_vm5, %v12222_v1  ;;  %v1531_v1 = vsel %vm592_vm3, %v1528_v54, %v1530_v60 }
 0x4ff   :  { %9862 = vmatpush3.bf16.msra.mxu1 %v9859_v15  ;;  %9317 = vmatprep.mubr.msk.f32.mxu1 %vm762_vm5, %v12270_v43  ;;  %v248_v43 = vld [vmem:[#allocation13 + $0x60] sm:$0xff] }
 0x500   :  { %9864 = vmatprep.subr.bf16.mxu1 %v9863_v19  ;;  %v12374_v25 = vpack.c.bf16 %v249_v21, %v248_v43 }
 0x502   :  { %9318 = vmatmul.mubr.msk.f32.gmra.mrb[10].mxu1 %vm762_vm5, %v12267_v41  ;;  %v12368_v41 = vpack.c.bf16 %v247_v40, %v246_v12 }
 0x503   :  { %9866 = vmatpush3.bf16.msra.mxu1 %v9863_v19  ;;  %9320 = vmatprep.mubr.msk.f32.mxu1 %vm762_vm5, %v12282_v29  ;;  %v12385_v29 = vld [vmem:[#allocation7] sm:$0x7] }
 0x504   :  { %9868 = vmatprep.subr.bf16.mxu1 %v9867_v48  ;;  %9888 = vmatpush3.bf16.msra.mxu0 %v12368_v41  ;;  %v1674_v31 = vrot.slane %v12385_v29, %v12084_v37 }
 0x505   :  { %9889 = vmatprep.subr.bf16.mxu0 %v11678_v24 }
 0x506   :  { %9321 = vmatmul.mubr.msk.f32.gmra.mrb[12].mxu1 %vm762_vm5, %v12279_v28  ;;  %v12380_v28 = vpack.c.bf16 %v251_v26, %v250_v32 }
 0x507   :  { %9870 = vmatpush3.bf16.msra.mxu1 %v9867_v48  ;;  %9339 = vmatprep.mubr.msk.f32.mxu1 %vm762_vm5, %v1524_v52 }
 0x508   :  { %9919 = vmatprep.subr.bf16.mxu1 %v11678_v24  ;;  %9891 = vmatpush3.bf16.msra.mxu0 %v12374_v25 }
 0x509   :  { %9892 = vmatprep.subr.bf16.mxu0 %v11678_v24 }
 0x50a   :  { %9340 = vmatmul.mubr.msk.f32.vlgmr.msra.gmra.mrb[6].mxu1 %vm762_vm5, %v1526_v58 }
 0x50b   :  { %9342 = vmatprep.mubr.msk.f32.mxu1 %vm762_vm5, %v1529_v63  ;;  %9921 = vmatpush3.bf16.msra.mxu1 %v12248_v47 }
 0x50c   :  { %9922 = vmatprep.subr.bf16.mxu1 %v11678_v24  ;;  %9894 = vmatpush3.bf16.msra.mxu0 %v12380_v28 }
 0x50d   :  { %9895 = vmatprep.subr.bf16.mxu0 %v11678_v24 }
 0x50e   :  { %9343 = vmatmul.mubr.msk.f32.gmra.mrb[8].mxu1 %vm762_vm5, %v1531_v1 }
 0x50f   :  { %9345 = vmatprep.mubr.msk.f32.mxu1 %vm762_vm5, %v1534_v33  ;;  %9924 = vmatpush3.bf16.msra.mxu1 %v12251_v49 }
 0x510   :  { %9925 = vmatprep.subr.bf16.mxu1 %v11678_v24 }
 0x512   :  { %9346 = vmatmul.mubr.msk.f32.gmra.mrb[10].mxu1 %vm762_vm5, %v1536_v62 }
 0x513   :  { %9348 = vmatprep.mubr.msk.f32.mxu1 %vm762_vm5, %v1539_v3  ;;  %9927 = vmatpush3.bf16.msra.mxu1 %v12350_v7 }
 0x514   :  { %9928 = vmatprep.subr.bf16.mxu1 %v11678_v24 }
 0x516   :  { %9349 = vmatmul.mubr.msk.f32.gmra.mrb[12].mxu1 %vm762_vm5, %v1541_v30 }
 0x517   :  { %9453 = vmatprep.mubr.msk.f32.mxu1 %vm11679_vm4, %v11680_v34  ;;  %9930 = vmatpush3.bf16.msra.mxu1 %v12356_v9 }
 0x518   :  { %9931 = vmatprep.subr.bf16.mxu1 %v11678_v24 }
 0x51b   :  { %9933 = vmatpush3.bf16.msra.mxu1 %v12362_v39 }
 0x51c   :  { %9934 = vmatprep.subr.bf16.mxu1 %v11678_v24 }
 0x51f   :  { %9936 = vmatpush3.bf16.msra.mxu1 %v12368_v41 }
 0x520   :  { %9937 = vmatprep.subr.bf16.mxu1 %v11678_v24 }
 0x523   :  { %9939 = vmatpush3.bf16.msra.mxu1 %v12374_v25 }
 0x524   :  { %9940 = vmatprep.subr.bf16.mxu1 %v11678_v24 }
 0x527   :  { %9942 = vmatpush3.bf16.msra.mxu1 %v12380_v28 }
 0x5dd   :  { %v9341_v35 = vpop.f32.mrb[6].mxu1 }
 0x5de   :  { %v12389_v44 = vadd.f32 %v9341_v35, %v1674_v31  ;;  %v1624_v45 = vpop.f32.mrb[7].mxu1 }
 0x5df   :  { %v12391_v59 = vadd.f32 %v1674_v31, %v1624_v45 }
 0x5e0   :  { %v1684_v14 = vmax.f32 %v12389_v44, 0.0 }
 0x5e1   :  { %v1683_v56 = vmax.f32 %v12391_v59, 0.0  ;;  %v9344_v2 = vpop.f32.mrb[8].mxu1 }
 0x5e2   :  { %v1634_v13 = vpop.f32.mrb[9].mxu1  ;;  %v12395_v0 = vadd.f32 %v9344_v2, %v1674_v31 }
 0x5e3   :  { %v1677_v15 = vadd.f32 %v1674_v31, %v1634_v13  ;;  %v1691_v16 = vadd.f32 %v1684_v14, %v1683_v56 }
 0x5e4   :  { %v1686_v48 = vmax.f32 %v12395_v0, 0.0 }
 0x5e5   :  { %v1685_v17 = vmax.f32 %v1677_v15, 0.0  ;;  %v9347_v19 = vpop.f32.mrb[10].mxu1 }
 0x5e6   :  { %v12397_v42 = vadd.f32 %v9347_v19, %v1674_v31  ;;  %v1644_v46 = vpop.f32.mrb[11].mxu1 }
 0x5e7   :  { %v1692_v18 = vadd.f32 %v1691_v16, %v1685_v17  ;;  %v12400_v50 = vadd.f32 %v1674_v31, %v1644_v46 }
 0x5e8   :  { %v1688_v52 = vmax.f32 %v12397_v42, 0.0 }
 0x5e9   :  { %v1693_v51 = vadd.f32 %v1692_v18, %v1686_v48  ;;  %v1687_v53 = vmax.f32 %v12400_v50, 0.0  ;;  %v9350_v54 = vpop.f32.mrb[12].mxu1 }
 0x5ea   :  { %v1654_v58 = vpop.f32.mrb[13].mxu1  ;;  %v12404_v63 = vadd.f32 %v9350_v54, %v1674_v31 }
 0x5eb   :  { %v1694_v60 = vrot.slane %v1693_v51, 4  ;;  %v12406_v55 = vadd.f32 %v1674_v31, %v1654_v58  ;;  %v1885_v1 = vadd.f32 %v1688_v52, %v1687_v53 }
 0x5ec   :  { %v1690_v61 = vmax.f32 %v12404_v63, 0.0 }
 0x5ed   :  { %v1695_v57 = vadd.f32 %v1694_v60, %v1693_v51  ;;  %v1689_v4 = vmax.f32 %v12406_v55, 0.0 }
 0x5ef   :  { %v1696_v33 = vrot.slane %v1695_v57, 2  ;;  %v1886_v23 = vadd.f32 %v1885_v1, %v1689_v4 }
 0x5f1   :  { %v1697_v62 = vadd.f32 %v1696_v33, %v1695_v57  ;;  %v1887_v27 = vadd.f32 %v1886_v23, %v1690_v61 }
 0x5f3   :  { %v1888_v3 = vrot.slane %v1887_v27, 4  ;;  %v1698_v30 = vrot.slane %v1697_v62, 1 }
 0x5f5   :  { %v1889_v5 = vadd.f32 %v1888_v3, %v1887_v27  ;;  %v1699_v6 = vadd.f32 %v1698_v30, %v1697_v62  ;;  %v2091_v30 = vld [vmem:[#allocation9 + $0x80] sm:$0xff] }
 0x5f7   :  { %v1890_v8 = vrot.slane %v1889_v5, 2  ;;  %9384 = vmatmul.mubr.f32.vlgmr.msra.gmra.mrb[10].mxu0 %v1699_v6 }
 0x5f8   :  { %9897 = vmatpush3.bf16.msra.mxu0 %v12248_v47  ;;  %9418 = vmatprep.mubr.msk.f32.mxu0 %vm11679_vm4, %v11680_v34 }
 0x5f9   :  { %v1891_v38 = vadd.f32 %v1890_v8, %v1889_v5  ;;  %9898 = vmatprep.subr.bf16.mxu0 %v11678_v24  ;;  %v2092_v5 = vld [vmem:[#allocation9 + $0x88] sm:$0xff]  ;;  %v2093_v8 = vld [vmem:[#allocation9 + $0x90] sm:$0xff] }
 0x5fa   :  { %v9967_v6 = vpack.c.bf16 %v2092_v5, %v2091_v30 }
 0x5fb   :  { %v1892_v10 = vrot.slane %v1891_v38, 1 }
 0x5fc   :  { %9900 = vmatpush3.bf16.msra.mxu0 %v12251_v49  ;;  %9968 = vmatprep.subr.bf16.mxu1 %v9967_v6 }
 0x5fd   :  { %v1893_v11 = vadd.f32 %v1892_v10, %v1891_v38  ;;  %9901 = vmatprep.subr.bf16.mxu0 %v11678_v24  ;;  %v2094_v38 = vld [vmem:[#allocation9 + $0x98] sm:$0xff] }
 0x5fe   :  { %v9971_v10 = vpack.c.bf16 %v2094_v38, %v2093_v8 }
 0x5ff   :  { %9454 = vmatmul.mubr.f32.vlgmr.msra.gmra.mrb[14].mxu1 %v1893_v11  ;;  %v2095_v11 = vld [vmem:[#allocation9 + $0xa0] sm:$0xff] }
 0x600   :  { %9903 = vmatpush3.bf16.msra.mxu0 %v12350_v7  ;;  %9970 = vmatpush3.bf16.msra.mxu1 %v9967_v6 }
 0x601   :  { %9904 = vmatprep.subr.bf16.mxu0 %v11678_v24  ;;  %9972 = vmatprep.subr.bf16.mxu1 %v9971_v10 }
 0x604   :  { %9906 = vmatpush3.bf16.msra.mxu0 %v12356_v9  ;;  %9974 = vmatpush3.bf16.msra.mxu1 %v9971_v10 }
 0x605   :  { %9907 = vmatprep.subr.bf16.mxu0 %v11678_v24 }
 0x608   :  { %9909 = vmatpush3.bf16.msra.mxu0 %v12362_v39 }
 0x609   :  { %9910 = vmatprep.subr.bf16.mxu0 %v11678_v24 }
 0x60c   :  { %9912 = vmatpush3.bf16.msra.mxu0 %v12368_v41 }
 0x60d   :  { %9913 = vmatprep.subr.bf16.mxu0 %v11678_v24 }
 0x610   :  { %9915 = vmatpush3.bf16.msra.mxu0 %v12374_v25 }
 0x611   :  { %9916 = vmatprep.subr.bf16.mxu0 %v11678_v24 }
 0x614   :  { %9918 = vmatpush3.bf16.msra.mxu0 %v12380_v28 }
 0x615   :  { %9943 = vmatprep.subr.bf16.mxu0 %v11678_v24 }
 0x6ca   :  { %v1766_v12 = vpop.f32.mrb[10].mxu0 }
 0x6cb   :  { %v1770_v40 = vmul.f32 0.001953125, %v1766_v12  ;;  %v9385_v43 = vpop.f32.mrb[11].mxu0  ;;  %v2096_v12 = vld [vmem:[#allocation9 + $0xa8] sm:$0xff] }
 0x6cc   :  { %v2097_v43 = vld [vmem:[#allocation9 + $0xb0] sm:$0xff] }
 0x6cd   :  { %v1774_v21 = vrot.slane %v1770_v40, %v12084_v37  ;;  %v9975_v40 = vpack.c.bf16 %v2096_v12, %v2095_v11  ;;  %v2077_v12 = vld [vmem:[#allocation9 + $0x10] sm:$0xff] }
 0x6cf   :  { %v12431_v32 = vsub.f32 %v1683_v56, %v1774_v21  ;;  %v12433_v26 = vsub.f32 %v1684_v14, %v1774_v21  ;;  %v12435_v31 = vsub.f32 %v1685_v17, %v1774_v21  ;;  %v12441_v45 = vsub.f32 %v1686_v48, %v1774_v21  ;;  %9976 = vmatprep.subr.bf16.mxu1 %v9975_v40  ;;  %v2098_v21 = vld [vmem:[#allocation9 + $0xb8] sm:$0xff] }
 0x6d0   :  { %9978 = vmatpush3.bf16.msra.mxu1 %v9975_v40 }
 0x6d1   :  { %v1779_v35 = vmul.f32 %v12431_v32, %v12431_v32  ;;  %v1780_v44 = vmul.f32 %v12433_v26, %v12433_v26  ;;  %v1781_v2 = vmul.f32 %v12435_v31, %v12435_v31  ;;  %v1782_v14 = vmul.f32 %v12441_v45, %v12441_v45 }
 0x6d2   :  { %v1960_v59 = vpop.f32.mrb[14].mxu1 }
 0x6d3   :  { %v1783_v13 = vadd.f32 %v1780_v44, %v1779_v35  ;;  %v9455_v0 = vpop.f32.mrb[15].mxu1  ;;  %v1964_v56 = vmul.f32 0.001953125, %v1960_v59  ;;  %v9979_v35 = vpack.c.bf16 %v2098_v21, %v2097_v43  ;;  %v2099_v44 = vld [vmem:[#allocation9 + $0xc0] sm:$0xff]  ;;  %v2100_v59 = vld [vmem:[#allocation9 + $0xc8] sm:$0xff] }
 0x6d4   :  { %v2102_v0 = vld [vmem:[#allocation9 + $0xd8] sm:$0xff] }
 0x6d5   :  { %v1784_v15 = vadd.f32 %v1783_v13, %v1781_v2  ;;  %v1968_v16 = vrot.slane %v1964_v56, %v12084_v37  ;;  %9980 = vmatprep.subr.bf16.mxu1 %v9979_v35  ;;  %v9983_v2 = vpack.c.bf16 %v2100_v59, %v2099_v44  ;;  %v2101_v13 = vld [vmem:[#allocation9 + $0xd0] sm:$0xff] }
 0x6d6   :  { %9982 = vmatpush3.bf16.msra.mxu1 %v9979_v35  ;;  %v9987_v56 = vpack.c.bf16 %v2102_v0, %v2101_v13 }
 0x6d7   :  { %v1785_v17 = vadd.f32 %v1784_v15, %v1782_v14  ;;  %v12448_v46 = vsub.f32 %v1687_v53, %v1968_v16  ;;  %v12452_v48 = vsub.f32 %v1688_v52, %v1968_v16  ;;  %v12458_v60 = vsub.f32 %v1689_v4, %v1968_v16  ;;  %9984 = vmatprep.subr.bf16.mxu1 %v9983_v2  ;;  %v2103_v15 = vld [vmem:[#allocation9 + $0xe0] sm:$0xff]  ;;  %v2104_v14 = vld [vmem:[#allocation9 + $0xe8] sm:$0xff] }
 0x6d8   :  { %v12460_v53 = vsub.f32 %v1690_v61, %v1968_v16  ;;  %v9991_v16 = vpack.c.bf16 %v2104_v14, %v2103_v15 }
 0x6d9   :  { %v1786_v19 = vrot.slane %v1785_v17, 4  ;;  %v1973_v51 = vmul.f32 %v12448_v46, %v12448_v46  ;;  %v1974_v54 = vmul.f32 %v12452_v48, %v12452_v48  ;;  %v1975_v42 = vmul.f32 %v12458_v60, %v12458_v60 }
 0x6da   :  { %v1976_v1 = vmul.f32 %v12460_v53, %v12460_v53  ;;  %9986 = vmatpush3.bf16.msra.mxu1 %v9983_v2 }
 0x6db   :  { %v1787_v18 = vadd.f32 %v1786_v19, %v1785_v17  ;;  %v1977_v55 = vadd.f32 %v1974_v54, %v1973_v51  ;;  %v2105_v17 = vld [vmem:[#allocation9 + $0xf0] sm:$0xff]  ;;  %v2106_v19 = vld [vmem:[#allocation9 + $0xf8] sm:$0xff]  ;;  %9988 = vmatprep.subr.bf16.mxu1 %v9987_v56  ;;  %v2076_v51 = vld [vmem:[#allocation9 + $0x8] sm:$0xff] }
 0x6dd   :  { %v1788_v50 = vrot.slane %v1787_v18, 2  ;;  %v1978_v52 = vadd.f32 %v1977_v55, %v1975_v42 }
 0x6de   :  { %9990 = vmatpush3.bf16.msra.mxu1 %v9987_v56 }
 0x6df   :  { %v1789_v58 = vadd.f32 %v1788_v50, %v1787_v18  ;;  %v1979_v4 = vadd.f32 %v1978_v52, %v1976_v1  ;;  %9992 = vmatprep.subr.bf16.mxu1 %v9991_v16  ;;  %v9995_v18 = vpack.c.bf16 %v2106_v19, %v2105_v17  ;;  %v2075_v50 = vld [vmem:[#allocation9] sm:$0xff] }
 0x6e0   :  { %v9999_v54 = vpack.c.bf16 %v2076_v51, %v2075_v50  ;;  %v2079_v50 = vld [vmem:[#allocation9 + $0x20] sm:$0xff] }
 0x6e1   :  { %v1790_v63 = vrot.slane %v1789_v58, 1  ;;  %v1980_v33 = vrot.slane %v1979_v4, 4 }
 0x6e2   :  { %9994 = vmatpush3.bf16.msra.mxu1 %v9991_v16 }
 0x6e3   :  { %v1791_v57 = vadd.f32 %v1790_v63, %v1789_v58  ;;  %v1981_v61 = vadd.f32 %v1980_v33, %v1979_v4  ;;  %9996 = vmatprep.subr.bf16.mxu1 %v9995_v18  ;;  %v12505_v4 = vrot.slane %v12385_v29, %v12162_v20 }
 0x6e5   :  { %9419 = vmatmul.mubr.f32.vlgmr.msra.gmra.mrb[12].mxu0 %v1791_v57  ;;  %v1982_v23 = vrot.slane %v1981_v61, 2 }
 0x6e6   :  { %9945 = vmatpush3.bf16.msra.mxu0 %v12248_v47  ;;  %9488 = vmatprep.mubr.msk.f32.mxu0 %vm11679_vm4, %v11680_v34 }
 0x6e7   :  { %9946 = vmatprep.subr.bf16.mxu0 %v11678_v24  ;;  %v1983_v62 = vadd.f32 %v1982_v23, %v1981_v61  ;;  %9998 = vmatpush3.bf16.msra.mxu1 %v9995_v18 }
 0x6e8   :  { %10000 = vmatprep.subr.bf16.mxu1 %v9999_v54 }
 0x6e9   :  { %v1984_v27 = vrot.slane %v1983_v62, 1 }
 0x6ea   :  { %9948 = vmatpush3.bf16.msra.mxu0 %v12251_v49 }
 0x6eb   :  { %9949 = vmatprep.subr.bf16.mxu0 %v11678_v24  ;;  %v1985_v3 = vadd.f32 %v1984_v27, %v1983_v62 }
 0x6ee   :  { %9951 = vmatpush3.bf16.msra.mxu0 %v12350_v7 }
 0x6ef   :  { %9952 = vmatprep.subr.bf16.mxu0 %v11678_v24 }
 0x6f2   :  { %9954 = vmatpush3.bf16.msra.mxu0 %v12356_v9 }
 0x6f3   :  { %9955 = vmatprep.subr.bf16.mxu0 %v11678_v24 }
 0x6f6   :  { %9957 = vmatpush3.bf16.msra.mxu0 %v12362_v39 }
 0x6f7   :  { %9958 = vmatprep.subr.bf16.mxu0 %v11678_v24 }
 0x6fa   :  { %9960 = vmatpush3.bf16.msra.mxu0 %v12368_v41 }
 0x6fb   :  { %9961 = vmatprep.subr.bf16.mxu0 %v11678_v24 }
 0x6fe   :  { %9963 = vmatpush3.bf16.msra.mxu0 %v12374_v25 }
 0x6ff   :  { %9964 = vmatprep.subr.bf16.mxu0 %v11678_v24 }
 0x702   :  { %9966 = vmatpush3.bf16.msra.mxu0 %v12380_v28 }
 0x703   :  { %10063 = vmatprep.subr.bf16.mxu0 %v11678_v24 }
 0x705   :  { %9489 = vmatmul.mubr.f32.vlgmr.msra.gmra.mrb[14].mxu0 %v1985_v3 }
 0x706   :  { %10065 = vmatpush3.bf16.msra.mxu0 %v12248_v47  ;;  %9655 = vmatprep.mubr.msk.f32.mxu0 %vm11679_vm4, %v11680_v34 }
 0x707   :  { %10066 = vmatprep.subr.bf16.mxu0 %v11678_v24 }
 0x70a   :  { %10068 = vmatpush3.bf16.msra.mxu0 %v12251_v49 }
 0x70b   :  { %10069 = vmatprep.subr.bf16.mxu0 %v11678_v24 }
 0x70e   :  { %10071 = vmatpush3.bf16.msra.mxu0 %v12350_v7 }
 0x70f   :  { %10072 = vmatprep.subr.bf16.mxu0 %v11678_v24 }
 0x712   :  { %10074 = vmatpush3.bf16.msra.mxu0 %v12356_v9 }
 0x713   :  { %10075 = vmatprep.subr.bf16.mxu0 %v11678_v24 }
 0x716   :  { %10077 = vmatpush3.bf16.msra.mxu0 %v12362_v39 }
 0x717   :  { %10078 = vmatprep.subr.bf16.mxu0 %v11678_v24 }
 0x71a   :  { %10080 = vmatpush3.bf16.msra.mxu0 %v12368_v41 }
 0x71b   :  { %10081 = vmatprep.subr.bf16.mxu0 %v11678_v24 }
 0x71e   :  { %10083 = vmatpush3.bf16.msra.mxu0 %v12374_v25 }
 0x71f   :  { %10084 = vmatprep.subr.bf16.mxu0 %v11678_v24 }
 0x722   :  { %10086 = vmatpush3.bf16.msra.mxu0 %v12380_v28 }
 0x723   :  { %10087 = vmatprep.subr.bf16.mxu0 %v11678_v24 }
 0x7b8   :  { %v1858_v58 = vpop.f32.mrb[12].mxu0 }
 0x7b9   :  { %v1862_v63 = vmul.f32 0.001953125, %v1858_v58  ;;  %v9420_v55 = vpop.f32.mrb[13].mxu0 }
 0x7bb   :  { %v1863_v57 = vadd.f32 1e-05, %v1862_v63  ;;  %v2080_v63 = vld [vmem:[#allocation9 + $0x28] sm:$0xff] }
 0x7bd   :  { %11328 = vrsqrt.f32 %v1863_v57 }
 0x7c7   :  { %v11329_v42 = vpop.eup %11328 }
 0x7c8   :  { %v1866_v52 = vrot.slane %v11329_v42, 7 }
 0x7ca   :  { %v1868_v1 = vmul.f32 %v1866_v52, %v12385_v29 }
 0x7cc   :  { %v1872_v33 = vrot.slane %v1868_v1, %v12165_v22 }
 0x7ce   :  { %v1873_v61 = vmul.f32 %v1872_v33, %v12431_v32  ;;  %v1874_v23 = vmul.f32 %v1872_v33, %v12433_v26  ;;  %v1875_v62 = vmul.f32 %v1872_v33, %v12435_v31  ;;  %v1876_v27 = vmul.f32 %v1872_v33, %v12441_v45  ;;  %v2078_v32 = vld [vmem:[#allocation9 + $0x18] sm:$0xff] }
 0x7cf   :  { %v10003_v13 = vpack.c.bf16 %v2078_v32, %v2077_v12  ;;  %v2085_v12 = vld [vmem:[#allocation9 + $0x50] sm:$0xff]  ;;  %v2086_v32 = vld [vmem:[#allocation9 + $0x58] sm:$0xff] }
 0x7d0   :  { %v1881_v3 = vadd.f32 %v12505_v4, %v1873_v61  ;;  %v1882_v30 = vadd.f32 %v12505_v4, %v1874_v23  ;;  %v1883_v5 = vadd.f32 %v12505_v4, %v1875_v62  ;;  %v1884_v6 = vadd.f32 %v12505_v4, %v1876_v27 }
 0x7d1   :  { %v10007_v27 = vpack.c.bf16 %v2080_v63, %v2079_v50  ;;  %v2108_v50 = vld [vmem:[#allocation9 + $0x108] sm:$0xff] }
 0x7d2   :  { %v2128_v8 = vrot.slane %v1881_v3, 1  ;;  %v2140_v38 = vrot.slane %v1881_v3, 7  ;;  %v2141_v10 = vrot.slane %v1882_v30, 7  ;;  %v2164_v11 = vrot.slane %v1882_v30, 5 }
 0x7d3   :  { %v2129_v40 = vrot.slane %v1883_v5, 1  ;;  %v2143_v26 = vrot.slane %v1883_v5, 7  ;;  %v2144_v43 = vrot.slane %v1884_v6, 7  ;;  %v2165_v31 = vrot.slane %v1884_v6, 5  ;;  %v2081_v6 = vld [vmem:[#allocation9 + $0x30] sm:$0xff] }
 0x7d4   :  { %v12517_v45 = vsel %vm283_vm0, %v2140_v38, %v2141_v10  ;;  %v12520_v21 = vsel %vm283_vm0, %v2128_v8, %v2140_v38  ;;  %v2176_v35 = vsel %vm283_vm0, %v2141_v10, %v2164_v11  ;;  %v2082_v8 = vld [vmem:[#allocation9 + $0x38] sm:$0xff]  ;;  %v2083_v38 = vld [vmem:[#allocation9 + $0x40] sm:$0xff]  ;;  %v2084_v10 = vld [vmem:[#allocation9 + $0x48] sm:$0xff] }
 0x7d5   :  { %v2188_v44 = vrot.slane %v12520_v21, 1  ;;  %v2189_v59 = vrot.slane %v12517_v45, 1  ;;  %v2191_v2 = vrot.slane %v2176_v35, 1  ;;  %v2429_v0 = vrot.slane %v2176_v35, 2  ;;  %v2088_v35 = vld [vmem:[#allocation9 + $0x68] sm:$0xff] }
 0x7d6   :  { %v12526_v56 = vsel %vm283_vm0, %v2143_v26, %v2144_v43  ;;  %v12529_v15 = vsel %vm283_vm0, %v2129_v40, %v2143_v26  ;;  %v2177_v14 = vsel %vm283_vm0, %v2144_v43, %v2165_v31  ;;  %v2427_v55 = vrot.slane %v12517_v45, 2  ;;  %v2087_v31 = vld [vmem:[#allocation9 + $0x60] sm:$0xff] }
 0x7d7   :  { %v2190_v16 = vsel %vm328_vm1, %v2188_v44, %v2189_v59  ;;  %v2192_v17 = vsel %vm328_vm1, %v2189_v59, %v2191_v2  ;;  %v2193_v19 = vrot.slane %v12529_v15, 1  ;;  %v2194_v18 = vrot.slane %v12526_v56, 1 }
 0x7d8   :  { %v2052_v51 = vpop.f32.mrb[14].mxu0  ;;  %9523 = vmatprep.mubr.f32.mxu1 %v2190_v16  ;;  %v2196_v58 = vrot.slane %v2177_v14, 1  ;;  %v2431_v57 = vrot.slane %v12529_v15, 2  ;;  %v2432_v42 = vrot.slane %v12526_v56, 2  ;;  %v2434_v61 = vrot.slane %v2177_v14, 2 }
 0x7d9   :  { %v2056_v52 = vmul.f32 0.001953125, %v2052_v51  ;;  %v9490_v1 = vpop.f32.mrb[15].mxu0  ;;  %9524 = vmatmul.mubr.f32.vlgmr.msra.gmra.mrb[16].mxu1 %v2192_v17  ;;  %v2195_v33 = vsel %vm328_vm1, %v2193_v19, %v2194_v18  ;;  %v12543_v23 = vsel %vm592_vm3, %v2427_v55, %v2429_v0  ;;  %v10015_v11 = vpack.c.bf16 %v2084_v10, %v2083_v38  ;;  %v2090_v0 = vld [vmem:[#allocation9 + $0x78] sm:$0xff] }
 0x7da   :  { %9526 = vmatprep.mubr.f32.mxu1 %v2195_v33  ;;  %10002 = vmatpush3.bf16.msra.mxu1 %v9999_v54  ;;  %v12546_v3 = vsel %vm592_vm3, %v2431_v57, %v2432_v42  ;;  %v12549_v30 = vsel %vm592_vm3, %v2432_v42, %v2434_v61  ;;  %v2197_v5 = vsel %vm328_vm1, %v2194_v18, %v2196_v58  ;;  %v2107_v18 = vld [vmem:[#allocation9 + $0x100] sm:$0xff] }
 0x7db   :  { %v2057_v62 = vadd.f32 1e-05, %v2056_v52  ;;  %10004 = vmatprep.subr.bf16.mxu1 %v10003_v13  ;;  %v10011_v54 = vpack.c.bf16 %v2082_v8, %v2081_v6  ;;  %v10019_v26 = vpack.c.bf16 %v2086_v32, %v2085_v12  ;;  %v10023_v59 = vpack.c.bf16 %v2088_v35, %v2087_v31  ;;  %v2109_v35 = vld [vmem:[#allocation9 + $0x110] sm:$0xff] }
 0x7dd   :  { %11330 = vrsqrt.f32 %v2057_v62  ;;  %9527 = vmatmul.mubr.f32.gmra.mrb[18].mxu1 %v2197_v5 }
 0x7de   :  { %10006 = vmatpush3.bf16.msra.mxu1 %v10003_v13  ;;  %v2089_v13 = vld [vmem:[#allocation9 + $0x70] sm:$0xff] }
 0x7df   :  { %10008 = vmatprep.subr.bf16.mxu1 %v10007_v27 }
 0x7e2   :  { %10010 = vmatpush3.bf16.msra.mxu1 %v10007_v27 }
 0x7e3   :  { %10012 = vmatprep.subr.bf16.mxu1 %v10011_v54 }
 0x7e6   :  { %10014 = vmatpush3.bf16.msra.mxu1 %v10011_v54 }
 0x7e7   :  { %v11331_v40 = vpop.eup %11330  ;;  %10016 = vmatprep.subr.bf16.mxu1 %v10015_v11 }
 0x7e8   :  { %v2060_v43 = vrot.slane %v11331_v40, 7 }
 0x7ea   :  { %v2062_v44 = vmul.f32 %v2060_v43, %v12385_v29  ;;  %10018 = vmatpush3.bf16.msra.mxu1 %v10015_v11  ;;  %v10027_v29 = vpack.c.bf16 %v2090_v0, %v2089_v13  ;;  %v2112_v13 = vld [vmem:[#allocation9 + $0x128] sm:$0xff] }
 0x7eb   :  { %10020 = vmatprep.subr.bf16.mxu1 %v10019_v26 }
 0x7ec   :  { %v2066_v2 = vrot.slane %v2062_v44, %v12165_v22  ;;  %v2110_v44 = vld [vmem:[#allocation9 + $0x118] sm:$0xff] }
 0x7ee   :  { %v2067_v14 = vmul.f32 %v2066_v2, %v12448_v46  ;;  %v2068_v16 = vmul.f32 %v2066_v2, %v12452_v48  ;;  %v2069_v17 = vmul.f32 %v2066_v2, %v12458_v60  ;;  %v2070_v19 = vmul.f32 %v2066_v2, %v12460_v53  ;;  %10022 = vmatpush3.bf16.msra.mxu1 %v10019_v26  ;;  %v2111_v2 = vld [vmem:[#allocation9 + $0x120] sm:$0xff] }
 0x7ef   :  { %10024 = vmatprep.subr.bf16.mxu1 %v10023_v59  ;;  %v10031_v46 = vpack.c.bf16 %v2108_v50, %v2107_v18  ;;  %v10039_v0 = vpack.c.bf16 %v2112_v13, %v2111_v2  ;;  %v2116_v18 = vld [vmem:[#allocation9 + $0x148] sm:$0xff]  ;;  %v2426_v50 = vrot.slane %v12520_v21, 2 }
 0x7f0   :  { %v2071_v51 = vadd.f32 %v2067_v14, %v12505_v4  ;;  %v2072_v58 = vadd.f32 %v2068_v16, %v12505_v4  ;;  %v2073_v63 = vadd.f32 %v2069_v17, %v12505_v4  ;;  %v2074_v57 = vadd.f32 %v2070_v19, %v12505_v4  ;;  %v2113_v14 = vld [vmem:[#allocation9 + $0x130] sm:$0xff]  ;;  %v2114_v16 = vld [vmem:[#allocation9 + $0x138] sm:$0xff]  ;;  %v2115_v19 = vld [vmem:[#allocation9 + $0x140] sm:$0xff] }
 0x7f1   :  { %v10043_v17 = vpack.c.bf16 %v2114_v16, %v2113_v14 }
 0x7f2   :  { %v2130_v42 = vrot.slane %v2071_v51, 1  ;;  %v2146_v48 = vrot.slane %v2071_v51, 7  ;;  %v2147_v52 = vrot.slane %v2072_v58, 7  ;;  %v2166_v60 = vrot.slane %v2072_v58, 5  ;;  %10026 = vmatpush3.bf16.msra.mxu1 %v10023_v59  ;;  %v2118_v51 = vld [vmem:[#allocation9 + $0x158] sm:$0xff] }
 0x7f3   :  { %v2131_v53 = vrot.slane %v2073_v63, 1  ;;  %v2149_v1 = vrot.slane %v2073_v63, 7  ;;  %v2150_v33 = vrot.slane %v2074_v57, 7  ;;  %10028 = vmatprep.subr.bf16.mxu1 %v10027_v29  ;;  %v2167_v61 = vrot.slane %v2074_v57, 5  ;;  %v2119_v63 = vld [vmem:[#allocation9 + $0x160] sm:$0xff]  ;;  %v2120_v57 = vld [vmem:[#allocation9 + $0x168] sm:$0xff] }
 0x7f4   :  { %v12563_v62 = vsel %vm283_vm0, %v2146_v48, %v2147_v52  ;;  %v12566_v27 = vsel %vm283_vm0, %v2130_v42, %v2146_v48  ;;  %v12569_v5 = vsel %vm283_vm0, %v2147_v52, %v2166_v60  ;;  %v10035_v59 = vpack.c.bf16 %v2110_v44, %v2109_v35  ;;  %v2122_v42 = vld [vmem:[#allocation9 + $0x178] sm:$0xff] }
 0x7f5   :  { %v2198_v4 = vrot.slane %v12566_v27, 1  ;;  %v2199_v6 = vrot.slane %v12563_v62, 1  ;;  %v2201_v8 = vrot.slane %v12569_v5, 1  ;;  %v12575_v54 = vsel %vm283_vm0, %v2149_v1, %v2150_v33 }
 0x7f6   :  { %v12578_v38 = vsel %vm283_vm0, %v2131_v53, %v2149_v1  ;;  %v2204_v10 = vrot.slane %v12575_v54, 1  ;;  %v12582_v11 = vsel %vm283_vm0, %v2150_v33, %v2167_v61  ;;  %10030 = vmatpush3.bf16.msra.mxu1 %v10027_v29  ;;  %v2117_v29 = vld [vmem:[#allocation9 + $0x150] sm:$0xff]  ;;  %v2439_v52 = vrot.slane %v12569_v5, 2  ;;  %v12633_v61 = vld [vmem:[#allocation10] sm:$0x7] }
 0x7f7   :  { %v2200_v12 = vsel %vm328_vm1, %v2198_v4, %v2199_v6  ;;  %v2202_v32 = vsel %vm328_vm1, %v2199_v6, %v2201_v8  ;;  %v2203_v40 = vrot.slane %v12578_v38, 1  ;;  %10032 = vmatprep.subr.bf16.mxu1 %v10031_v46  ;;  %v2206_v26 = vrot.slane %v12582_v11, 1 }
 0x7f8   :  { %9529 = vmatprep.mubr.f32.mxu1 %v2200_v12  ;;  %v10051_v58 = vpack.c.bf16 %v2118_v51, %v2117_v29  ;;  %v2441_v53 = vrot.slane %v12578_v38, 2  ;;  %v2444_v1 = vrot.slane %v12582_v11, 2 }
 0x7f9   :  { %9530 = vmatmul.mubr.f32.gmra.mrb[20].mxu1 %v2202_v32  ;;  %v2205_v43 = vsel %vm328_vm1, %v2203_v40, %v2204_v10  ;;  %v2207_v31 = vsel %vm328_vm1, %v2204_v10, %v2206_v26 }
 0x7fa   :  { %9532 = vmatprep.mubr.f32.mxu1 %v2205_v43 }
 0x7fd   :  { %9533 = vmatmul.mubr.f32.gmra.mrb[22].mxu1 %v2207_v31 }
 0x7fe   :  { %9567 = vmatprep.mubr.f32.mxu1 %v12520_v21  ;;  %v10055_v21 = vpack.c.bf16 %v2120_v57, %v2119_v63 }
 0x801   :  { %9568 = vmatmul.mubr.f32.vlgmr.msra.gmra.mrb[16].mxu1 %v12517_v45  ;;  %v2436_v45 = vrot.slane %v12566_v27, 2 }
 0x802   :  { %10034 = vmatpush3.bf16.msra.mxu1 %v10031_v46  ;;  %9570 = vmatprep.mubr.f32.mxu1 %v12529_v15  ;;  %v10047_v15 = vpack.c.bf16 %v2116_v18, %v2115_v19  ;;  %v2121_v46 = vld [vmem:[#allocation9 + $0x170] sm:$0xff] }
 0x803   :  { %10036 = vmatprep.subr.bf16.mxu1 %v10035_v59  ;;  %v10059_v48 = vpack.c.bf16 %v2122_v42, %v2121_v46 }
 0x805   :  { %9571 = vmatmul.mubr.f32.gmra.mrb[18].mxu1 %v12526_v56  ;;  %v2428_v56 = vsel %vm592_vm3, %v2426_v50, %v2427_v55  ;;  %v2437_v55 = vrot.slane %v12563_v62, 2 }
 0x806   :  { %10038 = vmatpush3.bf16.msra.mxu1 %v10035_v59  ;;  %9573 = vmatprep.mubr.f32.mxu1 %v12566_v27 }
 0x807   :  { %10040 = vmatprep.subr.bf16.mxu1 %v10039_v0  ;;  %v2438_v60 = vsel %vm592_vm3, %v2436_v45, %v2437_v55 }
 0x809   :  { %9574 = vmatmul.mubr.f32.gmra.mrb[20].mxu1 %v12563_v62  ;;  %v2570_v62 = vrot.slane %v12633_v61, %v12084_v37 }
 0x80a   :  { %10042 = vmatpush3.bf16.msra.mxu1 %v10039_v0  ;;  %9576 = vmatprep.mubr.f32.mxu1 %v12578_v38 }
 0x80b   :  { %10044 = vmatprep.subr.bf16.mxu1 %v10043_v17 }
 0x80d   :  { %9577 = vmatmul.mubr.f32.gmra.mrb[22].mxu1 %v12575_v54 }
 0x80e   :  { %10046 = vmatpush3.bf16.msra.mxu1 %v10043_v17  ;;  %9611 = vmatprep.mubr.f32.mxu1 %v2428_v56 }
 0x80f   :  { %10048 = vmatprep.subr.bf16.mxu1 %v10047_v15 }
 0x812   :  { %10050 = vmatpush3.bf16.msra.mxu1 %v10047_v15 }
 0x813   :  { %10052 = vmatprep.subr.bf16.mxu1 %v10051_v58 }
 0x816   :  { %10054 = vmatpush3.bf16.msra.mxu1 %v10051_v58 }
 0x817   :  { %10056 = vmatprep.subr.bf16.mxu1 %v10055_v21 }
 0x81a   :  { %10058 = vmatpush3.bf16.msra.mxu1 %v10055_v21 }
 0x81b   :  { %10060 = vmatprep.subr.bf16.mxu1 %v10059_v48 }
 0x81e   :  { %10062 = vmatpush3.bf16.msra.mxu1 %v10059_v48 }
 0x81f   :  { %10135 = vmatprep.subr.bf16.mxu1 %v11678_v24 }
 0x821   :  { %9612 = vmatmul.mubr.f32.vlgmr.msra.gmra.mrb[16].mxu1 %v12543_v23  ;;  %v2442_v23 = vrot.slane %v12575_v54, 2 }
 0x822   :  { %9614 = vmatprep.mubr.f32.mxu1 %v12546_v3  ;;  %10137 = vmatpush3.bf16.msra.mxu1 %v12248_v47  ;;  %v2440_v3 = vsel %vm592_vm3, %v2437_v55, %v2439_v52 }
 0x823   :  { %10138 = vmatprep.subr.bf16.mxu1 %v11678_v24  ;;  %v2443_v33 = vsel %vm592_vm3, %v2441_v53, %v2442_v23 }
 0x825   :  { %9615 = vmatmul.mubr.f32.gmra.mrb[18].mxu1 %v12549_v30  ;;  %v2445_v30 = vsel %vm592_vm3, %v2442_v23, %v2444_v1 }
 0x826   :  { %9617 = vmatprep.mubr.f32.mxu1 %v2438_v60  ;;  %10140 = vmatpush3.bf16.msra.mxu1 %v12251_v49 }
 0x827   :  { %10141 = vmatprep.subr.bf16.mxu1 %v11678_v24 }
 0x829   :  { %9618 = vmatmul.mubr.f32.gmra.mrb[20].mxu1 %v2440_v3 }
 0x82a   :  { %9620 = vmatprep.mubr.f32.mxu1 %v2443_v33  ;;  %10143 = vmatpush3.bf16.msra.mxu1 %v12350_v7 }
 0x82b   :  { %10144 = vmatprep.subr.bf16.mxu1 %v11678_v24 }
 0x82d   :  { %9621 = vmatmul.mubr.f32.gmra.mrb[22].mxu1 %v2445_v30 }
 0x82e   :  { %10146 = vmatpush3.bf16.msra.mxu1 %v12356_v9  ;;  %9760 = vmatprep.mubr.msk.f32.mxu1 %vm11679_vm4, %v11680_v34 }
 0x82f   :  { %10147 = vmatprep.subr.bf16.mxu1 %v11678_v24 }
 0x832   :  { %10149 = vmatpush3.bf16.msra.mxu1 %v12362_v39 }
 0x833   :  { %10150 = vmatprep.subr.bf16.mxu1 %v11678_v24 }
 0x836   :  { %10152 = vmatpush3.bf16.msra.mxu1 %v12368_v41 }
 0x837   :  { %10153 = vmatprep.subr.bf16.mxu1 %v11678_v24 }
 0x83a   :  { %10155 = vmatpush3.bf16.msra.mxu1 %v12374_v25 }
 0x83b   :  { %10156 = vmatprep.subr.bf16.mxu1 %v11678_v24 }
 0x83e   :  { %10158 = vmatpush3.bf16.msra.mxu1 %v12380_v28 }
 0x8f4   :  { %v9613_v27 = vpop.f32.mrb[16].mxu1 }
 0x8f5   :  { %v2572_v5 = vadd.f32 %v9613_v27, %v2570_v62  ;;  %v2520_v4 = vpop.f32.mrb[17].mxu1 }
 0x8f6   :  { %v2571_v6 = vadd.f32 %v2570_v62, %v2520_v4 }
 0x8f7   :  { %v2580_v8 = vmax.f32 %v2572_v5, 0.0 }
 0x8f8   :  { %v2579_v54 = vmax.f32 %v2571_v6, 0.0  ;;  %v9616_v38 = vpop.f32.mrb[18].mxu1 }
 0x8f9   :  { %v2530_v10 = vpop.f32.mrb[19].mxu1  ;;  %v2574_v11 = vadd.f32 %v9616_v38, %v2570_v62 }
 0x8fa   :  { %v2573_v12 = vadd.f32 %v2570_v62, %v2530_v10  ;;  %v2587_v32 = vadd.f32 %v2580_v8, %v2579_v54 }
 0x8fb   :  { %v2582_v35 = vmax.f32 %v2574_v11, 0.0 }
 0x8fc   :  { %v2581_v40 = vmax.f32 %v2573_v12, 0.0  ;;  %v9619_v26 = vpop.f32.mrb[20].mxu1  ;;  %v10364_v12 = vld [vmem:[#allocation15] ss:$16 sps:$4 sm:$0xff]  }
 0x8fd   :  { %v12637_v43 = vadd.f32 %v9619_v26, %v2570_v62  ;;  %v2540_v31 = vpop.f32.mrb[21].mxu1  ;;  %v10378_v26 = vld [vmem:[#allocation15 + $0x44] ss:$16 sps:$4 sm:$0xff]  }
 0x8fe   :  { %v2588_v44 = vadd.f32 %v2587_v32, %v2581_v40  ;;  %v12639_v59 = vadd.f32 %v2570_v62, %v2540_v31  ;;  %v10366_v32 = vld [vmem:[#allocation15 + $0x4] ss:$16 sps:$4 sm:$0xff]   ;;  %v10376_v31 = vld [vmem:[#allocation15 + $0x40] ss:$16 sps:$4 sm:$0xff]  }
 0x900   :  { %v2589_v2 = vadd.f32 %v2588_v44, %v2582_v35  ;;  %v9622_v13 = vpop.f32.mrb[22].mxu1  ;;  %v2583_v27 = vmax.f32 %v12639_v59, 0.0  ;;  %v10396_v44 = vld [vmem:[#allocation15 + $0xa4] ss:$16 sps:$4 sm:$0xff]  }
 0x901   :  { %v12641_v0 = vadd.f32 %v9622_v13, %v2570_v62  ;;  %v2550_v14 = vpop.f32.mrb[23].mxu1  ;;  %v10402_v13 = vld [vmem:[#allocation15 + $0xc4] ss:$16 sps:$4 sm:$0xff]  }
 0x902   :  { %v2590_v16 = vrot.slane %v2589_v2, 4  ;;  %v12643_v17 = vadd.f32 %v2570_v62, %v2550_v14  ;;  %v2584_v62 = vmax.f32 %v12637_v43, 0.0  ;;  %v10400_v14 = vld [vmem:[#allocation15 + $0xc0] ss:$16 sps:$4 sm:$0xff]  }
 0x903   :  { %v2586_v38 = vmax.f32 %v12641_v0, 0.0 }
 0x904   :  { %v2591_v19 = vadd.f32 %v2590_v16, %v2589_v2  ;;  %v2585_v4 = vmax.f32 %v12643_v17, 0.0  ;;  %v10394_v2 = vld [vmem:[#allocation15 + $0xa0] ss:$16 sps:$4 sm:$0xff]   ;;  %v10408_v16 = vld [vmem:[#allocation15 + $0xe4] ss:$16 sps:$4 sm:$0xff]  }
 0x906   :  { %v2592_v18 = vrot.slane %v2591_v19, 2 }
 0x908   :  { %v2593_v50 = vadd.f32 %v2592_v18, %v2591_v19  ;;  %v10406_v19 = vld [vmem:[#allocation15 + $0xe0] ss:$16 sps:$4 sm:$0xff]  }
 0x90a   :  { %v2594_v15 = vrot.slane %v2593_v50, 1 }
 0x90c   :  { %v2595_v29 = vadd.f32 %v2594_v15, %v2593_v50 }
 0x90e   :  { %9656 = vmatmul.mubr.f32.vlgmr.msra.gmra.mrb[16].mxu0 %v2595_v29 }
 0x90f   :  { %10089 = vmatpush3.bf16.msra.mxu0 %v12248_v47  ;;  %9690 = vmatprep.mubr.msk.f32.mxu0 %vm11679_vm4, %v11680_v34 }
 0x910   :  { %10090 = vmatprep.subr.bf16.mxu0 %v11678_v24 }
 0x913   :  { %10092 = vmatpush3.bf16.msra.mxu0 %v12251_v49 }
 0x914   :  { %10093 = vmatprep.subr.bf16.mxu0 %v11678_v24 }
 0x917   :  { %10095 = vmatpush3.bf16.msra.mxu0 %v12350_v7 }
 0x918   :  { %10096 = vmatprep.subr.bf16.mxu0 %v11678_v24 }
 0x91b   :  { %10098 = vmatpush3.bf16.msra.mxu0 %v12356_v9 }
 0x91c   :  { %10099 = vmatprep.subr.bf16.mxu0 %v11678_v24 }
 0x91f   :  { %10101 = vmatpush3.bf16.msra.mxu0 %v12362_v39 }
 0x920   :  { %10102 = vmatprep.subr.bf16.mxu0 %v11678_v24 }
 0x923   :  { %10104 = vmatpush3.bf16.msra.mxu0 %v12368_v41 }
 0x924   :  { %10105 = vmatprep.subr.bf16.mxu0 %v11678_v24 }
 0x927   :  { %10107 = vmatpush3.bf16.msra.mxu0 %v12374_v25 }
 0x928   :  { %10108 = vmatprep.subr.bf16.mxu0 %v11678_v24 }
 0x92b   :  { %10110 = vmatpush3.bf16.msra.mxu0 %v12380_v28 }
 0x92c   :  { %10111 = vmatprep.subr.bf16.mxu0 %v11678_v24 }
 0x9e1   :  { %v2662_v51 = vpop.f32.mrb[16].mxu0 }
 0x9e2   :  { %v2666_v56 = vmul.f32 0.001953125, %v2662_v51  ;;  %v9657_v58 = vpop.f32.mrb[17].mxu0 }
 0x9e4   :  { %v2670_v63 = vrot.slane %v2666_v56, %v12084_v37 }
 0x9e6   :  { %v12664_v57 = vsub.f32 %v2579_v54, %v2670_v63  ;;  %v12666_v21 = vsub.f32 %v2580_v8, %v2670_v63  ;;  %v12668_v46 = vsub.f32 %v2581_v40, %v2670_v63  ;;  %v12670_v42 = vsub.f32 %v2582_v35, %v2670_v63  ;;  %v10372_v40 = vld [vmem:[#allocation15 + $0x24] ss:$16 sps:$4 sm:$0xff]   ;;  %v10388_v35 = vld [vmem:[#allocation15 + $0x80] ss:$16 sps:$4 sm:$0xff]  }
 0x9e7   :  { %v2781_v8 = vadd.f32 %v2584_v62, %v2583_v27  ;;  %v12712_v63 = vrot.slane %v12633_v61, %v12162_v20 }
 0x9e8   :  { %v2675_v48 = vmul.f32 %v12664_v57, %v12664_v57  ;;  %v2676_v45 = vmul.f32 %v12666_v21, %v12666_v21  ;;  %v2677_v55 = vmul.f32 %v12668_v46, %v12668_v46  ;;  %v2678_v60 = vmul.f32 %v12670_v42, %v12670_v42 }
 0x9e9   :  { %v2782_v54 = vadd.f32 %v2781_v8, %v2585_v4 }
 0x9ea   :  { %v2679_v52 = vadd.f32 %v2676_v45, %v2675_v48 }
 0x9eb   :  { %v2783_v10 = vadd.f32 %v2782_v54, %v2586_v38 }
 0x9ec   :  { %v2680_v53 = vadd.f32 %v2679_v52, %v2677_v55 }
 0x9ee   :  { %v2681_v23 = vadd.f32 %v2680_v53, %v2678_v60 }
 0x9f0   :  { %v2682_v3 = vrot.slane %v2681_v23, 4 }
 0x9f2   :  { %v2683_v1 = vadd.f32 %v2682_v3, %v2681_v23 }
 0x9f4   :  { %v2684_v33 = vrot.slane %v2683_v1, 2 }
 0x9f6   :  { %v2685_v30 = vadd.f32 %v2684_v33, %v2683_v1 }
 0x9f8   :  { %v2686_v5 = vrot.slane %v2685_v30, 1 }
 0x9fa   :  { %v2687_v6 = vadd.f32 %v2686_v5, %v2685_v30 }
 0x9fc   :  { %9691 = vmatmul.mubr.f32.vlgmr.msra.gmra.mrb[18].mxu0 %v2687_v6 }
 0x9fd   :  { %10113 = vmatpush3.bf16.msra.mxu0 %v12248_v47  ;;  %9725 = vmatprep.mubr.msk.f32.mxu0 %vm11679_vm4, %v11680_v34  ;;  %v2784_v47 = vrot.slane %v2783_v10, 4 }
 0x9fe   :  { %10114 = vmatprep.subr.bf16.mxu0 %v11678_v24 }
 0x9ff   :  { %v2785_v34 = vadd.f32 %v2784_v47, %v2783_v10 }
 0xa01   :  { %10116 = vmatpush3.bf16.msra.mxu0 %v12251_v49  ;;  %v2786_v11 = vrot.slane %v2785_v34, 2 }
 0xa02   :  { %10117 = vmatprep.subr.bf16.mxu0 %v11678_v24 }
 0xa03   :  { %v2787_v49 = vadd.f32 %v2786_v11, %v2785_v34 }
 0xa05   :  { %10119 = vmatpush3.bf16.msra.mxu0 %v12350_v7  ;;  %v2788_v7 = vrot.slane %v2787_v49, 1 }
 0xa06   :  { %10120 = vmatprep.subr.bf16.mxu0 %v11678_v24 }
 0xa09   :  { %10122 = vmatpush3.bf16.msra.mxu0 %v12356_v9  ;;  %v2789_v9 = vadd.f32 %v2788_v7, %v2787_v49 }
 0xa0a   :  { %10123 = vmatprep.subr.bf16.mxu0 %v11678_v24 }
 0xa0d   :  { %10125 = vmatpush3.bf16.msra.mxu0 %v12362_v39  ;;  %v10369_v39 = vld [vmem:[#allocation15 + $0xc] ss:$16 sps:$4 sm:$0xff]  }
 0xa0e   :  { %10126 = vmatprep.subr.bf16.mxu0 %v11678_v24  ;;  %6540 = vmatprep.subr.bf16.mxu1 %v10369_v39 }
 0xa11   :  { %10128 = vmatpush3.bf16.msra.mxu0 %v12368_v41  ;;  %v10370_v41 = vld [vmem:[#allocation15 + $0x20] ss:$16 sps:$4 sm:$0xff]  }
 0xa12   :  { %10129 = vmatprep.subr.bf16.mxu0 %v11678_v24 }
 0xa15   :  { %10131 = vmatpush3.bf16.msra.mxu0 %v12374_v25  ;;  %v10384_v25 = vld [vmem:[#allocation15 + $0x64] ss:$16 sps:$4 sm:$0xff]  }
 0xa16   :  { %10132 = vmatprep.subr.bf16.mxu0 %v11678_v24  ;;  %v10382_v24 = vld [vmem:[#allocation15 + $0x60] ss:$16 sps:$4 sm:$0xff]  }
 0xa19   :  { %10134 = vmatpush3.bf16.msra.mxu0 %v12380_v28  ;;  %v10390_v28 = vld [vmem:[#allocation15 + $0x84] ss:$16 sps:$4 sm:$0xff]  }
 0xa1a   :  { %6212 = vmatprep.subr.bf16.mxu0 %v10366_v32 }
 0xa1c   :  { %9726 = vmatmul.mubr.f32.vlgmr.msra.gmra.mrb[20].mxu0 %v2789_v9 }
 0xa1d   :  { %6213 = vmatpush1.bf16.msra.mxu0 %v10364_v12 }
 0xa1e   :  { %6214 = vmatprep.subr.bf16.mxu0 %v10372_v40 }
 0xa21   :  { %6215 = vmatpush1.bf16.msra.mxu0 %v10370_v41 }
 0xa22   :  { %6216 = vmatprep.subr.bf16.mxu0 %v10378_v26 }
 0xa25   :  { %6217 = vmatpush1.bf16.msra.mxu0 %v10376_v31 }
 0xa26   :  { %6218 = vmatprep.subr.bf16.mxu0 %v10384_v25 }
 0xa29   :  { %6219 = vmatpush1.bf16.msra.mxu0 %v10382_v24 }
 0xa2a   :  { %6220 = vmatprep.subr.bf16.mxu0 %v10390_v28 }
 0xa2d   :  { %6221 = vmatpush1.bf16.msra.mxu0 %v10388_v35 }
 0xa2e   :  { %6222 = vmatprep.subr.bf16.mxu0 %v10396_v44 }
 0xa31   :  { %6223 = vmatpush1.bf16.msra.mxu0 %v10394_v2 }
 0xa32   :  { %6224 = vmatprep.subr.bf16.mxu0 %v10402_v13 }
 0xa35   :  { %6225 = vmatpush1.bf16.msra.mxu0 %v10400_v14 }
 0xa36   :  { %6226 = vmatprep.subr.bf16.mxu0 %v10408_v16 }
 0xa39   :  { %6227 = vmatpush1.bf16.msra.mxu0 %v10406_v19 }
 0xacf   :  { %v2754_v18 = vpop.f32.mrb[18].mxu0 }
 0xad0   :  { %v2758_v50 = vmul.f32 0.001953125, %v2754_v18  ;;  %v9692_v15 = vpop.f32.mrb[19].mxu0 }
 0xad2   :  { %v2759_v29 = vadd.f32 1e-05, %v2758_v50 }
 0xad4   :  { %11332 = vrsqrt.f32 %v2759_v29 }
 0xade   :  { %v11333_v51 = vpop.eup %11332 }
 0xadf   :  { %v2762_v56 = vrot.slane %v11333_v51, 7 }
 0xae1   :  { %v2764_v58 = vmul.f32 %v2762_v56, %v12633_v61 }
 0xae3   :  { %v2768_v48 = vrot.slane %v2764_v58, %v12165_v22 }
 0xae5   :  { %v2769_v45 = vmul.f32 %v2768_v48, %v12664_v57  ;;  %v2770_v55 = vmul.f32 %v2768_v48, %v12666_v21  ;;  %v2771_v52 = vmul.f32 %v2768_v48, %v12668_v46  ;;  %v2772_v60 = vmul.f32 %v2768_v48, %v12670_v42 }
 0xae7   :  { %v12720_v53 = vadd.f32 %v12712_v63, %v2769_v45  ;;  %v12723_v23 = vadd.f32 %v12712_v63, %v2771_v52  ;;  %v2778_v3 = vadd.f32 %v12712_v63, %v2770_v55  ;;  %v2780_v1 = vadd.f32 %v12712_v63, %v2772_v60 }
 0xae9   :  { %v2992_v33 = vrot.slane %v12720_v53, 2  ;;  %v2993_v57 = vrot.slane %v12723_v23, 1  ;;  %v3014_v21 = vrot.slane %v12720_v53, 5  ;;  %v3015_v46 = vrot.slane %v12723_v23, 4 }
 0xaea   :  { %v3006_v42 = vrot.slane %v12720_v53, 4  ;;  %v3007_v6 = vrot.slane %v12723_v23, 3  ;;  %v3030_v8 = vrot.slane %v12720_v53, 7  ;;  %v3031_v54 = vrot.slane %v12723_v23, 6 }
 0xaeb   :  { %v12733_v30 = vsel %vm2976_vm6, %v2993_v57, %v2992_v33  ;;  %v12736_v5 = vsel %vm2976_vm6, %v3015_v46, %v3014_v21  ;;  %v3022_v10 = vrot.slane %v12720_v53, 6  ;;  %v3023_v47 = vrot.slane %v12723_v23, 5  ;;  %v10367_v57 = vld [vmem:[#allocation15 + $0x8] ss:$16 sps:$4 sm:$0xff]   ;;  %v10375_v46 = vld [vmem:[#allocation15 + $0x2c] ss:$16 sps:$4 sm:$0xff]  }
 0xaec   :  { %v3049_v34 = vrot.slane %v2778_v3, 1  ;;  %v12744_v11 = vsel %vm2976_vm6, %v3007_v6, %v3006_v42  ;;  %v3042_v49 = vrot.slane %v2780_v1, 7  ;;  %v3063_v7 = vrot.slane %v2778_v3, 3  ;;  %v10373_v42 = vld [vmem:[#allocation15 + $0x28] ss:$16 sps:$4 sm:$0xff]  }
 0xaed   :  { %v3064_v9 = vrot.slane %v2780_v1, 2  ;;  %v12747_v32 = vsel %vm2976_vm6, %v3031_v54, %v3030_v8  ;;  %v12750_v39 = vsel %vm2976_vm6, %v3023_v47, %v3022_v10  ;;  %v3056_v41 = vrot.slane %v2778_v3, 2  ;;  %v10381_v6 = vld [vmem:[#allocation15 + $0x4c] ss:$16 sps:$4 sm:$0xff]   ;;  %v10379_v8 = vld [vmem:[#allocation15 + $0x48] ss:$16 sps:$4 sm:$0xff]  }
 0xaee   :  { %v12753_v40 = vsel %vm2976_vm6, %v2780_v1, %v3049_v34  ;;  %v12756_v25 = vsel %vm2976_vm6, %v3042_v49, %v2778_v3  ;;  %v3057_v28 = vrot.slane %v2780_v1, 1  ;;  %v3078_v35 = vrot.slane %v2778_v3, 5  ;;  %v10387_v54 = vld [vmem:[#allocation15 + $0x6c] ss:$16 sps:$4 sm:$0xff]   ;;  %v10385_v10 = vld [vmem:[#allocation15 + $0x68] ss:$16 sps:$4 sm:$0xff]  }
 0xaef   :  { %v2856_v12 = vpop.f32.mrb[20].mxu0  ;;  %v12759_v24 = vsel %vm2976_vm6, %v3064_v9, %v3063_v7  ;;  %v3079_v44 = vrot.slane %v2780_v1, 4  ;;  %v3070_v2 = vrot.slane %v2778_v3, 4  ;;  %v3071_v13 = vrot.slane %v2780_v1, 3  ;;  %v10393_v47 = vld [vmem:[#allocation15 + $0x8c] ss:$16 sps:$4 sm:$0xff]  }
 0xaf0   :  { %v2860_v26 = vmul.f32 0.001953125, %v2856_v12  ;;  %v9727_v31 = vpop.f32.mrb[21].mxu0  ;;  %v12763_v16 = vsel %vm2976_vm6, %v3057_v28, %v3056_v41  ;;  %v3094_v19 = vrot.slane %v2778_v3, 7  ;;  %v3095_v18 = vrot.slane %v2780_v1, 6  ;;  %v10391_v34 = vld [vmem:[#allocation15 + $0x88] ss:$16 sps:$4 sm:$0xff]  }
 0xaf1   :  { %v12766_v50 = vsel %vm2976_vm6, %v3079_v44, %v3078_v35  ;;  %v12769_v15 = vsel %vm2976_vm6, %v3071_v13, %v3070_v2  ;;  %v3086_v29 = vrot.slane %v2778_v3, 6  ;;  %v3087_v51 = vrot.slane %v2780_v1, 5  ;;  %v10399_v49 = vld [vmem:[#allocation15 + $0xac] ss:$16 sps:$4 sm:$0xff]   ;;  %v10397_v7 = vld [vmem:[#allocation15 + $0xa8] ss:$16 sps:$4 sm:$0xff]  }
 0xaf2   :  { %v2864_v14 = vrot.slane %v2860_v26, %v12084_v37  ;;  %v12784_v45 = vsel %vm2976_vm6, %v3095_v18, %v3094_v19  ;;  %v10405_v9 = vld [vmem:[#allocation15 + $0xcc] ss:$16 sps:$4 sm:$0xff]   ;;  %v10403_v12 = vld [vmem:[#allocation15 + $0xc8] ss:$16 sps:$4 sm:$0xff]   ;;  %v10414_v31 = vld [vmem:[#allocation15 + $0x104] ss:$16 sps:$4 sm:$0xff]  }
 0xaf3   :  { %v12787_v55 = vsel %vm2976_vm6, %v3087_v51, %v3086_v29  ;;  %v10411_v41 = vld [vmem:[#allocation15 + $0xec] ss:$16 sps:$4 sm:$0xff]   ;;  %v10409_v26 = vld [vmem:[#allocation15 + $0xe8] ss:$16 sps:$4 sm:$0xff]   ;;  %v10412_v35 = vld [vmem:[#allocation15 + $0x100] ss:$16 sps:$4 sm:$0xff]   ;;  %6228 = vmatprep.subr.bf16.mxu0 %v10414_v31 }
 0xaf4   :  { %v12773_v56 = vsub.f32 %v2583_v27, %v2864_v14  ;;  %v12777_v58 = vsub.f32 %v2584_v62, %v2864_v14  ;;  %v12781_v48 = vsub.f32 %v2585_v4, %v2864_v14  ;;  %v12791_v52 = vsub.f32 %v2586_v38, %v2864_v14  ;;  %v10417_v28 = vld [vmem:[#allocation15 + $0x10c] ss:$16 sps:$4 sm:$0xff]   ;;  %v10415_v44 = vld [vmem:[#allocation15 + $0x108] ss:$16 sps:$4 sm:$0xff]   ;;  %6229 = vmatpush1.bf16.msra.mxu0 %v10412_v35  ;;  %v10420_v2 = vld [vmem:[#allocation15 + $0x124] ss:$16 sps:$4 sm:$0xff]  }
 0xaf5   :  { %v10423_v13 = vld [vmem:[#allocation15 + $0x12c] ss:$16 sps:$4 sm:$0xff]   ;;  %v10418_v14 = vld [vmem:[#allocation15 + $0x120] ss:$16 sps:$4 sm:$0xff]   ;;  %v10421_v19 = vld [vmem:[#allocation15 + $0x128] ss:$16 sps:$4 sm:$0xff]   ;;  %6230 = vmatprep.subr.bf16.mxu0 %v10420_v2 }
 0xaf6   :  { %v2869_v59 = vmul.f32 %v12773_v56, %v12773_v56  ;;  %v2870_v43 = vmul.f32 %v12777_v58, %v12777_v58  ;;  %v2871_v17 = vmul.f32 %v12781_v48, %v12781_v48  ;;  %v2872_v27 = vmul.f32 %v12791_v52, %v12791_v52  ;;  %v10426_v18 = vld [vmem:[#allocation15 + $0x144] ss:$16 sps:$4 sm:$0xff]   ;;  %v10429_v29 = vld [vmem:[#allocation15 + $0x14c] ss:$16 sps:$4 sm:$0xff]   ;;  %v10424_v51 = vld [vmem:[#allocation15 + $0x140] ss:$16 sps:$4 sm:$0xff]  }
 0xaf7   :  { %v2985_v35 = vrot.slane %v12720_v53, 1  ;;  %v2975_v2 = vrot.slane %v12723_v23, 7 }
 0xaf8   :  { %v2873_v62 = vadd.f32 %v2870_v43, %v2869_v59  ;;  %6231 = vmatpush1.bf16.msra.mxu0 %v10418_v14  ;;  %v10427_v59 = vld [vmem:[#allocation15 + $0x148] ss:$16 sps:$4 sm:$0xff]   ;;  %v10432_v43 = vld [vmem:[#allocation15 + $0x164] ss:$16 sps:$4 sm:$0xff]   ;;  %v3000_v14 = vrot.slane %v12723_v23, 2 }
 0xaf9   :  { %6232 = vmatprep.subr.bf16.mxu0 %v10426_v18 }
 0xafa   :  { %v2874_v4 = vadd.f32 %v2873_v62, %v2871_v17  ;;  %v10435_v17 = vld [vmem:[#allocation15 + $0x16c] ss:$16 sps:$4 sm:$0xff]   ;;  %v10430_v62 = vld [vmem:[#allocation15 + $0x160] ss:$16 sps:$4 sm:$0xff]  }
 0xafc   :  { %v2875_v60 = vadd.f32 %v2874_v4, %v2872_v27  ;;  %6233 = vmatpush1.bf16.msra.mxu0 %v10424_v51  ;;  %v10433_v27 = vld [vmem:[#allocation15 + $0x168] ss:$16 sps:$4 sm:$0xff]   ;;  %v10438_v4 = vld [vmem:[#allocation15 + $0x184] ss:$16 sps:$4 sm:$0xff]   ;;  %v2986_v51 = vsel %vm2976_vm6, %v12723_v23, %v2985_v35 }
 0xafd   :  { %6234 = vmatprep.subr.bf16.mxu0 %v10432_v43  ;;  %v2977_v43 = vsel %vm2976_vm6, %v2975_v2, %v12720_v53 }
 0xafe   :  { %v2876_v3 = vrot.slane %v2875_v60, 4 }
 0xb00   :  { %v2877_v1 = vadd.f32 %v2876_v3, %v2875_v60  ;;  %6235 = vmatpush1.bf16.msra.mxu0 %v10430_v62  ;;  %v10441_v60 = vld [vmem:[#allocation15 + $0x18c] ss:$16 sps:$4 sm:$0xff]   ;;  %v10436_v3 = vld [vmem:[#allocation15 + $0x180] ss:$16 sps:$4 sm:$0xff]  }
 0xb01   :  { %6236 = vmatprep.subr.bf16.mxu0 %v10438_v4 }
 0xb02   :  { %v2878_v0 = vrot.slane %v2877_v1, 2 }
 0xb04   :  { %v2879_v38 = vadd.f32 %v2878_v0, %v2877_v1  ;;  %v10439_v1 = vld [vmem:[#allocation15 + $0x188] ss:$16 sps:$4 sm:$0xff]   ;;  %6237 = vmatpush1.bf16.msra.mxu0 %v10436_v3  ;;  %v10444_v0 = vld [vmem:[#allocation15 + $0x1a4] ss:$16 sps:$4 sm:$0xff]  }
 0xb05   :  { %6238 = vmatprep.subr.bf16.mxu0 %v10444_v0 }
 0xb06   :  { %v2880_v33 = vrot.slane %v2879_v38, 1 }
 0xb08   :  { %v2881_v21 = vadd.f32 %v2880_v33, %v2879_v38  ;;  %v10447_v38 = vld [vmem:[#allocation15 + $0x1ac] ss:$16 sps:$4 sm:$0xff]   ;;  %v10442_v33 = vld [vmem:[#allocation15 + $0x1a0] ss:$16 sps:$4 sm:$0xff]  }
 0xb09   :  { %6239 = vmatpush1.bf16.msra.mxu0 %v10442_v33 }
 0xb0a   :  { %9761 = vmatmul.mubr.f32.vlgmr.msra.gmra.mrb[24].mxu1 %v2881_v21  ;;  %v10448_v21 = vld [vmem:[#allocation15 + $0x1c0] ss:$16 sps:$4 sm:$0xff]  }
 0xb0b   :  { %6541 = vmatpush1.bf16.msra.mxu1 %v10367_v57  ;;  %v10445_v57 = vld [vmem:[#allocation15 + $0x1a8] ss:$16 sps:$4 sm:$0xff]  }
 0xb0c   :  { %6542 = vmatprep.subr.bf16.mxu1 %v10375_v46  ;;  %v10450_v46 = vld [vmem:[#allocation15 + $0x1c4] ss:$16 sps:$4 sm:$0xff]  }
 0xb0d   :  { %6240 = vmatprep.subr.bf16.mxu0 %v10450_v46 }
 0xb0e   :  { %6241 = vmatpush1.bf16.msra.mxu0 %v10448_v21 }
 0xb0f   :  { %6543 = vmatpush1.bf16.msra.mxu1 %v10373_v42  ;;  %v10451_v42 = vld [vmem:[#allocation15 + $0x1c8] ss:$16 sps:$4 sm:$0xff]  }
 0xb10   :  { %6544 = vmatprep.subr.bf16.mxu1 %v10381_v6  ;;  %v10453_v6 = vld [vmem:[#allocation15 + $0x1cc] ss:$16 sps:$4 sm:$0xff]  }
 0xb13   :  { %6545 = vmatpush1.bf16.msra.mxu1 %v10379_v8  ;;  %v10456_v8 = vld [vmem:[#allocation15 + $0x1e4] ss:$16 sps:$4 sm:$0xff]  }
 0xb14   :  { %6546 = vmatprep.subr.bf16.mxu1 %v10387_v54  ;;  %v10459_v54 = vld [vmem:[#allocation15 + $0x1ec] ss:$16 sps:$4 sm:$0xff]   ;;  %6242 = vmatprep.subr.bf16.mxu0 %v10456_v8  ;;  %v10463_v8 = vld [vmem:[#allocation15 + $0x208] ss:$16 sps:$4 sm:$0xff]  }
 0xb17   :  { %6547 = vmatpush1.bf16.msra.mxu1 %v10385_v10  ;;  %v10454_v10 = vld [vmem:[#allocation15 + $0x1e0] ss:$16 sps:$4 sm:$0xff]  }
 0xb18   :  { %6548 = vmatprep.subr.bf16.mxu1 %v10393_v47  ;;  %v10457_v47 = vld [vmem:[#allocation15 + $0x1e8] ss:$16 sps:$4 sm:$0xff]   ;;  %6243 = vmatpush1.bf16.msra.mxu0 %v10454_v10 }
 0xb1b   :  { %6549 = vmatpush1.bf16.msra.mxu1 %v10391_v34  ;;  %v10462_v34 = vld [vmem:[#allocation15 + $0x204] ss:$16 sps:$4 sm:$0xff]  }
 0xb1c   :  { %6550 = vmatprep.subr.bf16.mxu1 %v10399_v49  ;;  %v10465_v49 = vld [vmem:[#allocation15 + $0x20c] ss:$16 sps:$4 sm:$0xff]   ;;  %6253 = vmatprep.subr.bf16.mxu0 %v10462_v34 }
 0xb1f   :  { %6551 = vmatpush1.bf16.msra.mxu1 %v10397_v7 }
 0xb20   :  { %6552 = vmatprep.subr.bf16.mxu1 %v10405_v9 }
 0xb23   :  { %6553 = vmatpush1.bf16.msra.mxu1 %v10403_v12 }
 0xb24   :  { %6554 = vmatprep.subr.bf16.mxu1 %v10411_v41 }
 0xb27   :  { %6555 = vmatpush1.bf16.msra.mxu1 %v10409_v26 }
 0xb28   :  { %6556 = vmatprep.subr.bf16.mxu1 %v10417_v28 }
 0xb2b   :  { %6557 = vmatpush1.bf16.msra.mxu1 %v10415_v44 }
 0xb2c   :  { %6558 = vmatprep.subr.bf16.mxu1 %v10423_v13  ;;  %v2999_v13 = vrot.slane %v12720_v53, 3 }
 0xb2f   :  { %6559 = vmatpush1.bf16.msra.mxu1 %v10421_v19 }
 0xb30   :  { %6560 = vmatprep.subr.bf16.mxu1 %v10429_v29 }
 0xb33   :  { %6561 = vmatpush1.bf16.msra.mxu1 %v10427_v59 }
 0xb34   :  { %6562 = vmatprep.subr.bf16.mxu1 %v10435_v17 }
 0xb37   :  { %6563 = vmatpush1.bf16.msra.mxu1 %v10433_v27 }
 0xb38   :  { %6564 = vmatprep.subr.bf16.mxu1 %v10441_v60 }
 0xb3b   :  { %6565 = vmatpush1.bf16.msra.mxu1 %v10439_v1 }
 0xb3c   :  { %6566 = vmatprep.subr.bf16.mxu1 %v10447_v38 }
 0xb3f   :  { %6567 = vmatpush1.bf16.msra.mxu1 %v10445_v57 }
 0xb40   :  { %6568 = vmatprep.subr.bf16.mxu1 %v10453_v6  ;;  %v10460_v6 = vld [vmem:[#allocation15 + $0x200] ss:$16 sps:$4 sm:$0xff]  }
 0xb43   :  { %6569 = vmatpush1.bf16.msra.mxu1 %v10451_v42 }
 0xb44   :  { %6570 = vmatprep.subr.bf16.mxu1 %v10459_v54 }
 0xb47   :  { %6571 = vmatpush1.bf16.msra.mxu1 %v10457_v47  ;;  %v10468_v47 = vld [vmem:[#allocation15 + $0x224] ss:$16 sps:$4 sm:$0xff]  }
 0xb48   :  { %6581 = vmatprep.subr.bf16.mxu1 %v10465_v49 }
 0xbdd   :  { %v2948_v7 = vpop.f32.mrb[24].mxu1 }
 0xbde   :  { %v2952_v9 = vmul.f32 0.001953125, %v2948_v7  ;;  %v9762_v12 = vpop.f32.mrb[25].mxu1 }
 0xbe0   :  { %v2953_v41 = vadd.f32 1e-05, %v2952_v9  ;;  %v10471_v9 = vld [vmem:[#allocation15 + $0x22c] ss:$16 sps:$4 sm:$0xff]  }
 0xbe2   :  { %11334 = vrsqrt.f32 %v2953_v41 }
 0xbec   :  { %v11335_v26 = vpop.eup %11334 }
 0xbed   :  { %v2956_v31 = vrot.slane %v11335_v26, 7 }
 0xbef   :  { %v2958_v28 = vmul.f32 %v2956_v31, %v12633_v61 }
 0xbf1   :  { %v2962_v44 = vrot.slane %v2958_v28, %v12165_v22 }
 0xbf3   :  { %v2963_v19 = vmul.f32 %v2962_v44, %v12773_v56  ;;  %v2964_v18 = vmul.f32 %v2962_v44, %v12777_v58  ;;  %v2965_v29 = vmul.f32 %v2962_v44, %v12781_v48  ;;  %v2966_v17 = vmul.f32 %v2962_v44, %v12791_v52  ;;  %v10469_v44 = vld [vmem:[#allocation15 + $0x228] ss:$16 sps:$4 sm:$0xff]  }
 0xbf4   :  { %v3001_v56 = vsel %vm2976_vm6, %v3000_v14, %v2999_v13 }
 0xbf5   :  { %v2967_v61 = vadd.f32 %v2963_v19, %v12712_v63  ;;  %v2969_v59 = vadd.f32 %v2965_v29, %v12712_v63  ;;  %v12818_v62 = vadd.f32 %v2964_v18, %v12712_v63  ;;  %v12832_v42 = vadd.f32 %v2966_v17, %v12712_v63  ;;  %v10474_v19 = vld [vmem:[#allocation15 + $0x244] ss:$16 sps:$4 sm:$0xff]   ;;  %v10477_v18 = vld [vmem:[#allocation15 + $0x24c] ss:$16 sps:$4 sm:$0xff]  }
 0xbf7   :  { %v2987_v58 = vrot.slane %v2967_v61, 7  ;;  %v2989_v48 = vrot.slane %v2969_v59, 6  ;;  %v2978_v27 = vrot.slane %v2967_v61, 6  ;;  %v2981_v23 = vrot.slane %v2969_v59, 5 }
 0xbf8   :  { %v3002_v4 = vrot.slane %v2967_v61, 1  ;;  %v2995_v60 = vsel %vm2979_vm7, %v2967_v61, %v12733_v30  ;;  %v2996_v3 = vrot.slane %v2969_v59, 7  ;;  %v3017_v1 = vrot.slane %v2967_v61, 3 }
 0xbf9   :  { %v2988_v53 = vsel %vm2979_vm7, %v2987_v58, %v2986_v51  ;;  %v2980_v52 = vsel %vm2979_vm7, %v2978_v27, %v2977_v43  ;;  %v3019_v0 = vrot.slane %v2969_v59, 2  ;;  %v3009_v38 = vrot.slane %v2967_v61, 2  ;;  %v10475_v58 = vld [vmem:[#allocation15 + $0x248] ss:$16 sps:$4 sm:$0xff]  }
 0xbfa   :  { %v2990_v33 = vsel %vm2982_vm8, %v2989_v48, %v2988_v53  ;;  %v2983_v57 = vsel %vm2982_vm8, %v2981_v23, %v2980_v52  ;;  %v3003_v21 = vsel %vm2979_vm7, %v3002_v4, %v3001_v56  ;;  %v12829_v46 = vsel %vm2982_vm8, %v2996_v3, %v2995_v60  ;;  %v10483_v4 = vld [vmem:[#allocation15 + $0x26c] ss:$16 sps:$4 sm:$0xff]   ;;  %v10478_v52 = vld [vmem:[#allocation15 + $0x260] ss:$16 sps:$4 sm:$0xff]  }
 0xbfb   :  { %v3103_v30 = vpack.c.bf16 %v2990_v33, %v2990_v33  ;;  %v3102_v54 = vpack.c.bf16 %v2983_v57, %v2983_v57  ;;  %v3004_v10 = vsel %vm2982_vm8, %v2969_v59, %v3003_v21  ;;  %v3018_v34 = vsel %vm2979_vm7, %v3017_v1, %v12736_v5  ;;  %v10481_v33 = vld [vmem:[#allocation15 + $0x268] ss:$16 sps:$4 sm:$0xff]  }
 0xbfc   :  { %v3010_v49 = vsel %vm2979_vm7, %v3009_v38, %v12744_v11  ;;  %v3011_v7 = vrot.slane %v2969_v59, 1  ;;  %v12840_v63 = vsel %vm2982_vm8, %v3019_v0, %v3018_v34  ;;  %v3033_v12 = vrot.slane %v2967_v61, 5  ;;  %v10466_v11 = vld [vmem:[#allocation15 + $0x220] ss:$16 sps:$4 sm:$0xff]  }
 0xbfd   :  { %6244 = vmatprep.mubr.bf16.mxu0 %v3103_v30  ;;  %6572 = vmatprep.mubr.bf16.mxu1 %v3103_v30  ;;  %v3035_v41 = vrot.slane %v2969_v59, 4  ;;  %v3025_v26 = vrot.slane %v2967_v61, 4  ;;  %v3105_v31 = vpack.c.bf16 %v3004_v10, %v3004_v10  ;;  %v3027_v5 = vrot.slane %v2969_v59, 3  ;;  %v10472_v59 = vld [vmem:[#allocation15 + $0x240] ss:$16 sps:$4 sm:$0xff]  }
 0xbfe   :  { %6245 = vmatmul.mubr.bf16.vlgmr.msra.gmra.mrb[24].mxu0 %v3102_v54  ;;  %6573 = vmatmul.mubr.bf16.vlgmr.msra.gmra.mrb[28].mxu1 %v3102_v54  ;;  %v12843_v28 = vsel %vm2982_vm8, %v3011_v7, %v3010_v49  ;;  %v3051_v35 = vrot.slane %v12818_v62, 7  ;;  %v3034_v2 = vsel %vm2979_vm7, %v3033_v12, %v12747_v32  ;;  %v3053_v14 = vrot.slane %v12832_v42, 6  ;;  %v10486_v30 = vld [vmem:[#allocation15 + $0x284] ss:$16 sps:$4 sm:$0xff]   ;;  %v10484_v49 = vld [vmem:[#allocation15 + $0x280] ss:$16 sps:$4 sm:$0xff]  }
 0xbff   :  { %6254 = vmatpush1.bf16.msra.mxu0 %v10460_v6  ;;  %6582 = vmatpush1.bf16.msra.mxu1 %v10463_v8  ;;  %v3026_v13 = vsel %vm2979_vm7, %v3025_v26, %v12750_v39  ;;  %v12852_v29 = vsel %vm2982_vm8, %v3035_v41, %v3034_v2  ;;  %v3044_v32 = vrot.slane %v12818_v62, 6  ;;  %v3046_v17 = vrot.slane %v12832_v42, 5  ;;  %v10489_v6 = vld [vmem:[#allocation15 + $0x28c] ss:$16 sps:$4 sm:$0xff]   ;;  %v10487_v7 = vld [vmem:[#allocation15 + $0x288] ss:$16 sps:$4 sm:$0xff]  }
 0xc00   :  { %6285 = vmatprep.mubr.bf16.mxu0 %v3105_v31  ;;  %6613 = vmatprep.mubr.bf16.mxu1 %v3105_v31  ;;  %v12855_v51 = vsel %vm2982_vm8, %v3027_v5, %v3026_v13  ;;  %v3052_v61 = vsel %vm2979_vm7, %v3051_v35, %v12753_v40  ;;  %v3066_v56 = vrot.slane %v12818_v62, 1  ;;  %v3059_v40 = vsel %vm2979_vm7, %v12818_v62, %v12763_v16  ;;  %v10495_v12 = vld [vmem:[#allocation15 + $0x2ac] ss:$16 sps:$4 sm:$0xff]   ;;  %v10498_v41 = vld [vmem:[#allocation15 + $0x2c4] ss:$16 sps:$4 sm:$0xff]  }
 0xc01   :  { %6255 = vmatprep.subr.bf16.mxu0 %v10468_v47  ;;  %6583 = vmatprep.subr.bf16.mxu1 %v10471_v9  ;;  %v12861_v39 = vsel %vm2982_vm8, %v3053_v14, %v3052_v61  ;;  %v3045_v43 = vsel %vm2979_vm7, %v3044_v32, %v12756_v25  ;;  %v3060_v48 = vrot.slane %v12832_v42, 7  ;;  %v3081_v27 = vrot.slane %v12818_v62, 3  ;;  %v10480_v25 = vld [vmem:[#allocation15 + $0x264] ss:$16 sps:$4 sm:$0xff]   ;;  %v10501_v26 = vld [vmem:[#allocation15 + $0x2cc] ss:$16 sps:$4 sm:$0xff]  }
 0xc02   :  { %v3083_v23 = vrot.slane %v12832_v42, 2  ;;  %v12874_v60 = vsel %vm2982_vm8, %v3046_v17, %v3045_v43  ;;  %v3067_v3 = vsel %vm2979_vm7, %v3066_v56, %v12759_v24  ;;  %v3073_v38 = vrot.slane %v12818_v62, 2  ;;  %v10492_v9 = vld [vmem:[#allocation15 + $0x2a4] ss:$16 sps:$4 sm:$0xff]   ;;  %v10496_v31 = vld [vmem:[#allocation15 + $0x2c0] ss:$16 sps:$4 sm:$0xff]  }
 0xc03   :  { %6256 = vmatpush1.bf16.msra.mxu0 %v10466_v11  ;;  %6584 = vmatpush1.bf16.msra.mxu1 %v10469_v44  ;;  %v12880_v1 = vsel %vm2982_vm8, %v12832_v42, %v3067_v3  ;;  %v12883_v16 = vsel %vm2982_vm8, %v3060_v48, %v3059_v40  ;;  %v3082_v53 = vsel %vm2979_vm7, %v3081_v27, %v12766_v50  ;;  %v3075_v24 = vrot.slane %v12832_v42, 1  ;;  %v10499_v5 = vld [vmem:[#allocation15 + $0x2c8] ss:$16 sps:$4 sm:$0xff]   ;;  %v10507_v35 = vld [vmem:[#allocation15 + $0x2ec] ss:$16 sps:$4 sm:$0xff]  }
 0xc04   :  { %6257 = vmatprep.subr.bf16.mxu0 %v10474_v19  ;;  %6585 = vmatprep.subr.bf16.mxu1 %v10477_v18  ;;  %v12888_v0 = vsel %vm2982_vm8, %v3083_v23, %v3082_v53  ;;  %v3097_v57 = vrot.slane %v12818_v62, 5  ;;  %v3099_v21 = vrot.slane %v12832_v42, 4  ;;  %v3074_v50 = vsel %vm2979_vm7, %v3073_v38, %v12769_v15  ;;  %v10502_v11 = vld [vmem:[#allocation15 + $0x2e0] ss:$16 sps:$4 sm:$0xff]   ;;  %v10505_v44 = vld [vmem:[#allocation15 + $0x2e8] ss:$16 sps:$4 sm:$0xff]  }
 0xc05   :  { %v12897_v8 = vsel %vm2982_vm8, %v3075_v24, %v3074_v50  ;;  %v3089_v10 = vrot.slane %v12818_v62, 4  ;;  %v3091_v47 = vrot.slane %v12832_v42, 3  ;;  %v10490_v62 = vld [vmem:[#allocation15 + $0x2a0] ss:$16 sps:$4 sm:$0xff]   ;;  %v10493_v42 = vld [vmem:[#allocation15 + $0x2a8] ss:$16 sps:$4 sm:$0xff]  }
 0xc06   :  { %v3098_v54 = vsel %vm2979_vm7, %v3097_v57, %v12784_v45  ;;  %v10510_v2 = vld [vmem:[#allocation15 + $0x304] ss:$16 sps:$4 sm:$0xff]   ;;  %v10513_v13 = vld [vmem:[#allocation15 + $0x30c] ss:$16 sps:$4 sm:$0xff]   ;;  %v10508_v14 = vld [vmem:[#allocation15 + $0x300] ss:$16 sps:$4 sm:$0xff]  }
 0xc07   :  { %6258 = vmatpush1.bf16.msra.mxu0 %v10472_v59  ;;  %6586 = vmatpush1.bf16.msra.mxu1 %v10475_v58  ;;  %v12904_v34 = vsel %vm2982_vm8, %v3099_v21, %v3098_v54  ;;  %v3090_v15 = vsel %vm2979_vm7, %v3089_v10, %v12787_v55  ;;  %v10504_v55 = vld [vmem:[#allocation15 + $0x2e4] ss:$16 sps:$4 sm:$0xff]   ;;  %v10511_v19 = vld [vmem:[#allocation15 + $0x308] ss:$16 sps:$4 sm:$0xff]   ;;  %v10519_v61 = vld [vmem:[#allocation15 + $0x32c] ss:$16 sps:$4 sm:$0xff]  }
 0xc08   :  { %6259 = vmatprep.subr.bf16.mxu0 %v10480_v25  ;;  %6587 = vmatprep.subr.bf16.mxu1 %v10483_v4  ;;  %v12909_v45 = vsel %vm2982_vm8, %v3091_v47, %v3090_v15  ;;  %v10516_v18 = vld [vmem:[#allocation15 + $0x324] ss:$16 sps:$4 sm:$0xff]   ;;  %v10514_v32 = vld [vmem:[#allocation15 + $0x320] ss:$16 sps:$4 sm:$0xff]   ;;  %v10517_v59 = vld [vmem:[#allocation15 + $0x328] ss:$16 sps:$4 sm:$0xff]  }
 0xc09   :  { %v10522_v43 = vld [vmem:[#allocation15 + $0x344] ss:$16 sps:$4 sm:$0xff]   ;;  %v10525_v17 = vld [vmem:[#allocation15 + $0x34c] ss:$16 sps:$4 sm:$0xff]   ;;  %v10520_v56 = vld [vmem:[#allocation15 + $0x340] ss:$16 sps:$4 sm:$0xff]  }
 0xc0a   :  { %v10523_v58 = vld [vmem:[#allocation15 + $0x348] ss:$16 sps:$4 sm:$0xff]   ;;  %v10528_v40 = vld [vmem:[#allocation15 + $0x364] ss:$16 sps:$4 sm:$0xff]   ;;  %v10531_v48 = vld [vmem:[#allocation15 + $0x36c] ss:$16 sps:$4 sm:$0xff]  }
 0xc0b   :  { %6260 = vmatpush1.bf16.msra.mxu0 %v10478_v52  ;;  %6588 = vmatpush1.bf16.msra.mxu1 %v10481_v33  ;;  %v10526_v27 = vld [vmem:[#allocation15 + $0x360] ss:$16 sps:$4 sm:$0xff]   ;;  %v10529_v23 = vld [vmem:[#allocation15 + $0x368] ss:$16 sps:$4 sm:$0xff]   ;;  %v10534_v25 = vld [vmem:[#allocation15 + $0x384] ss:$16 sps:$4 sm:$0xff]  }
 0xc0c   :  { %6261 = vmatprep.subr.bf16.mxu0 %v10486_v30  ;;  %6589 = vmatprep.subr.bf16.mxu1 %v10489_v6  ;;  %v10537_v4 = vld [vmem:[#allocation15 + $0x38c] ss:$16 sps:$4 sm:$0xff]   ;;  %v10532_v3 = vld [vmem:[#allocation15 + $0x380] ss:$16 sps:$4 sm:$0xff]   ;;  %v10535_v53 = vld [vmem:[#allocation15 + $0x388] ss:$16 sps:$4 sm:$0xff]  }
 0xc0d   :  { %v10540_v52 = vld [vmem:[#allocation15 + $0x3a4] ss:$16 sps:$4 sm:$0xff]   ;;  %v10543_v38 = vld [vmem:[#allocation15 + $0x3ac] ss:$16 sps:$4 sm:$0xff]   ;;  %v10538_v33 = vld [vmem:[#allocation15 + $0x3a0] ss:$16 sps:$4 sm:$0xff]  }
 0xc0e   :  { %v10541_v24 = vld [vmem:[#allocation15 + $0x3a8] ss:$16 sps:$4 sm:$0xff]   ;;  %v10546_v57 = vld [vmem:[#allocation15 + $0x3c4] ss:$16 sps:$4 sm:$0xff]   ;;  %v10549_v21 = vld [vmem:[#allocation15 + $0x3cc] ss:$16 sps:$4 sm:$0xff]  }
 0xc0f   :  { %6262 = vmatpush1.bf16.msra.mxu0 %v10484_v49  ;;  %6590 = vmatpush1.bf16.msra.mxu1 %v10487_v7  ;;  %v10544_v30 = vld [vmem:[#allocation15 + $0x3c0] ss:$16 sps:$4 sm:$0xff]   ;;  %v10547_v6 = vld [vmem:[#allocation15 + $0x3c8] ss:$16 sps:$4 sm:$0xff]   ;;  %v10552_v50 = vld [vmem:[#allocation15 + $0x3e4] ss:$16 sps:$4 sm:$0xff]  }
 0xc10   :  { %6263 = vmatprep.subr.bf16.mxu0 %v10492_v9  ;;  %6591 = vmatprep.subr.bf16.mxu1 %v10495_v12  ;;  %v10555_v54 = vld [vmem:[#allocation15 + $0x3ec] ss:$16 sps:$4 sm:$0xff]   ;;  %v10550_v10 = vld [vmem:[#allocation15 + $0x3e0] ss:$16 sps:$4 sm:$0xff]   ;;  %v10553_v47 = vld [vmem:[#allocation15 + $0x3e8] ss:$16 sps:$4 sm:$0xff]   ;;  %v3104_v9 = vpack.c.bf16 %v12829_v46, %v12829_v46 }
 0xc11   :  { %v10558_v49 = vld [vmem:[#allocation15 + $0x404] ss:$16 sps:$4 sm:$0xff]   ;;  %v10561_v7 = vld [vmem:[#allocation15 + $0x40c] ss:$16 sps:$4 sm:$0xff]   ;;  %v10556_v15 = vld [vmem:[#allocation15 + $0x400] ss:$16 sps:$4 sm:$0xff]  }
 0xc12   :  { %v10559_v12 = vld [vmem:[#allocation15 + $0x408] ss:$16 sps:$4 sm:$0xff]   ;;  %v10573_v46 = vld [vmem:[#allocation15 + $0x44c] ss:$16 sps:$4 sm:$0xff]  }
 0xc13   :  { %6264 = vmatpush1.bf16.msra.mxu0 %v10490_v62  ;;  %6592 = vmatpush1.bf16.msra.mxu1 %v10493_v42  ;;  %v3107_v62 = vpack.c.bf16 %v12840_v63, %v12840_v63  ;;  %v10564_v42 = vld [vmem:[#allocation15 + $0x424] ss:$16 sps:$4 sm:$0xff]  }
 0xc14   :  { %6265 = vmatprep.subr.bf16.mxu0 %v10498_v41  ;;  %6593 = vmatprep.subr.bf16.mxu1 %v10501_v26  ;;  %v10567_v41 = vld [vmem:[#allocation15 + $0x42c] ss:$16 sps:$4 sm:$0xff]   ;;  %v10562_v26 = vld [vmem:[#allocation15 + $0x420] ss:$16 sps:$4 sm:$0xff]   ;;  %v10576_v63 = vld [vmem:[#allocation15 + $0x464] ss:$16 sps:$4 sm:$0xff]  }
 0xc17   :  { %6266 = vmatpush1.bf16.msra.mxu0 %v10496_v31  ;;  %6594 = vmatpush1.bf16.msra.mxu1 %v10499_v5  ;;  %v10565_v31 = vld [vmem:[#allocation15 + $0x428] ss:$16 sps:$4 sm:$0xff]   ;;  %v10570_v5 = vld [vmem:[#allocation15 + $0x444] ss:$16 sps:$4 sm:$0xff]  }
 0xc18   :  { %6267 = vmatprep.subr.bf16.mxu0 %v10504_v55  ;;  %6595 = vmatprep.subr.bf16.mxu1 %v10507_v35  ;;  %v10568_v55 = vld [vmem:[#allocation15 + $0x440] ss:$16 sps:$4 sm:$0xff]   ;;  %v10571_v35 = vld [vmem:[#allocation15 + $0x448] ss:$16 sps:$4 sm:$0xff]  }
 0xc1b   :  { %6268 = vmatpush1.bf16.msra.mxu0 %v10502_v11  ;;  %6596 = vmatpush1.bf16.msra.mxu1 %v10505_v44  ;;  %v10579_v11 = vld [vmem:[#allocation15 + $0x46c] ss:$16 sps:$4 sm:$0xff]   ;;  %v10574_v44 = vld [vmem:[#allocation15 + $0x460] ss:$16 sps:$4 sm:$0xff]  }
 0xc1c   :  { %6269 = vmatprep.subr.bf16.mxu0 %v10510_v2  ;;  %6597 = vmatprep.subr.bf16.mxu1 %v10513_v13  ;;  %v10577_v2 = vld [vmem:[#allocation15 + $0x468] ss:$16 sps:$4 sm:$0xff]   ;;  %v10582_v13 = vld [vmem:[#allocation15 + $0x484] ss:$16 sps:$4 sm:$0xff]  }
 0xc1f   :  { %6270 = vmatpush1.bf16.msra.mxu0 %v10508_v14  ;;  %6598 = vmatpush1.bf16.msra.mxu1 %v10511_v19  ;;  %v10585_v14 = vld [vmem:[#allocation15 + $0x48c] ss:$16 sps:$4 sm:$0xff]   ;;  %v10580_v19 = vld [vmem:[#allocation15 + $0x480] ss:$16 sps:$4 sm:$0xff]  }
 0xc20   :  { %6271 = vmatprep.subr.bf16.mxu0 %v10516_v18  ;;  %6599 = vmatprep.subr.bf16.mxu1 %v10519_v61  ;;  %v10583_v18 = vld [vmem:[#allocation15 + $0x488] ss:$16 sps:$4 sm:$0xff]   ;;  %v10588_v61 = vld [vmem:[#allocation15 + $0x4a4] ss:$16 sps:$4 sm:$0xff]  }
 0xc23   :  { %6272 = vmatpush1.bf16.msra.mxu0 %v10514_v32  ;;  %6600 = vmatpush1.bf16.msra.mxu1 %v10517_v59  ;;  %v10591_v32 = vld [vmem:[#allocation15 + $0x4ac] ss:$16 sps:$4 sm:$0xff]   ;;  %v10586_v59 = vld [vmem:[#allocation15 + $0x4a0] ss:$16 sps:$4 sm:$0xff]  }
 0xc24   :  { %6273 = vmatprep.subr.bf16.mxu0 %v10522_v43  ;;  %6601 = vmatprep.subr.bf16.mxu1 %v10525_v17  ;;  %v10589_v43 = vld [vmem:[#allocation15 + $0x4a8] ss:$16 sps:$4 sm:$0xff]   ;;  %v10594_v17 = vld [vmem:[#allocation15 + $0x4c4] ss:$16 sps:$4 sm:$0xff]  }
 0xc27   :  { %6274 = vmatpush1.bf16.msra.mxu0 %v10520_v56  ;;  %6602 = vmatpush1.bf16.msra.mxu1 %v10523_v58  ;;  %v10597_v56 = vld [vmem:[#allocation15 + $0x4cc] ss:$16 sps:$4 sm:$0xff]   ;;  %v10592_v58 = vld [vmem:[#allocation15 + $0x4c0] ss:$16 sps:$4 sm:$0xff]  }
 0xc28   :  { %6275 = vmatprep.subr.bf16.mxu0 %v10528_v40  ;;  %6603 = vmatprep.subr.bf16.mxu1 %v10531_v48  ;;  %v10595_v40 = vld [vmem:[#allocation15 + $0x4c8] ss:$16 sps:$4 sm:$0xff]   ;;  %v10600_v48 = vld [vmem:[#allocation15 + $0x4e4] ss:$16 sps:$4 sm:$0xff]  }
 0xc2b   :  { %6276 = vmatpush1.bf16.msra.mxu0 %v10526_v27  ;;  %6604 = vmatpush1.bf16.msra.mxu1 %v10529_v23  ;;  %v10603_v27 = vld [vmem:[#allocation15 + $0x4ec] ss:$16 sps:$4 sm:$0xff]   ;;  %v10598_v23 = vld [vmem:[#allocation15 + $0x4e0] ss:$16 sps:$4 sm:$0xff]  }
 0xc2c   :  { %6277 = vmatprep.subr.bf16.mxu0 %v10534_v25  ;;  %6605 = vmatprep.subr.bf16.mxu1 %v10537_v4  ;;  %v10601_v25 = vld [vmem:[#allocation15 + $0x4e8] ss:$16 sps:$4 sm:$0xff]   ;;  %v10606_v4 = vld [vmem:[#allocation15 + $0x504] ss:$16 sps:$4 sm:$0xff]  }
 0xc2f   :  { %6278 = vmatpush1.bf16.msra.mxu0 %v10532_v3  ;;  %6606 = vmatpush1.bf16.msra.mxu1 %v10535_v53  ;;  %v10609_v3 = vld [vmem:[#allocation15 + $0x50c] ss:$16 sps:$4 sm:$0xff]   ;;  %v10604_v53 = vld [vmem:[#allocation15 + $0x500] ss:$16 sps:$4 sm:$0xff]  }
 0xc30   :  { %6279 = vmatprep.subr.bf16.mxu0 %v10540_v52  ;;  %6607 = vmatprep.subr.bf16.mxu1 %v10543_v38  ;;  %v10607_v52 = vld [vmem:[#allocation15 + $0x508] ss:$16 sps:$4 sm:$0xff]   ;;  %v10612_v38 = vld [vmem:[#allocation15 + $0x524] ss:$16 sps:$4 sm:$0xff]  }
 0xc33   :  { %6280 = vmatpush1.bf16.msra.mxu0 %v10538_v33  ;;  %6608 = vmatpush1.bf16.msra.mxu1 %v10541_v24  ;;  %v10615_v33 = vld [vmem:[#allocation15 + $0x52c] ss:$16 sps:$4 sm:$0xff]   ;;  %v10610_v24 = vld [vmem:[#allocation15 + $0x520] ss:$16 sps:$4 sm:$0xff]  }
 0xc34   :  { %6281 = vmatprep.subr.bf16.mxu0 %v10546_v57  ;;  %6609 = vmatprep.subr.bf16.mxu1 %v10549_v21  ;;  %v10613_v57 = vld [vmem:[#allocation15 + $0x528] ss:$16 sps:$4 sm:$0xff]   ;;  %v10618_v21 = vld [vmem:[#allocation15 + $0x544] ss:$16 sps:$4 sm:$0xff]  }
 0xc37   :  { %6282 = vmatpush1.bf16.msra.mxu0 %v10544_v30  ;;  %6610 = vmatpush1.bf16.msra.mxu1 %v10547_v6  ;;  %v10621_v30 = vld [vmem:[#allocation15 + $0x54c] ss:$16 sps:$4 sm:$0xff]   ;;  %v10616_v6 = vld [vmem:[#allocation15 + $0x540] ss:$16 sps:$4 sm:$0xff]  }
 0xc38   :  { %6283 = vmatprep.subr.bf16.mxu0 %v10552_v50  ;;  %6611 = vmatprep.subr.bf16.mxu1 %v10555_v54  ;;  %v10619_v50 = vld [vmem:[#allocation15 + $0x548] ss:$16 sps:$4 sm:$0xff]   ;;  %v10624_v54 = vld [vmem:[#allocation15 + $0x564] ss:$16 sps:$4 sm:$0xff]  }
 0xc3b   :  { %6284 = vmatpush1.bf16.msra.mxu0 %v10550_v10  ;;  %6612 = vmatpush1.bf16.msra.mxu1 %v10553_v47  ;;  %v10627_v10 = vld [vmem:[#allocation15 + $0x56c] ss:$16 sps:$4 sm:$0xff]   ;;  %v10622_v47 = vld [vmem:[#allocation15 + $0x560] ss:$16 sps:$4 sm:$0xff]  }
 0xc3c   :  { %6294 = vmatprep.subr.bf16.mxu0 %v10558_v49  ;;  %6622 = vmatprep.subr.bf16.mxu1 %v10561_v7  ;;  %v10625_v49 = vld [vmem:[#allocation15 + $0x568] ss:$16 sps:$4 sm:$0xff]   ;;  %v10630_v7 = vld [vmem:[#allocation15 + $0x584] ss:$16 sps:$4 sm:$0xff]  }
 0xc3e   :  { %6286 = vmatmul.mubr.bf16.vlgmr.msra.gmra.mrb[24].mxu0 %v3104_v9  ;;  %6614 = vmatmul.mubr.bf16.vlgmr.msra.gmra.mrb[28].mxu1 %v3104_v9  ;;  %v10628_v9 = vld [vmem:[#allocation15 + $0x580] ss:$16 sps:$4 sm:$0xff]  }
 0xc3f   :  { %6295 = vmatpush1.bf16.msra.mxu0 %v10556_v15  ;;  %6326 = vmatprep.mubr.bf16.mxu0 %v3107_v62  ;;  %v10633_v15 = vld [vmem:[#allocation15 + $0x58c] ss:$16 sps:$4 sm:$0xff]  }
 0xc40   :  { %6623 = vmatpush1.bf16.msra.mxu1 %v10559_v12  ;;  %6654 = vmatprep.mubr.bf16.mxu1 %v3107_v62  ;;  %v10631_v12 = vld [vmem:[#allocation15 + $0x588] ss:$16 sps:$4 sm:$0xff]   ;;  %v10636_v62 = vld [vmem:[#allocation15 + $0x5a4] ss:$16 sps:$4 sm:$0xff]  }
 0xc41   :  { %6296 = vmatprep.subr.bf16.mxu0 %v10564_v42  ;;  %6624 = vmatprep.subr.bf16.mxu1 %v10567_v41  ;;  %v10639_v42 = vld [vmem:[#allocation15 + $0x5ac] ss:$16 sps:$4 sm:$0xff]   ;;  %v10634_v41 = vld [vmem:[#allocation15 + $0x5a0] ss:$16 sps:$4 sm:$0xff]  }
 0xc43   :  { %6297 = vmatpush1.bf16.msra.mxu0 %v10562_v26  ;;  %v10637_v26 = vld [vmem:[#allocation15 + $0x5a8] ss:$16 sps:$4 sm:$0xff]  }
 0xc44   :  { %6625 = vmatpush1.bf16.msra.mxu1 %v10565_v31  ;;  %6298 = vmatprep.subr.bf16.mxu0 %v10570_v5  ;;  %v10642_v31 = vld [vmem:[#allocation15 + $0x5c4] ss:$16 sps:$4 sm:$0xff]   ;;  %v10645_v5 = vld [vmem:[#allocation15 + $0x5cc] ss:$16 sps:$4 sm:$0xff]  }
 0xc45   :  { %6626 = vmatprep.subr.bf16.mxu1 %v10573_v46  ;;  %v10640_v46 = vld [vmem:[#allocation15 + $0x5c0] ss:$16 sps:$4 sm:$0xff]  }
 0xc47   :  { %6299 = vmatpush1.bf16.msra.mxu0 %v10568_v55  ;;  %v10643_v55 = vld [vmem:[#allocation15 + $0x5c8] ss:$16 sps:$4 sm:$0xff]  }
 0xc48   :  { %6627 = vmatpush1.bf16.msra.mxu1 %v10571_v35  ;;  %6300 = vmatprep.subr.bf16.mxu0 %v10576_v63  ;;  %v10648_v35 = vld [vmem:[#allocation15 + $0x5e4] ss:$16 sps:$4 sm:$0xff]   ;;  %v10651_v63 = vld [vmem:[#allocation15 + $0x5ec] ss:$16 sps:$4 sm:$0xff]  }
 0xc49   :  { %6628 = vmatprep.subr.bf16.mxu1 %v10579_v11  ;;  %v10646_v11 = vld [vmem:[#allocation15 + $0x5e0] ss:$16 sps:$4 sm:$0xff]  }
 0xc4b   :  { %6301 = vmatpush1.bf16.msra.mxu0 %v10574_v44  ;;  %v10649_v44 = vld [vmem:[#allocation15 + $0x5e8] ss:$16 sps:$4 sm:$0xff]  }
 0xc4c   :  { %6629 = vmatpush1.bf16.msra.mxu1 %v10577_v2  ;;  %6302 = vmatprep.subr.bf16.mxu0 %v10582_v13  ;;  %v10654_v2 = vld [vmem:[#allocation15 + $0x604] ss:$16 sps:$4 sm:$0xff]   ;;  %v10657_v13 = vld [vmem:[#allocation15 + $0x60c] ss:$16 sps:$4 sm:$0xff]  }
 0xc4d   :  { %6630 = vmatprep.subr.bf16.mxu1 %v10585_v14  ;;  %v10652_v14 = vld [vmem:[#allocation15 + $0x600] ss:$16 sps:$4 sm:$0xff]  }
 0xc4f   :  { %6303 = vmatpush1.bf16.msra.mxu0 %v10580_v19  ;;  %v3106_v19 = vpack.c.bf16 %v12843_v28, %v12843_v28  ;;  %v10664_v28 = vld [vmem:[#allocation15 + $0x640] ss:$16 sps:$4 sm:$0xff]  }
 0xc50   :  { %6631 = vmatpush1.bf16.msra.mxu1 %v10583_v18  ;;  %6304 = vmatprep.subr.bf16.mxu0 %v10588_v61  ;;  %v10655_v18 = vld [vmem:[#allocation15 + $0x608] ss:$16 sps:$4 sm:$0xff]   ;;  %v10660_v61 = vld [vmem:[#allocation15 + $0x624] ss:$16 sps:$4 sm:$0xff]  }
 0xc51   :  { %6632 = vmatprep.subr.bf16.mxu1 %v10591_v32  ;;  %v3109_v32 = vpack.c.bf16 %v12852_v29, %v12852_v29  ;;  %v10675_v29 = vld [vmem:[#allocation15 + $0x66c] ss:$16 sps:$4 sm:$0xff]  }
 0xc53   :  { %6305 = vmatpush1.bf16.msra.mxu0 %v10586_v59  ;;  %v10663_v59 = vld [vmem:[#allocation15 + $0x62c] ss:$16 sps:$4 sm:$0xff]  }
 0xc54   :  { %6633 = vmatpush1.bf16.msra.mxu1 %v10589_v43  ;;  %6306 = vmatprep.subr.bf16.mxu0 %v10594_v17  ;;  %v10658_v43 = vld [vmem:[#allocation15 + $0x620] ss:$16 sps:$4 sm:$0xff]   ;;  %v10661_v17 = vld [vmem:[#allocation15 + $0x628] ss:$16 sps:$4 sm:$0xff]  }
 0xc55   :  { %6634 = vmatprep.subr.bf16.mxu1 %v10597_v56  ;;  %v10666_v56 = vld [vmem:[#allocation15 + $0x644] ss:$16 sps:$4 sm:$0xff]  }
 0xc57   :  { %6307 = vmatpush1.bf16.msra.mxu0 %v10592_v58  ;;  %v10669_v58 = vld [vmem:[#allocation15 + $0x64c] ss:$16 sps:$4 sm:$0xff]  }
 0xc58   :  { %6635 = vmatpush1.bf16.msra.mxu1 %v10595_v40  ;;  %6308 = vmatprep.subr.bf16.mxu0 %v10600_v48  ;;  %v10667_v40 = vld [vmem:[#allocation15 + $0x648] ss:$16 sps:$4 sm:$0xff]   ;;  %v10672_v48 = vld [vmem:[#allocation15 + $0x664] ss:$16 sps:$4 sm:$0xff]  }
 0xc59   :  { %6636 = vmatprep.subr.bf16.mxu1 %v10603_v27  ;;  %v10670_v27 = vld [vmem:[#allocation15 + $0x660] ss:$16 sps:$4 sm:$0xff]  }
 0xc5b   :  { %6309 = vmatpush1.bf16.msra.mxu0 %v10598_v23  ;;  %v10673_v23 = vld [vmem:[#allocation15 + $0x668] ss:$16 sps:$4 sm:$0xff]  }
 0xc5c   :  { %6637 = vmatpush1.bf16.msra.mxu1 %v10601_v25  ;;  %6310 = vmatprep.subr.bf16.mxu0 %v10606_v4  ;;  %v10678_v25 = vld [vmem:[#allocation15 + $0x684] ss:$16 sps:$4 sm:$0xff]   ;;  %v10681_v4 = vld [vmem:[#allocation15 + $0x68c] ss:$16 sps:$4 sm:$0xff]  }
 0xc5d   :  { %6638 = vmatprep.subr.bf16.mxu1 %v10609_v3  ;;  %v10676_v3 = vld [vmem:[#allocation15 + $0x680] ss:$16 sps:$4 sm:$0xff]  }
 0xc5f   :  { %6311 = vmatpush1.bf16.msra.mxu0 %v10604_v53  ;;  %v10679_v53 = vld [vmem:[#allocation15 + $0x688] ss:$16 sps:$4 sm:$0xff]  }
 0xc60   :  { %6639 = vmatpush1.bf16.msra.mxu1 %v10607_v52  ;;  %6312 = vmatprep.subr.bf16.mxu0 %v10612_v38  ;;  %v10684_v52 = vld [vmem:[#allocation15 + $0x6a4] ss:$16 sps:$4 sm:$0xff]   ;;  %v10687_v38 = vld [vmem:[#allocation15 + $0x6ac] ss:$16 sps:$4 sm:$0xff]  }
 0xc61   :  { %6640 = vmatprep.subr.bf16.mxu1 %v10615_v33  ;;  %v10682_v33 = vld [vmem:[#allocation15 + $0x6a0] ss:$16 sps:$4 sm:$0xff]  }
 0xc63   :  { %6313 = vmatpush1.bf16.msra.mxu0 %v10610_v24  ;;  %v10685_v24 = vld [vmem:[#allocation15 + $0x6a8] ss:$16 sps:$4 sm:$0xff]  }
 0xc64   :  { %6641 = vmatpush1.bf16.msra.mxu1 %v10613_v57  ;;  %6314 = vmatprep.subr.bf16.mxu0 %v10618_v21  ;;  %v10690_v57 = vld [vmem:[#allocation15 + $0x6c4] ss:$16 sps:$4 sm:$0xff]   ;;  %v10693_v21 = vld [vmem:[#allocation15 + $0x6cc] ss:$16 sps:$4 sm:$0xff]  }
 0xc65   :  { %6642 = vmatprep.subr.bf16.mxu1 %v10621_v30  ;;  %v10688_v30 = vld [vmem:[#allocation15 + $0x6c0] ss:$16 sps:$4 sm:$0xff]  }
 0xc67   :  { %6315 = vmatpush1.bf16.msra.mxu0 %v10616_v6  ;;  %v10691_v6 = vld [vmem:[#allocation15 + $0x6c8] ss:$16 sps:$4 sm:$0xff]  }
 0xc68   :  { %6643 = vmatpush1.bf16.msra.mxu1 %v10619_v50  ;;  %6316 = vmatprep.subr.bf16.mxu0 %v10624_v54  ;;  %v10696_v50 = vld [vmem:[#allocation15 + $0x6e4] ss:$16 sps:$4 sm:$0xff]   ;;  %v10699_v54 = vld [vmem:[#allocation15 + $0x6ec] ss:$16 sps:$4 sm:$0xff]  }
 0xc69   :  { %6644 = vmatprep.subr.bf16.mxu1 %v10627_v10  ;;  %v10694_v10 = vld [vmem:[#allocation15 + $0x6e0] ss:$16 sps:$4 sm:$0xff]  }
 0xc6b   :  { %6317 = vmatpush1.bf16.msra.mxu0 %v10622_v47  ;;  %v10697_v47 = vld [vmem:[#allocation15 + $0x6e8] ss:$16 sps:$4 sm:$0xff]  }
 0xc6c   :  { %6645 = vmatpush1.bf16.msra.mxu1 %v10625_v49  ;;  %6318 = vmatprep.subr.bf16.mxu0 %v10630_v7  ;;  %v10702_v49 = vld [vmem:[#allocation15 + $0x704] ss:$16 sps:$4 sm:$0xff]   ;;  %v10705_v7 = vld [vmem:[#allocation15 + $0x70c] ss:$16 sps:$4 sm:$0xff]  }
 0xc6d   :  { %6646 = vmatprep.subr.bf16.mxu1 %v10633_v15  ;;  %v10700_v15 = vld [vmem:[#allocation15 + $0x700] ss:$16 sps:$4 sm:$0xff]  }
 0xc6f   :  { %6319 = vmatpush1.bf16.msra.mxu0 %v10628_v9  ;;  %v10703_v9 = vld [vmem:[#allocation15 + $0x708] ss:$16 sps:$4 sm:$0xff]  }
 0xc70   :  { %6647 = vmatpush1.bf16.msra.mxu1 %v10631_v12  ;;  %6320 = vmatprep.subr.bf16.mxu0 %v10636_v62  ;;  %v10708_v12 = vld [vmem:[#allocation15 + $0x724] ss:$16 sps:$4 sm:$0xff]   ;;  %v10711_v62 = vld [vmem:[#allocation15 + $0x72c] ss:$16 sps:$4 sm:$0xff]  }
 0xc71   :  { %6648 = vmatprep.subr.bf16.mxu1 %v10639_v42  ;;  %v10706_v42 = vld [vmem:[#allocation15 + $0x720] ss:$16 sps:$4 sm:$0xff]  }
 0xc73   :  { %6321 = vmatpush1.bf16.msra.mxu0 %v10634_v41  ;;  %v10709_v41 = vld [vmem:[#allocation15 + $0x728] ss:$16 sps:$4 sm:$0xff]  }
 0xc74   :  { %6649 = vmatpush1.bf16.msra.mxu1 %v10637_v26  ;;  %6322 = vmatprep.subr.bf16.mxu0 %v10642_v31  ;;  %v10714_v26 = vld [vmem:[#allocation15 + $0x744] ss:$16 sps:$4 sm:$0xff]   ;;  %v10717_v31 = vld [vmem:[#allocation15 + $0x74c] ss:$16 sps:$4 sm:$0xff]  }
 0xc75   :  { %6650 = vmatprep.subr.bf16.mxu1 %v10645_v5  ;;  %v10712_v5 = vld [vmem:[#allocation15 + $0x740] ss:$16 sps:$4 sm:$0xff]  }
 0xc77   :  { %6323 = vmatpush1.bf16.msra.mxu0 %v10640_v46  ;;  %v10715_v46 = vld [vmem:[#allocation15 + $0x748] ss:$16 sps:$4 sm:$0xff]  }
 0xc78   :  { %6651 = vmatpush1.bf16.msra.mxu1 %v10643_v55  ;;  %6324 = vmatprep.subr.bf16.mxu0 %v10648_v35  ;;  %v10720_v55 = vld [vmem:[#allocation15 + $0x764] ss:$16 sps:$4 sm:$0xff]   ;;  %v10723_v35 = vld [vmem:[#allocation15 + $0x76c] ss:$16 sps:$4 sm:$0xff]  }
 0xc79   :  { %6652 = vmatprep.subr.bf16.mxu1 %v10651_v63  ;;  %v10718_v63 = vld [vmem:[#allocation15 + $0x760] ss:$16 sps:$4 sm:$0xff]  }
 0xc7b   :  { %6325 = vmatpush1.bf16.msra.mxu0 %v10646_v11  ;;  %v10721_v11 = vld [vmem:[#allocation15 + $0x768] ss:$16 sps:$4 sm:$0xff]  }
 0xc7c   :  { %6653 = vmatpush1.bf16.msra.mxu1 %v10649_v44  ;;  %6335 = vmatprep.subr.bf16.mxu0 %v10654_v2  ;;  %v10726_v44 = vld [vmem:[#allocation15 + $0x784] ss:$16 sps:$4 sm:$0xff]   ;;  %v10729_v2 = vld [vmem:[#allocation15 + $0x78c] ss:$16 sps:$4 sm:$0xff]  }
 0xc7d   :  { %6663 = vmatprep.subr.bf16.mxu1 %v10657_v13  ;;  %v10724_v13 = vld [vmem:[#allocation15 + $0x780] ss:$16 sps:$4 sm:$0xff]  }
 0xc7e   :  { %6327 = vmatmul.mubr.bf16.vlgmr.msra.gmra.mrb[24].mxu0 %v3106_v19 }
 0xc7f   :  { %6655 = vmatmul.mubr.bf16.vlgmr.msra.gmra.mrb[28].mxu1 %v3106_v19  ;;  %6336 = vmatpush1.bf16.msra.mxu0 %v10652_v14  ;;  %v10727_v14 = vld [vmem:[#allocation15 + $0x788] ss:$16 sps:$4 sm:$0xff]   ;;  %v10732_v19 = vld [vmem:[#allocation15 + $0x7a4] ss:$16 sps:$4 sm:$0xff]  }
 0xc80   :  { %6367 = vmatprep.mubr.bf16.mxu0 %v3109_v32  ;;  %6664 = vmatpush1.bf16.msra.mxu1 %v10655_v18  ;;  %v10735_v18 = vld [vmem:[#allocation15 + $0x7ac] ss:$16 sps:$4 sm:$0xff]  }
 0xc81   :  { %6695 = vmatprep.mubr.bf16.mxu1 %v3109_v32  ;;  %6337 = vmatprep.subr.bf16.mxu0 %v10660_v61  ;;  %v10730_v61 = vld [vmem:[#allocation15 + $0x7a0] ss:$16 sps:$4 sm:$0xff]   ;;  %v10733_v32 = vld [vmem:[#allocation15 + $0x7a8] ss:$16 sps:$4 sm:$0xff]  }
 0xc82   :  { %6665 = vmatprep.subr.bf16.mxu1 %v10663_v59  ;;  %v10738_v59 = vld [vmem:[#allocation15 + $0x7c4] ss:$16 sps:$4 sm:$0xff]  }
 0xc83   :  { %6338 = vmatpush1.bf16.msra.mxu0 %v10658_v43  ;;  %v10741_v43 = vld [vmem:[#allocation15 + $0x7cc] ss:$16 sps:$4 sm:$0xff]  }
 0xc84   :  { %6666 = vmatpush1.bf16.msra.mxu1 %v10661_v17  ;;  %6339 = vmatprep.subr.bf16.mxu0 %v10666_v56  ;;  %v10736_v17 = vld [vmem:[#allocation15 + $0x7c0] ss:$16 sps:$4 sm:$0xff]   ;;  %v10739_v56 = vld [vmem:[#allocation15 + $0x7c8] ss:$16 sps:$4 sm:$0xff]  }
 0xc85   :  { %6667 = vmatprep.subr.bf16.mxu1 %v10669_v58  ;;  %v10744_v58 = vld [vmem:[#allocation15 + $0x7e4] ss:$16 sps:$4 sm:$0xff]  }
 0xc87   :  { %6340 = vmatpush1.bf16.msra.mxu0 %v10664_v28  ;;  %v10747_v28 = vld [vmem:[#allocation15 + $0x7ec] ss:$16 sps:$4 sm:$0xff]  }
 0xc88   :  { %6668 = vmatpush1.bf16.msra.mxu1 %v10667_v40  ;;  %6341 = vmatprep.subr.bf16.mxu0 %v10672_v48  ;;  %v10742_v40 = vld [vmem:[#allocation15 + $0x7e0] ss:$16 sps:$4 sm:$0xff]   ;;  %v10745_v48 = vld [vmem:[#allocation15 + $0x7e8] ss:$16 sps:$4 sm:$0xff]  }
 0xc89   :  { %6669 = vmatprep.subr.bf16.mxu1 %v10675_v29  ;;  %v10750_v29 = vld [vmem:[#allocation15 + $0x804] ss:$16 sps:$4 sm:$0xff]  }
 0xc8b   :  { %6342 = vmatpush1.bf16.msra.mxu0 %v10670_v27  ;;  %v10753_v27 = vld [vmem:[#allocation15 + $0x80c] ss:$16 sps:$4 sm:$0xff]  }
 0xc8c   :  { %6670 = vmatpush1.bf16.msra.mxu1 %v10673_v23  ;;  %6343 = vmatprep.subr.bf16.mxu0 %v10678_v25  ;;  %v10748_v23 = vld [vmem:[#allocation15 + $0x800] ss:$16 sps:$4 sm:$0xff]   ;;  %v3108_v25 = vpack.c.bf16 %v12855_v51, %v12855_v51 }
 0xc8d   :  { %6671 = vmatprep.subr.bf16.mxu1 %v10681_v4  ;;  %v10751_v4 = vld [vmem:[#allocation15 + $0x808] ss:$16 sps:$4 sm:$0xff]   ;;  %v10760_v51 = vld [vmem:[#allocation15 + $0x840] ss:$16 sps:$4 sm:$0xff]  }
 0xc8f   :  { %6344 = vmatpush1.bf16.msra.mxu0 %v10676_v3  ;;  %v10756_v3 = vld [vmem:[#allocation15 + $0x824] ss:$16 sps:$4 sm:$0xff]  }
 0xc90   :  { %6672 = vmatpush1.bf16.msra.mxu1 %v10679_v53  ;;  %6345 = vmatprep.subr.bf16.mxu0 %v10684_v52  ;;  %v3111_v53 = vpack.c.bf16 %v12861_v39, %v12861_v39  ;;  %v10759_v52 = vld [vmem:[#allocation15 + $0x82c] ss:$16 sps:$4 sm:$0xff]  }
 0xc91   :  { %6673 = vmatprep.subr.bf16.mxu1 %v10687_v38  ;;  %v10754_v38 = vld [vmem:[#allocation15 + $0x820] ss:$16 sps:$4 sm:$0xff]   ;;  %v10771_v39 = vld [vmem:[#allocation15 + $0x86c] ss:$16 sps:$4 sm:$0xff]  }
 0xc93   :  { %6346 = vmatpush1.bf16.msra.mxu0 %v10682_v33  ;;  %v10757_v33 = vld [vmem:[#allocation15 + $0x828] ss:$16 sps:$4 sm:$0xff]  }
 0xc94   :  { %6674 = vmatpush1.bf16.msra.mxu1 %v10685_v24  ;;  %6347 = vmatprep.subr.bf16.mxu0 %v10690_v57  ;;  %v10762_v24 = vld [vmem:[#allocation15 + $0x844] ss:$16 sps:$4 sm:$0xff]   ;;  %v10765_v57 = vld [vmem:[#allocation15 + $0x84c] ss:$16 sps:$4 sm:$0xff]  }
 0xc95   :  { %6675 = vmatprep.subr.bf16.mxu1 %v10693_v21  ;;  %v10763_v21 = vld [vmem:[#allocation15 + $0x848] ss:$16 sps:$4 sm:$0xff]  }
 0xc97   :  { %6348 = vmatpush1.bf16.msra.mxu0 %v10688_v30  ;;  %v10768_v30 = vld [vmem:[#allocation15 + $0x864] ss:$16 sps:$4 sm:$0xff]  }
 0xc98   :  { %6676 = vmatpush1.bf16.msra.mxu1 %v10691_v6  ;;  %6349 = vmatprep.subr.bf16.mxu0 %v10696_v50  ;;  %v10766_v6 = vld [vmem:[#allocation15 + $0x860] ss:$16 sps:$4 sm:$0xff]   ;;  %v10769_v50 = vld [vmem:[#allocation15 + $0x868] ss:$16 sps:$4 sm:$0xff]  }
 0xc99   :  { %6677 = vmatprep.subr.bf16.mxu1 %v10699_v54  ;;  %v10774_v54 = vld [vmem:[#allocation15 + $0x884] ss:$16 sps:$4 sm:$0xff]  }
 0xc9b   :  { %6350 = vmatpush1.bf16.msra.mxu0 %v10694_v10  ;;  %v10777_v10 = vld [vmem:[#allocation15 + $0x88c] ss:$16 sps:$4 sm:$0xff]  }
 0xc9c   :  { %6678 = vmatpush1.bf16.msra.mxu1 %v10697_v47  ;;  %6351 = vmatprep.subr.bf16.mxu0 %v10702_v49  ;;  %v10772_v47 = vld [vmem:[#allocation15 + $0x880] ss:$16 sps:$4 sm:$0xff]   ;;  %v10775_v49 = vld [vmem:[#allocation15 + $0x888] ss:$16 sps:$4 sm:$0xff]  }
 0xc9d   :  { %6679 = vmatprep.subr.bf16.mxu1 %v10705_v7  ;;  %v10780_v7 = vld [vmem:[#allocation15 + $0x8a4] ss:$16 sps:$4 sm:$0xff]  }
 0xc9f   :  { %6352 = vmatpush1.bf16.msra.mxu0 %v10700_v15  ;;  %v10783_v15 = vld [vmem:[#allocation15 + $0x8ac] ss:$16 sps:$4 sm:$0xff]  }
 0xca0   :  { %6680 = vmatpush1.bf16.msra.mxu1 %v10703_v9  ;;  %6353 = vmatprep.subr.bf16.mxu0 %v10708_v12  ;;  %v10778_v9 = vld [vmem:[#allocation15 + $0x8a0] ss:$16 sps:$4 sm:$0xff]   ;;  %v10781_v12 = vld [vmem:[#allocation15 + $0x8a8] ss:$16 sps:$4 sm:$0xff]  }
 0xca1   :  { %6681 = vmatprep.subr.bf16.mxu1 %v10711_v62  ;;  %v10786_v62 = vld [vmem:[#allocation15 + $0x8c4] ss:$16 sps:$4 sm:$0xff]  }
 0xca3   :  { %6354 = vmatpush1.bf16.msra.mxu0 %v10706_v42  ;;  %v10789_v42 = vld [vmem:[#allocation15 + $0x8cc] ss:$16 sps:$4 sm:$0xff]  }
 0xca4   :  { %6682 = vmatpush1.bf16.msra.mxu1 %v10709_v41  ;;  %6355 = vmatprep.subr.bf16.mxu0 %v10714_v26  ;;  %v10784_v41 = vld [vmem:[#allocation15 + $0x8c0] ss:$16 sps:$4 sm:$0xff]   ;;  %v10787_v26 = vld [vmem:[#allocation15 + $0x8c8] ss:$16 sps:$4 sm:$0xff]  }
 0xca5   :  { %6683 = vmatprep.subr.bf16.mxu1 %v10717_v31  ;;  %v10792_v31 = vld [vmem:[#allocation15 + $0x8e4] ss:$16 sps:$4 sm:$0xff]  }
 0xca7   :  { %6356 = vmatpush1.bf16.msra.mxu0 %v10712_v5  ;;  %v10795_v5 = vld [vmem:[#allocation15 + $0x8ec] ss:$16 sps:$4 sm:$0xff]  }
 0xca8   :  { %6684 = vmatpush1.bf16.msra.mxu1 %v10715_v46  ;;  %6357 = vmatprep.subr.bf16.mxu0 %v10720_v55  ;;  %v10790_v46 = vld [vmem:[#allocation15 + $0x8e0] ss:$16 sps:$4 sm:$0xff]   ;;  %v10793_v55 = vld [vmem:[#allocation15 + $0x8e8] ss:$16 sps:$4 sm:$0xff]  }
 0xca9   :  { %6685 = vmatprep.subr.bf16.mxu1 %v10723_v35  ;;  %v10798_v35 = vld [vmem:[#allocation15 + $0x904] ss:$16 sps:$4 sm:$0xff]  }
 0xcab   :  { %6358 = vmatpush1.bf16.msra.mxu0 %v10718_v63  ;;  %v10801_v63 = vld [vmem:[#allocation15 + $0x90c] ss:$16 sps:$4 sm:$0xff]  }
 0xcac   :  { %6686 = vmatpush1.bf16.msra.mxu1 %v10721_v11  ;;  %6359 = vmatprep.subr.bf16.mxu0 %v10726_v44  ;;  %v10796_v11 = vld [vmem:[#allocation15 + $0x900] ss:$16 sps:$4 sm:$0xff]   ;;  %v10799_v44 = vld [vmem:[#allocation15 + $0x908] ss:$16 sps:$4 sm:$0xff]  }
 0xcad   :  { %6687 = vmatprep.subr.bf16.mxu1 %v10729_v2  ;;  %v10804_v2 = vld [vmem:[#allocation15 + $0x924] ss:$16 sps:$4 sm:$0xff]  }
 0xcaf   :  { %6360 = vmatpush1.bf16.msra.mxu0 %v10724_v13  ;;  %v10807_v13 = vld [vmem:[#allocation15 + $0x92c] ss:$16 sps:$4 sm:$0xff]  }
 0xcb0   :  { %6688 = vmatpush1.bf16.msra.mxu1 %v10727_v14  ;;  %6361 = vmatprep.subr.bf16.mxu0 %v10732_v19  ;;  %v10802_v14 = vld [vmem:[#allocation15 + $0x920] ss:$16 sps:$4 sm:$0xff]   ;;  %v10805_v19 = vld [vmem:[#allocation15 + $0x928] ss:$16 sps:$4 sm:$0xff]  }
 0xcb1   :  { %6689 = vmatprep.subr.bf16.mxu1 %v10735_v18  ;;  %v10810_v18 = vld [vmem:[#allocation15 + $0x944] ss:$16 sps:$4 sm:$0xff]  }
 0xcb3   :  { %6362 = vmatpush1.bf16.msra.mxu0 %v10730_v61  ;;  %v10813_v61 = vld [vmem:[#allocation15 + $0x94c] ss:$16 sps:$4 sm:$0xff]  }
 0xcb4   :  { %6690 = vmatpush1.bf16.msra.mxu1 %v10733_v32  ;;  %6363 = vmatprep.subr.bf16.mxu0 %v10738_v59  ;;  %v10808_v32 = vld [vmem:[#allocation15 + $0x940] ss:$16 sps:$4 sm:$0xff]   ;;  %v10811_v59 = vld [vmem:[#allocation15 + $0x948] ss:$16 sps:$4 sm:$0xff]  }
 0xcb5   :  { %6691 = vmatprep.subr.bf16.mxu1 %v10741_v43  ;;  %v10816_v43 = vld [vmem:[#allocation15 + $0x964] ss:$16 sps:$4 sm:$0xff]  }
 0xcb7   :  { %6364 = vmatpush1.bf16.msra.mxu0 %v10736_v17  ;;  %v10819_v17 = vld [vmem:[#allocation15 + $0x96c] ss:$16 sps:$4 sm:$0xff]  }
 0xcb8   :  { %6692 = vmatpush1.bf16.msra.mxu1 %v10739_v56  ;;  %6365 = vmatprep.subr.bf16.mxu0 %v10744_v58  ;;  %v10814_v56 = vld [vmem:[#allocation15 + $0x960] ss:$16 sps:$4 sm:$0xff]   ;;  %v10817_v58 = vld [vmem:[#allocation15 + $0x968] ss:$16 sps:$4 sm:$0xff]  }
 0xcb9   :  { %6693 = vmatprep.subr.bf16.mxu1 %v10747_v28  ;;  %v10822_v28 = vld [vmem:[#allocation15 + $0x984] ss:$16 sps:$4 sm:$0xff]  }
 0xcbb   :  { %6366 = vmatpush1.bf16.msra.mxu0 %v10742_v40  ;;  %v10825_v40 = vld [vmem:[#allocation15 + $0x98c] ss:$16 sps:$4 sm:$0xff]  }
 0xcbc   :  { %6694 = vmatpush1.bf16.msra.mxu1 %v10745_v48  ;;  %6376 = vmatprep.subr.bf16.mxu0 %v10750_v29  ;;  %v10820_v48 = vld [vmem:[#allocation15 + $0x980] ss:$16 sps:$4 sm:$0xff]   ;;  %v10823_v29 = vld [vmem:[#allocation15 + $0x988] ss:$16 sps:$4 sm:$0xff]  }
 0xcbd   :  { %6704 = vmatprep.subr.bf16.mxu1 %v10753_v27  ;;  %v10828_v27 = vld [vmem:[#allocation15 + $0x9a4] ss:$16 sps:$4 sm:$0xff]  }
 0xcbe   :  { %6368 = vmatmul.mubr.bf16.vlgmr.msra.gmra.mrb[24].mxu0 %v3108_v25 }
 0xcbf   :  { %6696 = vmatmul.mubr.bf16.vlgmr.msra.gmra.mrb[28].mxu1 %v3108_v25  ;;  %6377 = vmatpush1.bf16.msra.mxu0 %v10748_v23  ;;  %v10831_v23 = vld [vmem:[#allocation15 + $0x9ac] ss:$16 sps:$4 sm:$0xff]   ;;  %v10826_v25 = vld [vmem:[#allocation15 + $0x9a0] ss:$16 sps:$4 sm:$0xff]  }
 0xcc0   :  { %6408 = vmatprep.mubr.bf16.mxu0 %v3111_v53  ;;  %6705 = vmatpush1.bf16.msra.mxu1 %v10751_v4  ;;  %v10829_v4 = vld [vmem:[#allocation15 + $0x9a8] ss:$16 sps:$4 sm:$0xff]  }
 0xcc1   :  { %6736 = vmatprep.mubr.bf16.mxu1 %v3111_v53  ;;  %6378 = vmatprep.subr.bf16.mxu0 %v10756_v3  ;;  %v10834_v3 = vld [vmem:[#allocation15 + $0x9c4] ss:$16 sps:$4 sm:$0xff]   ;;  %v10837_v53 = vld [vmem:[#allocation15 + $0x9cc] ss:$16 sps:$4 sm:$0xff]  }
 0xcc2   :  { %6706 = vmatprep.subr.bf16.mxu1 %v10759_v52  ;;  %v10832_v52 = vld [vmem:[#allocation15 + $0x9c0] ss:$16 sps:$4 sm:$0xff]  }
 0xcc3   :  { %6379 = vmatpush1.bf16.msra.mxu0 %v10754_v38  ;;  %v10835_v38 = vld [vmem:[#allocation15 + $0x9c8] ss:$16 sps:$4 sm:$0xff]  }
 0xcc4   :  { %6707 = vmatpush1.bf16.msra.mxu1 %v10757_v33  ;;  %6380 = vmatprep.subr.bf16.mxu0 %v10762_v24  ;;  %v10840_v33 = vld [vmem:[#allocation15 + $0x9e4] ss:$16 sps:$4 sm:$0xff]   ;;  %v10843_v24 = vld [vmem:[#allocation15 + $0x9ec] ss:$16 sps:$4 sm:$0xff]  }
 0xcc5   :  { %6708 = vmatprep.subr.bf16.mxu1 %v10765_v57  ;;  %v10838_v57 = vld [vmem:[#allocation15 + $0x9e0] ss:$16 sps:$4 sm:$0xff]  }
 0xcc7   :  { %6381 = vmatpush1.bf16.msra.mxu0 %v10760_v51  ;;  %v10841_v51 = vld [vmem:[#allocation15 + $0x9e8] ss:$16 sps:$4 sm:$0xff]  }
 0xcc8   :  { %6709 = vmatpush1.bf16.msra.mxu1 %v10763_v21  ;;  %6382 = vmatprep.subr.bf16.mxu0 %v10768_v30  ;;  %v10846_v21 = vld [vmem:[#allocation15 + $0xa04] ss:$16 sps:$4 sm:$0xff]   ;;  %v10849_v30 = vld [vmem:[#allocation15 + $0xa0c] ss:$16 sps:$4 sm:$0xff]  }
 0xcc9   :  { %6710 = vmatprep.subr.bf16.mxu1 %v10771_v39  ;;  %v10844_v39 = vld [vmem:[#allocation15 + $0xa00] ss:$16 sps:$4 sm:$0xff]  }
 0xccb   :  { %6383 = vmatpush1.bf16.msra.mxu0 %v10766_v6  ;;  %v3110_v6 = vpack.c.bf16 %v12874_v60, %v12874_v60  ;;  %v10856_v60 = vld [vmem:[#allocation15 + $0xa40] ss:$16 sps:$4 sm:$0xff]  }
 0xccc   :  { %6711 = vmatpush1.bf16.msra.mxu1 %v10769_v50  ;;  %6384 = vmatprep.subr.bf16.mxu0 %v10774_v54  ;;  %v10847_v50 = vld [vmem:[#allocation15 + $0xa08] ss:$16 sps:$4 sm:$0xff]   ;;  %v10852_v54 = vld [vmem:[#allocation15 + $0xa24] ss:$16 sps:$4 sm:$0xff]  }
 0xccd   :  { %6712 = vmatprep.subr.bf16.mxu1 %v10777_v10  ;;  %v3113_v10 = vpack.c.bf16 %v12880_v1, %v12880_v1  ;;  %v10867_v1 = vld [vmem:[#allocation15 + $0xa6c] ss:$16 sps:$4 sm:$0xff]  }
 0xccf   :  { %6385 = vmatpush1.bf16.msra.mxu0 %v10772_v47  ;;  %v10855_v47 = vld [vmem:[#allocation15 + $0xa2c] ss:$16 sps:$4 sm:$0xff]  }
 0xcd0   :  { %6713 = vmatpush1.bf16.msra.mxu1 %v10775_v49  ;;  %6386 = vmatprep.subr.bf16.mxu0 %v10780_v7  ;;  %v10850_v49 = vld [vmem:[#allocation15 + $0xa20] ss:$16 sps:$4 sm:$0xff]   ;;  %v10853_v7 = vld [vmem:[#allocation15 + $0xa28] ss:$16 sps:$4 sm:$0xff]  }
 0xcd1   :  { %6714 = vmatprep.subr.bf16.mxu1 %v10783_v15  ;;  %v10858_v15 = vld [vmem:[#allocation15 + $0xa44] ss:$16 sps:$4 sm:$0xff]  }
 0xcd3   :  { %6387 = vmatpush1.bf16.msra.mxu0 %v10778_v9  ;;  %v10861_v9 = vld [vmem:[#allocation15 + $0xa4c] ss:$16 sps:$4 sm:$0xff]  }
 0xcd4   :  { %6715 = vmatpush1.bf16.msra.mxu1 %v10781_v12  ;;  %6388 = vmatprep.subr.bf16.mxu0 %v10786_v62  ;;  %v10859_v12 = vld [vmem:[#allocation15 + $0xa48] ss:$16 sps:$4 sm:$0xff]   ;;  %v10864_v62 = vld [vmem:[#allocation15 + $0xa64] ss:$16 sps:$4 sm:$0xff]  }
 0xcd5   :  { %6716 = vmatprep.subr.bf16.mxu1 %v10789_v42  ;;  %v10862_v42 = vld [vmem:[#allocation15 + $0xa60] ss:$16 sps:$4 sm:$0xff]  }
 0xcd7   :  { %6389 = vmatpush1.bf16.msra.mxu0 %v10784_v41  ;;  %v10865_v41 = vld [vmem:[#allocation15 + $0xa68] ss:$16 sps:$4 sm:$0xff]  }
 0xcd8   :  { %6717 = vmatpush1.bf16.msra.mxu1 %v10787_v26  ;;  %6390 = vmatprep.subr.bf16.mxu0 %v10792_v31  ;;  %v10870_v26 = vld [vmem:[#allocation15 + $0xa84] ss:$16 sps:$4 sm:$0xff]   ;;  %v10873_v31 = vld [vmem:[#allocation15 + $0xa8c] ss:$16 sps:$4 sm:$0xff]  }
 0xcd9   :  { %6718 = vmatprep.subr.bf16.mxu1 %v10795_v5  ;;  %v10868_v5 = vld [vmem:[#allocation15 + $0xa80] ss:$16 sps:$4 sm:$0xff]  }
 0xcdb   :  { %6391 = vmatpush1.bf16.msra.mxu0 %v10790_v46  ;;  %v10871_v46 = vld [vmem:[#allocation15 + $0xa88] ss:$16 sps:$4 sm:$0xff]  }
 0xcdc   :  { %6719 = vmatpush1.bf16.msra.mxu1 %v10793_v55  ;;  %6392 = vmatprep.subr.bf16.mxu0 %v10798_v35  ;;  %v10876_v55 = vld [vmem:[#allocation15 + $0xaa4] ss:$16 sps:$4 sm:$0xff]   ;;  %v10879_v35 = vld [vmem:[#allocation15 + $0xaac] ss:$16 sps:$4 sm:$0xff]  }
 0xcdd   :  { %6720 = vmatprep.subr.bf16.mxu1 %v10801_v63  ;;  %v10874_v63 = vld [vmem:[#allocation15 + $0xaa0] ss:$16 sps:$4 sm:$0xff]  }
 0xcdf   :  { %6393 = vmatpush1.bf16.msra.mxu0 %v10796_v11  ;;  %v10877_v11 = vld [vmem:[#allocation15 + $0xaa8] ss:$16 sps:$4 sm:$0xff]  }
 0xce0   :  { %6721 = vmatpush1.bf16.msra.mxu1 %v10799_v44  ;;  %6394 = vmatprep.subr.bf16.mxu0 %v10804_v2  ;;  %v10882_v44 = vld [vmem:[#allocation15 + $0xac4] ss:$16 sps:$4 sm:$0xff]   ;;  %v10885_v2 = vld [vmem:[#allocation15 + $0xacc] ss:$16 sps:$4 sm:$0xff]  }
 0xce1   :  { %6722 = vmatprep.subr.bf16.mxu1 %v10807_v13  ;;  %v10880_v13 = vld [vmem:[#allocation15 + $0xac0] ss:$16 sps:$4 sm:$0xff]  }
 0xce3   :  { %6395 = vmatpush1.bf16.msra.mxu0 %v10802_v14  ;;  %v10883_v14 = vld [vmem:[#allocation15 + $0xac8] ss:$16 sps:$4 sm:$0xff]  }
 0xce4   :  { %6723 = vmatpush1.bf16.msra.mxu1 %v10805_v19  ;;  %6396 = vmatprep.subr.bf16.mxu0 %v10810_v18  ;;  %v10888_v19 = vld [vmem:[#allocation15 + $0xae4] ss:$16 sps:$4 sm:$0xff]   ;;  %v10891_v18 = vld [vmem:[#allocation15 + $0xaec] ss:$16 sps:$4 sm:$0xff]  }
 0xce5   :  { %6724 = vmatprep.subr.bf16.mxu1 %v10813_v61  ;;  %v10886_v61 = vld [vmem:[#allocation15 + $0xae0] ss:$16 sps:$4 sm:$0xff]  }
 0xce7   :  { %6397 = vmatpush1.bf16.msra.mxu0 %v10808_v32  ;;  %v10889_v32 = vld [vmem:[#allocation15 + $0xae8] ss:$16 sps:$4 sm:$0xff]  }
 0xce8   :  { %6725 = vmatpush1.bf16.msra.mxu1 %v10811_v59  ;;  %6398 = vmatprep.subr.bf16.mxu0 %v10816_v43  ;;  %v10894_v59 = vld [vmem:[#allocation15 + $0xb04] ss:$16 sps:$4 sm:$0xff]   ;;  %v10897_v43 = vld [vmem:[#allocation15 + $0xb0c] ss:$16 sps:$4 sm:$0xff]  }
 0xce9   :  { %6726 = vmatprep.subr.bf16.mxu1 %v10819_v17  ;;  %v10892_v17 = vld [vmem:[#allocation15 + $0xb00] ss:$16 sps:$4 sm:$0xff]  }
 0xceb   :  { %6399 = vmatpush1.bf16.msra.mxu0 %v10814_v56  ;;  %v10895_v56 = vld [vmem:[#allocation15 + $0xb08] ss:$16 sps:$4 sm:$0xff]  }
 0xcec   :  { %6727 = vmatpush1.bf16.msra.mxu1 %v10817_v58  ;;  %6400 = vmatprep.subr.bf16.mxu0 %v10822_v28  ;;  %v10900_v58 = vld [vmem:[#allocation15 + $0xb24] ss:$16 sps:$4 sm:$0xff]   ;;  %v10903_v28 = vld [vmem:[#allocation15 + $0xb2c] ss:$16 sps:$4 sm:$0xff]  }
 0xced   :  { %6728 = vmatprep.subr.bf16.mxu1 %v10825_v40  ;;  %v10898_v40 = vld [vmem:[#allocation15 + $0xb20] ss:$16 sps:$4 sm:$0xff]  }
 0xcef   :  { %6401 = vmatpush1.bf16.msra.mxu0 %v10820_v48  ;;  %v10901_v48 = vld [vmem:[#allocation15 + $0xb28] ss:$16 sps:$4 sm:$0xff]  }
 0xcf0   :  { %6729 = vmatpush1.bf16.msra.mxu1 %v10823_v29  ;;  %6402 = vmatprep.subr.bf16.mxu0 %v10828_v27  ;;  %v10906_v29 = vld [vmem:[#allocation15 + $0xb44] ss:$16 sps:$4 sm:$0xff]   ;;  %v10909_v27 = vld [vmem:[#allocation15 + $0xb4c] ss:$16 sps:$4 sm:$0xff]  }
 0xcf1   :  { %6730 = vmatprep.subr.bf16.mxu1 %v10831_v23  ;;  %v10904_v23 = vld [vmem:[#allocation15 + $0xb40] ss:$16 sps:$4 sm:$0xff]  }
 0xcf3   :  { %6403 = vmatpush1.bf16.msra.mxu0 %v10826_v25  ;;  %v10907_v25 = vld [vmem:[#allocation15 + $0xb48] ss:$16 sps:$4 sm:$0xff]  }
 0xcf4   :  { %6731 = vmatpush1.bf16.msra.mxu1 %v10829_v4  ;;  %6404 = vmatprep.subr.bf16.mxu0 %v10834_v3  ;;  %v10912_v4 = vld [vmem:[#allocation15 + $0xb64] ss:$16 sps:$4 sm:$0xff]   ;;  %v10915_v3 = vld [vmem:[#allocation15 + $0xb6c] ss:$16 sps:$4 sm:$0xff]  }
 0xcf5   :  { %6732 = vmatprep.subr.bf16.mxu1 %v10837_v53  ;;  %v10910_v53 = vld [vmem:[#allocation15 + $0xb60] ss:$16 sps:$4 sm:$0xff]  }
 0xcf7   :  { %6405 = vmatpush1.bf16.msra.mxu0 %v10832_v52  ;;  %v10913_v52 = vld [vmem:[#allocation15 + $0xb68] ss:$16 sps:$4 sm:$0xff]  }
 0xcf8   :  { %6733 = vmatpush1.bf16.msra.mxu1 %v10835_v38  ;;  %6406 = vmatprep.subr.bf16.mxu0 %v10840_v33  ;;  %v10918_v38 = vld [vmem:[#allocation15 + $0xb84] ss:$16 sps:$4 sm:$0xff]   ;;  %v10921_v33 = vld [vmem:[#allocation15 + $0xb8c] ss:$16 sps:$4 sm:$0xff]  }
 0xcf9   :  { %6734 = vmatprep.subr.bf16.mxu1 %v10843_v24  ;;  %v10916_v24 = vld [vmem:[#allocation15 + $0xb80] ss:$16 sps:$4 sm:$0xff]  }
 0xcfb   :  { %6407 = vmatpush1.bf16.msra.mxu0 %v10838_v57  ;;  %v10919_v57 = vld [vmem:[#allocation15 + $0xb88] ss:$16 sps:$4 sm:$0xff]  }
 0xcfc   :  { %6735 = vmatpush1.bf16.msra.mxu1 %v10841_v51  ;;  %6417 = vmatprep.subr.bf16.mxu0 %v10846_v21  ;;  %v10924_v51 = vld [vmem:[#allocation15 + $0xba4] ss:$16 sps:$4 sm:$0xff]   ;;  %v10927_v21 = vld [vmem:[#allocation15 + $0xbac] ss:$16 sps:$4 sm:$0xff]  }
 0xcfd   :  { %6745 = vmatprep.subr.bf16.mxu1 %v10849_v30  ;;  %v10922_v30 = vld [vmem:[#allocation15 + $0xba0] ss:$16 sps:$4 sm:$0xff]  }
 0xcfe   :  { %6409 = vmatmul.mubr.bf16.vlgmr.msra.gmra.mrb[24].mxu0 %v3110_v6 }
 0xcff   :  { %6737 = vmatmul.mubr.bf16.vlgmr.msra.gmra.mrb[28].mxu1 %v3110_v6  ;;  %6418 = vmatpush1.bf16.msra.mxu0 %v10844_v39  ;;  %v10925_v39 = vld [vmem:[#allocation15 + $0xba8] ss:$16 sps:$4 sm:$0xff]   ;;  %v10930_v6 = vld [vmem:[#allocation15 + $0xbc4] ss:$16 sps:$4 sm:$0xff]  }
 0xd00   :  { %6449 = vmatprep.mubr.bf16.mxu0 %v3113_v10  ;;  %6746 = vmatpush1.bf16.msra.mxu1 %v10847_v50  ;;  %v10933_v50 = vld [vmem:[#allocation15 + $0xbcc] ss:$16 sps:$4 sm:$0xff]  }
 0xd01   :  { %6777 = vmatprep.mubr.bf16.mxu1 %v3113_v10  ;;  %6419 = vmatprep.subr.bf16.mxu0 %v10852_v54  ;;  %v10928_v54 = vld [vmem:[#allocation15 + $0xbc0] ss:$16 sps:$4 sm:$0xff]   ;;  %v10931_v10 = vld [vmem:[#allocation15 + $0xbc8] ss:$16 sps:$4 sm:$0xff]  }
 0xd02   :  { %6747 = vmatprep.subr.bf16.mxu1 %v10855_v47  ;;  %v10936_v47 = vld [vmem:[#allocation15 + $0xbe4] ss:$16 sps:$4 sm:$0xff]  }
 0xd03   :  { %6420 = vmatpush1.bf16.msra.mxu0 %v10850_v49  ;;  %v10939_v49 = vld [vmem:[#allocation15 + $0xbec] ss:$16 sps:$4 sm:$0xff]  }
 0xd04   :  { %6748 = vmatpush1.bf16.msra.mxu1 %v10853_v7  ;;  %6421 = vmatprep.subr.bf16.mxu0 %v10858_v15  ;;  %v10934_v7 = vld [vmem:[#allocation15 + $0xbe0] ss:$16 sps:$4 sm:$0xff]   ;;  %v10937_v15 = vld [vmem:[#allocation15 + $0xbe8] ss:$16 sps:$4 sm:$0xff]  }
 0xd05   :  { %6749 = vmatprep.subr.bf16.mxu1 %v10861_v9  ;;  %v10942_v9 = vld [vmem:[#allocation15 + $0xc04] ss:$16 sps:$4 sm:$0xff]  }
 0xd07   :  { %6422 = vmatpush1.bf16.msra.mxu0 %v10856_v60  ;;  %v10945_v60 = vld [vmem:[#allocation15 + $0xc0c] ss:$16 sps:$4 sm:$0xff]  }
 0xd08   :  { %6750 = vmatpush1.bf16.msra.mxu1 %v10859_v12  ;;  %6423 = vmatprep.subr.bf16.mxu0 %v10864_v62  ;;  %v10940_v12 = vld [vmem:[#allocation15 + $0xc00] ss:$16 sps:$4 sm:$0xff]   ;;  %v3112_v62 = vpack.c.bf16 %v12883_v16, %v12883_v16 }
 0xd09   :  { %6751 = vmatprep.subr.bf16.mxu1 %v10867_v1  ;;  %v10943_v1 = vld [vmem:[#allocation15 + $0xc08] ss:$16 sps:$4 sm:$0xff]   ;;  %v10952_v16 = vld [vmem:[#allocation15 + $0xc40] ss:$16 sps:$4 sm:$0xff]  }
 0xd0b   :  { %6424 = vmatpush1.bf16.msra.mxu0 %v10862_v42  ;;  %v10948_v42 = vld [vmem:[#allocation15 + $0xc24] ss:$16 sps:$4 sm:$0xff]  }
 0xd0c   :  { %6752 = vmatpush1.bf16.msra.mxu1 %v10865_v41  ;;  %6425 = vmatprep.subr.bf16.mxu0 %v10870_v26  ;;  %v3115_v41 = vpack.c.bf16 %v12888_v0, %v12888_v0  ;;  %v10951_v26 = vld [vmem:[#allocation15 + $0xc2c] ss:$16 sps:$4 sm:$0xff]  }
 0xd0d   :  { %6753 = vmatprep.subr.bf16.mxu1 %v10873_v31  ;;  %v10946_v31 = vld [vmem:[#allocation15 + $0xc20] ss:$16 sps:$4 sm:$0xff]   ;;  %v10963_v0 = vld [vmem:[#allocation15 + $0xc6c] ss:$16 sps:$4 sm:$0xff]  }
 0xd0f   :  { %6426 = vmatpush1.bf16.msra.mxu0 %v10868_v5  ;;  %v10949_v5 = vld [vmem:[#allocation15 + $0xc28] ss:$16 sps:$4 sm:$0xff]  }
 0xd10   :  { %6754 = vmatpush1.bf16.msra.mxu1 %v10871_v46  ;;  %6427 = vmatprep.subr.bf16.mxu0 %v10876_v55  ;;  %v10954_v46 = vld [vmem:[#allocation15 + $0xc44] ss:$16 sps:$4 sm:$0xff]   ;;  %v10957_v55 = vld [vmem:[#allocation15 + $0xc4c] ss:$16 sps:$4 sm:$0xff]  }
 0xd11   :  { %6755 = vmatprep.subr.bf16.mxu1 %v10879_v35  ;;  %v10955_v35 = vld [vmem:[#allocation15 + $0xc48] ss:$16 sps:$4 sm:$0xff]  }
 0xd13   :  { %6428 = vmatpush1.bf16.msra.mxu0 %v10874_v63  ;;  %v10960_v63 = vld [vmem:[#allocation15 + $0xc64] ss:$16 sps:$4 sm:$0xff]  }
 0xd14   :  { %6756 = vmatpush1.bf16.msra.mxu1 %v10877_v11  ;;  %6429 = vmatprep.subr.bf16.mxu0 %v10882_v44  ;;  %v10958_v11 = vld [vmem:[#allocation15 + $0xc60] ss:$16 sps:$4 sm:$0xff]   ;;  %v10961_v44 = vld [vmem:[#allocation15 + $0xc68] ss:$16 sps:$4 sm:$0xff]  }
 0xd15   :  { %6757 = vmatprep.subr.bf16.mxu1 %v10885_v2  ;;  %v10966_v2 = vld [vmem:[#allocation15 + $0xc84] ss:$16 sps:$4 sm:$0xff]  }
 0xd17   :  { %6430 = vmatpush1.bf16.msra.mxu0 %v10880_v13  ;;  %v10969_v13 = vld [vmem:[#allocation15 + $0xc8c] ss:$16 sps:$4 sm:$0xff]  }
 0xd18   :  { %6758 = vmatpush1.bf16.msra.mxu1 %v10883_v14  ;;  %6431 = vmatprep.subr.bf16.mxu0 %v10888_v19  ;;  %v10964_v14 = vld [vmem:[#allocation15 + $0xc80] ss:$16 sps:$4 sm:$0xff]   ;;  %v10967_v19 = vld [vmem:[#allocation15 + $0xc88] ss:$16 sps:$4 sm:$0xff]  }
 0xd19   :  { %6759 = vmatprep.subr.bf16.mxu1 %v10891_v18  ;;  %v10972_v18 = vld [vmem:[#allocation15 + $0xca4] ss:$16 sps:$4 sm:$0xff]  }
 0xd1b   :  { %6432 = vmatpush1.bf16.msra.mxu0 %v10886_v61  ;;  %v10975_v61 = vld [vmem:[#allocation15 + $0xcac] ss:$16 sps:$4 sm:$0xff]  }
 0xd1c   :  { %6760 = vmatpush1.bf16.msra.mxu1 %v10889_v32  ;;  %6433 = vmatprep.subr.bf16.mxu0 %v10894_v59  ;;  %v10970_v32 = vld [vmem:[#allocation15 + $0xca0] ss:$16 sps:$4 sm:$0xff]   ;;  %v10973_v59 = vld [vmem:[#allocation15 + $0xca8] ss:$16 sps:$4 sm:$0xff]  }
 0xd1d   :  { %6761 = vmatprep.subr.bf16.mxu1 %v10897_v43  ;;  %v10978_v43 = vld [vmem:[#allocation15 + $0xcc4] ss:$16 sps:$4 sm:$0xff]  }
 0xd1f   :  { %6434 = vmatpush1.bf16.msra.mxu0 %v10892_v17  ;;  %v10981_v17 = vld [vmem:[#allocation15 + $0xccc] ss:$16 sps:$4 sm:$0xff]  }
 0xd20   :  { %6762 = vmatpush1.bf16.msra.mxu1 %v10895_v56  ;;  %6435 = vmatprep.subr.bf16.mxu0 %v10900_v58  ;;  %v10976_v56 = vld [vmem:[#allocation15 + $0xcc0] ss:$16 sps:$4 sm:$0xff]   ;;  %v10979_v58 = vld [vmem:[#allocation15 + $0xcc8] ss:$16 sps:$4 sm:$0xff]  }
 0xd21   :  { %6763 = vmatprep.subr.bf16.mxu1 %v10903_v28  ;;  %v10984_v28 = vld [vmem:[#allocation15 + $0xce4] ss:$16 sps:$4 sm:$0xff]  }
 0xd23   :  { %6436 = vmatpush1.bf16.msra.mxu0 %v10898_v40  ;;  %v10987_v40 = vld [vmem:[#allocation15 + $0xcec] ss:$16 sps:$4 sm:$0xff]  }
 0xd24   :  { %6764 = vmatpush1.bf16.msra.mxu1 %v10901_v48  ;;  %6437 = vmatprep.subr.bf16.mxu0 %v10906_v29  ;;  %v10982_v48 = vld [vmem:[#allocation15 + $0xce0] ss:$16 sps:$4 sm:$0xff]   ;;  %v10985_v29 = vld [vmem:[#allocation15 + $0xce8] ss:$16 sps:$4 sm:$0xff]  }
 0xd25   :  { %6765 = vmatprep.subr.bf16.mxu1 %v10909_v27  ;;  %v10990_v27 = vld [vmem:[#allocation15 + $0xd04] ss:$16 sps:$4 sm:$0xff]  }
 0xd27   :  { %6438 = vmatpush1.bf16.msra.mxu0 %v10904_v23  ;;  %v10993_v23 = vld [vmem:[#allocation15 + $0xd0c] ss:$16 sps:$4 sm:$0xff]  }
 0xd28   :  { %6766 = vmatpush1.bf16.msra.mxu1 %v10907_v25  ;;  %6439 = vmatprep.subr.bf16.mxu0 %v10912_v4  ;;  %v10988_v25 = vld [vmem:[#allocation15 + $0xd00] ss:$16 sps:$4 sm:$0xff]   ;;  %v10991_v4 = vld [vmem:[#allocation15 + $0xd08] ss:$16 sps:$4 sm:$0xff]  }
 0xd29   :  { %6767 = vmatprep.subr.bf16.mxu1 %v10915_v3  ;;  %v10996_v3 = vld [vmem:[#allocation15 + $0xd24] ss:$16 sps:$4 sm:$0xff]  }
 0xd2b   :  { %6440 = vmatpush1.bf16.msra.mxu0 %v10910_v53  ;;  %v10999_v53 = vld [vmem:[#allocation15 + $0xd2c] ss:$16 sps:$4 sm:$0xff]  }
 0xd2c   :  { %6768 = vmatpush1.bf16.msra.mxu1 %v10913_v52  ;;  %6441 = vmatprep.subr.bf16.mxu0 %v10918_v38  ;;  %v10994_v52 = vld [vmem:[#allocation15 + $0xd20] ss:$16 sps:$4 sm:$0xff]   ;;  %v10997_v38 = vld [vmem:[#allocation15 + $0xd28] ss:$16 sps:$4 sm:$0xff]  }
 0xd2d   :  { %6769 = vmatprep.subr.bf16.mxu1 %v10921_v33  ;;  %v11002_v33 = vld [vmem:[#allocation15 + $0xd44] ss:$16 sps:$4 sm:$0xff]  }
 0xd2f   :  { %6442 = vmatpush1.bf16.msra.mxu0 %v10916_v24  ;;  %v11005_v24 = vld [vmem:[#allocation15 + $0xd4c] ss:$16 sps:$4 sm:$0xff]  }
 0xd30   :  { %6770 = vmatpush1.bf16.msra.mxu1 %v10919_v57  ;;  %6443 = vmatprep.subr.bf16.mxu0 %v10924_v51  ;;  %v11000_v57 = vld [vmem:[#allocation15 + $0xd40] ss:$16 sps:$4 sm:$0xff]   ;;  %v11003_v51 = vld [vmem:[#allocation15 + $0xd48] ss:$16 sps:$4 sm:$0xff]  }
 0xd31   :  { %6771 = vmatprep.subr.bf16.mxu1 %v10927_v21  ;;  %v11008_v21 = vld [vmem:[#allocation15 + $0xd64] ss:$16 sps:$4 sm:$0xff]  }
 0xd33   :  { %6444 = vmatpush1.bf16.msra.mxu0 %v10922_v30  ;;  %v11011_v30 = vld [vmem:[#allocation15 + $0xd6c] ss:$16 sps:$4 sm:$0xff]  }
 0xd34   :  { %6772 = vmatpush1.bf16.msra.mxu1 %v10925_v39  ;;  %6445 = vmatprep.subr.bf16.mxu0 %v10930_v6  ;;  %v11006_v39 = vld [vmem:[#allocation15 + $0xd60] ss:$16 sps:$4 sm:$0xff]   ;;  %v11009_v6 = vld [vmem:[#allocation15 + $0xd68] ss:$16 sps:$4 sm:$0xff]  }
 0xd35   :  { %6773 = vmatprep.subr.bf16.mxu1 %v10933_v50  ;;  %v11014_v50 = vld [vmem:[#allocation15 + $0xd84] ss:$16 sps:$4 sm:$0xff]  }
 0xd37   :  { %6446 = vmatpush1.bf16.msra.mxu0 %v10928_v54  ;;  %v11017_v54 = vld [vmem:[#allocation15 + $0xd8c] ss:$16 sps:$4 sm:$0xff]  }
 0xd38   :  { %6774 = vmatpush1.bf16.msra.mxu1 %v10931_v10  ;;  %6447 = vmatprep.subr.bf16.mxu0 %v10936_v47  ;;  %v11012_v10 = vld [vmem:[#allocation15 + $0xd80] ss:$16 sps:$4 sm:$0xff]   ;;  %v11015_v47 = vld [vmem:[#allocation15 + $0xd88] ss:$16 sps:$4 sm:$0xff]  }
 0xd39   :  { %6775 = vmatprep.subr.bf16.mxu1 %v10939_v49  ;;  %v11020_v49 = vld [vmem:[#allocation15 + $0xda4] ss:$16 sps:$4 sm:$0xff]  }
 0xd3b   :  { %6448 = vmatpush1.bf16.msra.mxu0 %v10934_v7  ;;  %v11023_v7 = vld [vmem:[#allocation15 + $0xdac] ss:$16 sps:$4 sm:$0xff]  }
 0xd3c   :  { %6776 = vmatpush1.bf16.msra.mxu1 %v10937_v15  ;;  %6458 = vmatprep.subr.bf16.mxu0 %v10942_v9  ;;  %v11018_v15 = vld [vmem:[#allocation15 + $0xda0] ss:$16 sps:$4 sm:$0xff]   ;;  %v11021_v9 = vld [vmem:[#allocation15 + $0xda8] ss:$16 sps:$4 sm:$0xff]  }
 0xd3d   :  { %6786 = vmatprep.subr.bf16.mxu1 %v10945_v60  ;;  %v11026_v60 = vld [vmem:[#allocation15 + $0xdc4] ss:$16 sps:$4 sm:$0xff]  }
 0xd3e   :  { %6450 = vmatmul.mubr.bf16.vlgmr.msra.gmra.mrb[24].mxu0 %v3112_v62 }
 0xd3f   :  { %6778 = vmatmul.mubr.bf16.vlgmr.msra.gmra.mrb[28].mxu1 %v3112_v62  ;;  %6459 = vmatpush1.bf16.msra.mxu0 %v10940_v12  ;;  %v11029_v12 = vld [vmem:[#allocation15 + $0xdcc] ss:$16 sps:$4 sm:$0xff]   ;;  %v11024_v62 = vld [vmem:[#allocation15 + $0xdc0] ss:$16 sps:$4 sm:$0xff]  }
 0xd40   :  { %6490 = vmatprep.mubr.bf16.mxu0 %v3115_v41  ;;  %6787 = vmatpush1.bf16.msra.mxu1 %v10943_v1  ;;  %v11027_v1 = vld [vmem:[#allocation15 + $0xdc8] ss:$16 sps:$4 sm:$0xff]  }
 0xd41   :  { %6818 = vmatprep.mubr.bf16.mxu1 %v3115_v41  ;;  %6460 = vmatprep.subr.bf16.mxu0 %v10948_v42  ;;  %v11032_v42 = vld [vmem:[#allocation15 + $0xde4] ss:$16 sps:$4 sm:$0xff]   ;;  %v11035_v41 = vld [vmem:[#allocation15 + $0xdec] ss:$16 sps:$4 sm:$0xff]  }
 0xd42   :  { %6788 = vmatprep.subr.bf16.mxu1 %v10951_v26  ;;  %v11030_v26 = vld [vmem:[#allocation15 + $0xde0] ss:$16 sps:$4 sm:$0xff]  }
 0xd43   :  { %6461 = vmatpush1.bf16.msra.mxu0 %v10946_v31  ;;  %v11033_v31 = vld [vmem:[#allocation15 + $0xde8] ss:$16 sps:$4 sm:$0xff]  }
 0xd44   :  { %6789 = vmatpush1.bf16.msra.mxu1 %v10949_v5  ;;  %6462 = vmatprep.subr.bf16.mxu0 %v10954_v46  ;;  %v11038_v5 = vld [vmem:[#allocation15 + $0xe04] ss:$16 sps:$4 sm:$0xff]   ;;  %v11041_v46 = vld [vmem:[#allocation15 + $0xe0c] ss:$16 sps:$4 sm:$0xff]  }
 0xd45   :  { %6790 = vmatprep.subr.bf16.mxu1 %v10957_v55  ;;  %v11036_v55 = vld [vmem:[#allocation15 + $0xe00] ss:$16 sps:$4 sm:$0xff]  }
 0xd47   :  { %6463 = vmatpush1.bf16.msra.mxu0 %v10952_v16  ;;  %v3114_v16 = vpack.c.bf16 %v12897_v8, %v12897_v8  ;;  %v11048_v8 = vld [vmem:[#allocation15 + $0xe40] ss:$16 sps:$4 sm:$0xff]  }
 0xd48   :  { %6791 = vmatpush1.bf16.msra.mxu1 %v10955_v35  ;;  %6464 = vmatprep.subr.bf16.mxu0 %v10960_v63  ;;  %v11039_v35 = vld [vmem:[#allocation15 + $0xe08] ss:$16 sps:$4 sm:$0xff]   ;;  %v11044_v63 = vld [vmem:[#allocation15 + $0xe24] ss:$16 sps:$4 sm:$0xff]  }
 0xd49   :  { %6792 = vmatprep.subr.bf16.mxu1 %v10963_v0  ;;  %v3117_v0 = vpack.c.bf16 %v12904_v34, %v12904_v34  ;;  %v11059_v34 = vld [vmem:[#allocation15 + $0xe6c] ss:$16 sps:$4 sm:$0xff]  }
 0xd4b   :  { %6465 = vmatpush1.bf16.msra.mxu0 %v10958_v11  ;;  %v11047_v11 = vld [vmem:[#allocation15 + $0xe2c] ss:$16 sps:$4 sm:$0xff]  }
 0xd4c   :  { %6793 = vmatpush1.bf16.msra.mxu1 %v10961_v44  ;;  %6466 = vmatprep.subr.bf16.mxu0 %v10966_v2  ;;  %v11042_v44 = vld [vmem:[#allocation15 + $0xe20] ss:$16 sps:$4 sm:$0xff]   ;;  %v11045_v2 = vld [vmem:[#allocation15 + $0xe28] ss:$16 sps:$4 sm:$0xff]  }
 0xd4d   :  { %6794 = vmatprep.subr.bf16.mxu1 %v10969_v13  ;;  %v11050_v13 = vld [vmem:[#allocation15 + $0xe44] ss:$16 sps:$4 sm:$0xff]  }
 0xd4f   :  { %6467 = vmatpush1.bf16.msra.mxu0 %v10964_v14  ;;  %v11053_v14 = vld [vmem:[#allocation15 + $0xe4c] ss:$16 sps:$4 sm:$0xff]  }
 0xd50   :  { %6795 = vmatpush1.bf16.msra.mxu1 %v10967_v19  ;;  %6468 = vmatprep.subr.bf16.mxu0 %v10972_v18  ;;  %v11051_v19 = vld [vmem:[#allocation15 + $0xe48] ss:$16 sps:$4 sm:$0xff]   ;;  %v11056_v18 = vld [vmem:[#allocation15 + $0xe64] ss:$16 sps:$4 sm:$0xff]  }
 0xd51   :  { %6796 = vmatprep.subr.bf16.mxu1 %v10975_v61  ;;  %v11054_v61 = vld [vmem:[#allocation15 + $0xe60] ss:$16 sps:$4 sm:$0xff]  }
 0xd53   :  { %6469 = vmatpush1.bf16.msra.mxu0 %v10970_v32  ;;  %v11057_v32 = vld [vmem:[#allocation15 + $0xe68] ss:$16 sps:$4 sm:$0xff]  }
 0xd54   :  { %6797 = vmatpush1.bf16.msra.mxu1 %v10973_v59  ;;  %6470 = vmatprep.subr.bf16.mxu0 %v10978_v43  ;;  %v11062_v59 = vld [vmem:[#allocation15 + $0xe84] ss:$16 sps:$4 sm:$0xff]   ;;  %v11065_v43 = vld [vmem:[#allocation15 + $0xe8c] ss:$16 sps:$4 sm:$0xff]  }
 0xd55   :  { %6798 = vmatprep.subr.bf16.mxu1 %v10981_v17  ;;  %v11060_v17 = vld [vmem:[#allocation15 + $0xe80] ss:$16 sps:$4 sm:$0xff]  }
 0xd57   :  { %6471 = vmatpush1.bf16.msra.mxu0 %v10976_v56  ;;  %v11063_v56 = vld [vmem:[#allocation15 + $0xe88] ss:$16 sps:$4 sm:$0xff]  }
 0xd58   :  { %6799 = vmatpush1.bf16.msra.mxu1 %v10979_v58  ;;  %6472 = vmatprep.subr.bf16.mxu0 %v10984_v28  ;;  %v11068_v58 = vld [vmem:[#allocation15 + $0xea4] ss:$16 sps:$4 sm:$0xff]   ;;  %v11071_v28 = vld [vmem:[#allocation15 + $0xeac] ss:$16 sps:$4 sm:$0xff]  }
 0xd59   :  { %6800 = vmatprep.subr.bf16.mxu1 %v10987_v40  ;;  %v11066_v40 = vld [vmem:[#allocation15 + $0xea0] ss:$16 sps:$4 sm:$0xff]  }
 0xd5b   :  { %6473 = vmatpush1.bf16.msra.mxu0 %v10982_v48  ;;  %v11069_v48 = vld [vmem:[#allocation15 + $0xea8] ss:$16 sps:$4 sm:$0xff]  }
 0xd5c   :  { %6801 = vmatpush1.bf16.msra.mxu1 %v10985_v29  ;;  %6474 = vmatprep.subr.bf16.mxu0 %v10990_v27  ;;  %v11074_v29 = vld [vmem:[#allocation15 + $0xec4] ss:$16 sps:$4 sm:$0xff]   ;;  %v11077_v27 = vld [vmem:[#allocation15 + $0xecc] ss:$16 sps:$4 sm:$0xff]  }
 0xd5d   :  { %6802 = vmatprep.subr.bf16.mxu1 %v10993_v23  ;;  %v11072_v23 = vld [vmem:[#allocation15 + $0xec0] ss:$16 sps:$4 sm:$0xff]  }
 0xd5f   :  { %6475 = vmatpush1.bf16.msra.mxu0 %v10988_v25  ;;  %v11075_v25 = vld [vmem:[#allocation15 + $0xec8] ss:$16 sps:$4 sm:$0xff]  }
 0xd60   :  { %6803 = vmatpush1.bf16.msra.mxu1 %v10991_v4  ;;  %6476 = vmatprep.subr.bf16.mxu0 %v10996_v3  ;;  %v11080_v4 = vld [vmem:[#allocation15 + $0xee4] ss:$16 sps:$4 sm:$0xff]   ;;  %v11083_v3 = vld [vmem:[#allocation15 + $0xeec] ss:$16 sps:$4 sm:$0xff]  }
 0xd61   :  { %6804 = vmatprep.subr.bf16.mxu1 %v10999_v53  ;;  %v11078_v53 = vld [vmem:[#allocation15 + $0xee0] ss:$16 sps:$4 sm:$0xff]  }
 0xd63   :  { %6477 = vmatpush1.bf16.msra.mxu0 %v10994_v52  ;;  %v11081_v52 = vld [vmem:[#allocation15 + $0xee8] ss:$16 sps:$4 sm:$0xff]  }
 0xd64   :  { %6805 = vmatpush1.bf16.msra.mxu1 %v10997_v38  ;;  %6478 = vmatprep.subr.bf16.mxu0 %v11002_v33  ;;  %v11086_v38 = vld [vmem:[#allocation15 + $0xf04] ss:$16 sps:$4 sm:$0xff]   ;;  %v11089_v33 = vld [vmem:[#allocation15 + $0xf0c] ss:$16 sps:$4 sm:$0xff]  }
 0xd65   :  { %6806 = vmatprep.subr.bf16.mxu1 %v11005_v24  ;;  %v11084_v24 = vld [vmem:[#allocation15 + $0xf00] ss:$16 sps:$4 sm:$0xff]  }
 0xd67   :  { %6479 = vmatpush1.bf16.msra.mxu0 %v11000_v57  ;;  %v11087_v57 = vld [vmem:[#allocation15 + $0xf08] ss:$16 sps:$4 sm:$0xff]  }
 0xd68   :  { %6807 = vmatpush1.bf16.msra.mxu1 %v11003_v51  ;;  %6480 = vmatprep.subr.bf16.mxu0 %v11008_v21  ;;  %v11092_v51 = vld [vmem:[#allocation15 + $0xf24] ss:$16 sps:$4 sm:$0xff]   ;;  %v11095_v21 = vld [vmem:[#allocation15 + $0xf2c] ss:$16 sps:$4 sm:$0xff]  }
 0xd69   :  { %6808 = vmatprep.subr.bf16.mxu1 %v11011_v30  ;;  %v11090_v30 = vld [vmem:[#allocation15 + $0xf20] ss:$16 sps:$4 sm:$0xff]  }
 0xd6b   :  { %6481 = vmatpush1.bf16.msra.mxu0 %v11006_v39  ;;  %v11093_v39 = vld [vmem:[#allocation15 + $0xf28] ss:$16 sps:$4 sm:$0xff]  }
 0xd6c   :  { %6809 = vmatpush1.bf16.msra.mxu1 %v11009_v6  ;;  %6482 = vmatprep.subr.bf16.mxu0 %v11014_v50  ;;  %v11098_v6 = vld [vmem:[#allocation15 + $0xf44] ss:$16 sps:$4 sm:$0xff]   ;;  %v11101_v50 = vld [vmem:[#allocation15 + $0xf4c] ss:$16 sps:$4 sm:$0xff]  }
 0xd6d   :  { %6810 = vmatprep.subr.bf16.mxu1 %v11017_v54  ;;  %v11096_v54 = vld [vmem:[#allocation15 + $0xf40] ss:$16 sps:$4 sm:$0xff]  }
 0xd6f   :  { %6483 = vmatpush1.bf16.msra.mxu0 %v11012_v10  ;;  %v11099_v10 = vld [vmem:[#allocation15 + $0xf48] ss:$16 sps:$4 sm:$0xff]  }
 0xd70   :  { %6811 = vmatpush1.bf16.msra.mxu1 %v11015_v47  ;;  %6484 = vmatprep.subr.bf16.mxu0 %v11020_v49  ;;  %v11104_v47 = vld [vmem:[#allocation15 + $0xf64] ss:$16 sps:$4 sm:$0xff]   ;;  %v11107_v49 = vld [vmem:[#allocation15 + $0xf6c] ss:$16 sps:$4 sm:$0xff]  }
 0xd71   :  { %6812 = vmatprep.subr.bf16.mxu1 %v11023_v7  ;;  %v11102_v7 = vld [vmem:[#allocation15 + $0xf60] ss:$16 sps:$4 sm:$0xff]  }
 0xd73   :  { %6485 = vmatpush1.bf16.msra.mxu0 %v11018_v15  ;;  %v11105_v15 = vld [vmem:[#allocation15 + $0xf68] ss:$16 sps:$4 sm:$0xff]  }
 0xd74   :  { %6813 = vmatpush1.bf16.msra.mxu1 %v11021_v9  ;;  %6486 = vmatprep.subr.bf16.mxu0 %v11026_v60  ;;  %v11110_v9 = vld [vmem:[#allocation15 + $0xf84] ss:$16 sps:$4 sm:$0xff]   ;;  %v11113_v60 = vld [vmem:[#allocation15 + $0xf8c] ss:$16 sps:$4 sm:$0xff]  }
 0xd75   :  { %6814 = vmatprep.subr.bf16.mxu1 %v11029_v12  ;;  %v11108_v12 = vld [vmem:[#allocation15 + $0xf80] ss:$16 sps:$4 sm:$0xff]  }
 0xd77   :  { %6487 = vmatpush1.bf16.msra.mxu0 %v11024_v62  ;;  %v11111_v62 = vld [vmem:[#allocation15 + $0xf88] ss:$16 sps:$4 sm:$0xff]  }
 0xd78   :  { %6815 = vmatpush1.bf16.msra.mxu1 %v11027_v1  ;;  %6488 = vmatprep.subr.bf16.mxu0 %v11032_v42  ;;  %v11116_v1 = vld [vmem:[#allocation15 + $0xfa4] ss:$16 sps:$4 sm:$0xff]   ;;  %v11119_v42 = vld [vmem:[#allocation15 + $0xfac] ss:$16 sps:$4 sm:$0xff]  }
 0xd79   :  { %6816 = vmatprep.subr.bf16.mxu1 %v11035_v41  ;;  %v11114_v41 = vld [vmem:[#allocation15 + $0xfa0] ss:$16 sps:$4 sm:$0xff]  }
 0xd7b   :  { %6489 = vmatpush1.bf16.msra.mxu0 %v11030_v26  ;;  %v11117_v26 = vld [vmem:[#allocation15 + $0xfa8] ss:$16 sps:$4 sm:$0xff]  }
 0xd7c   :  { %6817 = vmatpush1.bf16.msra.mxu1 %v11033_v31  ;;  %6499 = vmatprep.subr.bf16.mxu0 %v11038_v5  ;;  %v11122_v31 = vld [vmem:[#allocation15 + $0xfc4] ss:$16 sps:$4 sm:$0xff]   ;;  %v11125_v5 = vld [vmem:[#allocation15 + $0xfcc] ss:$16 sps:$4 sm:$0xff]  }
 0xd7d   :  { %6827 = vmatprep.subr.bf16.mxu1 %v11041_v46  ;;  %v11120_v46 = vld [vmem:[#allocation15 + $0xfc0] ss:$16 sps:$4 sm:$0xff]  }
 0xd7e   :  { %6491 = vmatmul.mubr.bf16.vlgmr.msra.gmra.mrb[24].mxu0 %v3114_v16 }
 0xd7f   :  { %6819 = vmatmul.mubr.bf16.vlgmr.msra.gmra.mrb[28].mxu1 %v3114_v16  ;;  %6500 = vmatpush1.bf16.msra.mxu0 %v11036_v55  ;;  %v11123_v55 = vld [vmem:[#allocation15 + $0xfc8] ss:$16 sps:$4 sm:$0xff]   ;;  %v11128_v16 = vld [vmem:[#allocation15 + $0xfe4] ss:$16 sps:$4 sm:$0xff]  }
 0xd80   :  { %6531 = vmatprep.mubr.bf16.mxu0 %v3117_v0  ;;  %6828 = vmatpush1.bf16.msra.mxu1 %v11039_v35  ;;  %v11131_v35 = vld [vmem:[#allocation15 + $0xfec] ss:$16 sps:$4 sm:$0xff]  }
 0xd81   :  { %6859 = vmatprep.mubr.bf16.mxu1 %v3117_v0  ;;  %6501 = vmatprep.subr.bf16.mxu0 %v11044_v63  ;;  %v11126_v63 = vld [vmem:[#allocation15 + $0xfe0] ss:$16 sps:$4 sm:$0xff]   ;;  %v11129_v0 = vld [vmem:[#allocation15 + $0xfe8] ss:$16 sps:$4 sm:$0xff]  }
 0xd82   :  { %6829 = vmatprep.subr.bf16.mxu1 %v11047_v11  ;;  %v11134_v11 = vld [vmem:[#allocation18 + $0x4] ss:$16 sps:$4 sm:$0xff]  }
 0xd83   :  { %6502 = vmatpush1.bf16.msra.mxu0 %v11042_v44  ;;  %v11137_v44 = vld [vmem:[#allocation18 + $0xc] ss:$16 sps:$4 sm:$0xff]  }
 0xd84   :  { %6830 = vmatpush1.bf16.msra.mxu1 %v11045_v2  ;;  %6503 = vmatprep.subr.bf16.mxu0 %v11050_v13  ;;  %v11132_v2 = vld [vmem:[#allocation18] ss:$16 sps:$4 sm:$0xff]   ;;  %v3116_v13 = vpack.c.bf16 %v12909_v45, %v12909_v45  ;;  %v11147_v45 = vld [vmem:[#allocation18 + $0x48] ss:$16 sps:$4 sm:$0xff]  }
 0xd85   :  { %6831 = vmatprep.subr.bf16.mxu1 %v11053_v14  ;;  %v11135_v14 = vld [vmem:[#allocation18 + $0x8] ss:$16 sps:$4 sm:$0xff]  }
 0xd87   :  { %6504 = vmatpush1.bf16.msra.mxu0 %v11048_v8  ;;  %v11140_v8 = vld [vmem:[#allocation18 + $0x24] ss:$16 sps:$4 sm:$0xff]  }
 0xd88   :  { %6832 = vmatpush1.bf16.msra.mxu1 %v11051_v19  ;;  %6505 = vmatprep.subr.bf16.mxu0 %v11056_v18  ;;  %v11143_v19 = vld [vmem:[#allocation18 + $0x2c] ss:$16 sps:$4 sm:$0xff]   ;;  %v11138_v18 = vld [vmem:[#allocation18 + $0x20] ss:$16 sps:$4 sm:$0xff]  }
 0xd89   :  { %6833 = vmatprep.subr.bf16.mxu1 %v11059_v34  ;;  %v11141_v34 = vld [vmem:[#allocation18 + $0x28] ss:$16 sps:$4 sm:$0xff]  }
 0xd8b   :  { %6506 = vmatpush1.bf16.msra.mxu0 %v11054_v61  ;;  %v11146_v61 = vld [vmem:[#allocation18 + $0x44] ss:$16 sps:$4 sm:$0xff]  }
 0xd8c   :  { %6834 = vmatpush1.bf16.msra.mxu1 %v11057_v32  ;;  %6507 = vmatprep.subr.bf16.mxu0 %v11062_v59  ;;  %v11149_v32 = vld [vmem:[#allocation18 + $0x4c] ss:$16 sps:$4 sm:$0xff]   ;;  %v11144_v59 = vld [vmem:[#allocation18 + $0x40] ss:$16 sps:$4 sm:$0xff]  }
 0xd8d   :  { %6835 = vmatprep.subr.bf16.mxu1 %v11065_v43  ;;  %v11152_v43 = vld [vmem:[#allocation18 + $0x64] ss:$16 sps:$4 sm:$0xff]  }
 0xd8f   :  { %6508 = vmatpush1.bf16.msra.mxu0 %v11060_v17  ;;  %v11155_v17 = vld [vmem:[#allocation18 + $0x6c] ss:$16 sps:$4 sm:$0xff]  }
 0xd90   :  { %6836 = vmatpush1.bf16.msra.mxu1 %v11063_v56  ;;  %6509 = vmatprep.subr.bf16.mxu0 %v11068_v58  ;;  %v11150_v56 = vld [vmem:[#allocation18 + $0x60] ss:$16 sps:$4 sm:$0xff]   ;;  %v11153_v58 = vld [vmem:[#allocation18 + $0x68] ss:$16 sps:$4 sm:$0xff]  }
 0xd91   :  { %6837 = vmatprep.subr.bf16.mxu1 %v11071_v28  ;;  %v11158_v28 = vld [vmem:[#allocation18 + $0x84] ss:$16 sps:$4 sm:$0xff]  }
 0xd93   :  { %6510 = vmatpush1.bf16.msra.mxu0 %v11066_v40  ;;  %v11161_v40 = vld [vmem:[#allocation18 + $0x8c] ss:$16 sps:$4 sm:$0xff]  }
 0xd94   :  { %6838 = vmatpush1.bf16.msra.mxu1 %v11069_v48  ;;  %6511 = vmatprep.subr.bf16.mxu0 %v11074_v29  ;;  %v11156_v48 = vld [vmem:[#allocation18 + $0x80] ss:$16 sps:$4 sm:$0xff]   ;;  %v11159_v29 = vld [vmem:[#allocation18 + $0x88] ss:$16 sps:$4 sm:$0xff]  }
 0xd95   :  { %6839 = vmatprep.subr.bf16.mxu1 %v11077_v27  ;;  %v11164_v27 = vld [vmem:[#allocation18 + $0xa4] ss:$16 sps:$4 sm:$0xff]  }
 0xd97   :  { %6512 = vmatpush1.bf16.msra.mxu0 %v11072_v23  ;;  %v11167_v23 = vld [vmem:[#allocation18 + $0xac] ss:$16 sps:$4 sm:$0xff]  }
 0xd98   :  { %6840 = vmatpush1.bf16.msra.mxu1 %v11075_v25  ;;  %6513 = vmatprep.subr.bf16.mxu0 %v11080_v4  ;;  %v11162_v25 = vld [vmem:[#allocation18 + $0xa0] ss:$16 sps:$4 sm:$0xff]   ;;  %v11165_v4 = vld [vmem:[#allocation18 + $0xa8] ss:$16 sps:$4 sm:$0xff]  }
 0xd99   :  { %6841 = vmatprep.subr.bf16.mxu1 %v11083_v3  ;;  %v11170_v3 = vld [vmem:[#allocation18 + $0xc4] ss:$16 sps:$4 sm:$0xff]  }
 0xd9b   :  { %6514 = vmatpush1.bf16.msra.mxu0 %v11078_v53  ;;  %v11173_v53 = vld [vmem:[#allocation18 + $0xcc] ss:$16 sps:$4 sm:$0xff]  }
 0xd9c   :  { %6842 = vmatpush1.bf16.msra.mxu1 %v11081_v52  ;;  %6515 = vmatprep.subr.bf16.mxu0 %v11086_v38  ;;  %v11168_v52 = vld [vmem:[#allocation18 + $0xc0] ss:$16 sps:$4 sm:$0xff]   ;;  %v11171_v38 = vld [vmem:[#allocation18 + $0xc8] ss:$16 sps:$4 sm:$0xff]  }
 0xd9d   :  { %6843 = vmatprep.subr.bf16.mxu1 %v11089_v33  ;;  %v11176_v33 = vld [vmem:[#allocation18 + $0xe4] ss:$16 sps:$4 sm:$0xff]  }
 0xd9f   :  { %6516 = vmatpush1.bf16.msra.mxu0 %v11084_v24  ;;  %v11179_v24 = vld [vmem:[#allocation18 + $0xec] ss:$16 sps:$4 sm:$0xff]  }
 0xda0   :  { %6844 = vmatpush1.bf16.msra.mxu1 %v11087_v57  ;;  %6517 = vmatprep.subr.bf16.mxu0 %v11092_v51  ;;  %v11174_v57 = vld [vmem:[#allocation18 + $0xe0] ss:$16 sps:$4 sm:$0xff]   ;;  %v11177_v51 = vld [vmem:[#allocation18 + $0xe8] ss:$16 sps:$4 sm:$0xff]  }
 0xda1   :  { %6845 = vmatprep.subr.bf16.mxu1 %v11095_v21  ;;  %v11182_v21 = vld [vmem:[#allocation18 + $0x104] ss:$16 sps:$4 sm:$0xff]  }
 0xda3   :  { %6518 = vmatpush1.bf16.msra.mxu0 %v11090_v30  ;;  %v11185_v30 = vld [vmem:[#allocation18 + $0x10c] ss:$16 sps:$4 sm:$0xff]  }
 0xda4   :  { %6846 = vmatpush1.bf16.msra.mxu1 %v11093_v39  ;;  %6519 = vmatprep.subr.bf16.mxu0 %v11098_v6  ;;  %v11180_v39 = vld [vmem:[#allocation18 + $0x100] ss:$16 sps:$4 sm:$0xff]   ;;  %v11183_v6 = vld [vmem:[#allocation18 + $0x108] ss:$16 sps:$4 sm:$0xff]  }
 0xda5   :  { %6847 = vmatprep.subr.bf16.mxu1 %v11101_v50  ;;  %v11188_v50 = vld [vmem:[#allocation18 + $0x124] ss:$16 sps:$4 sm:$0xff]  }
 0xda7   :  { %6520 = vmatpush1.bf16.msra.mxu0 %v11096_v54  ;;  %v11191_v54 = vld [vmem:[#allocation18 + $0x12c] ss:$16 sps:$4 sm:$0xff]  }
 0xda8   :  { %6848 = vmatpush1.bf16.msra.mxu1 %v11099_v10  ;;  %6521 = vmatprep.subr.bf16.mxu0 %v11104_v47  ;;  %v11186_v10 = vld [vmem:[#allocation18 + $0x120] ss:$16 sps:$4 sm:$0xff]   ;;  %v11189_v47 = vld [vmem:[#allocation18 + $0x128] ss:$16 sps:$4 sm:$0xff]  }
 0xda9   :  { %6849 = vmatprep.subr.bf16.mxu1 %v11107_v49  ;;  %v11194_v49 = vld [vmem:[#allocation18 + $0x144] ss:$16 sps:$4 sm:$0xff]  }
 0xdab   :  { %6522 = vmatpush1.bf16.msra.mxu0 %v11102_v7  ;;  %v11197_v7 = vld [vmem:[#allocation18 + $0x14c] ss:$16 sps:$4 sm:$0xff]  }
 0xdac   :  { %6850 = vmatpush1.bf16.msra.mxu1 %v11105_v15  ;;  %6523 = vmatprep.subr.bf16.mxu0 %v11110_v9  ;;  %v11192_v15 = vld [vmem:[#allocation18 + $0x140] ss:$16 sps:$4 sm:$0xff]   ;;  %v11195_v9 = vld [vmem:[#allocation18 + $0x148] ss:$16 sps:$4 sm:$0xff]  }
 0xdad   :  { %6851 = vmatprep.subr.bf16.mxu1 %v11113_v60  ;;  %v11200_v60 = vld [vmem:[#allocation18 + $0x164] ss:$16 sps:$4 sm:$0xff]  }
 0xdaf   :  { %6524 = vmatpush1.bf16.msra.mxu0 %v11108_v12  ;;  %v11203_v12 = vld [vmem:[#allocation18 + $0x16c] ss:$16 sps:$4 sm:$0xff]  }
 0xdb0   :  { %6852 = vmatpush1.bf16.msra.mxu1 %v11111_v62  ;;  %6525 = vmatprep.subr.bf16.mxu0 %v11116_v1  ;;  %v11198_v62 = vld [vmem:[#allocation18 + $0x160] ss:$16 sps:$4 sm:$0xff]   ;;  %v11201_v1 = vld [vmem:[#allocation18 + $0x168] ss:$16 sps:$4 sm:$0xff]  }
 0xdb1   :  { %6853 = vmatprep.subr.bf16.mxu1 %v11119_v42  ;;  %v11206_v42 = vld [vmem:[#allocation18 + $0x184] ss:$16 sps:$4 sm:$0xff]  }
 0xdb3   :  { %6526 = vmatpush1.bf16.msra.mxu0 %v11114_v41  ;;  %v11209_v41 = vld [vmem:[#allocation18 + $0x18c] ss:$16 sps:$4 sm:$0xff]  }
 0xdb4   :  { %6854 = vmatpush1.bf16.msra.mxu1 %v11117_v26  ;;  %6527 = vmatprep.subr.bf16.mxu0 %v11122_v31  ;;  %v11204_v26 = vld [vmem:[#allocation18 + $0x180] ss:$16 sps:$4 sm:$0xff]   ;;  %v11207_v31 = vld [vmem:[#allocation18 + $0x188] ss:$16 sps:$4 sm:$0xff]  }
 0xdb5   :  { %6855 = vmatprep.subr.bf16.mxu1 %v11125_v5  ;;  %v11212_v5 = vld [vmem:[#allocation18 + $0x1a4] ss:$16 sps:$4 sm:$0xff]  }
 0xdb7   :  { %6528 = vmatpush1.bf16.msra.mxu0 %v11120_v46  ;;  %v11215_v46 = vld [vmem:[#allocation18 + $0x1ac] ss:$16 sps:$4 sm:$0xff]  }
 0xdb8   :  { %6856 = vmatpush1.bf16.msra.mxu1 %v11123_v55  ;;  %6529 = vmatprep.subr.bf16.mxu0 %v11128_v16  ;;  %v11210_v55 = vld [vmem:[#allocation18 + $0x1a0] ss:$16 sps:$4 sm:$0xff]   ;;  %v11213_v16 = vld [vmem:[#allocation18 + $0x1a8] ss:$16 sps:$4 sm:$0xff]  }
 0xdb9   :  { %6857 = vmatprep.subr.bf16.mxu1 %v11131_v35  ;;  %v11216_v35 = vld [vmem:[#allocation18 + $0x1c0] ss:$16 sps:$4 sm:$0xff]  }
 0xdbb   :  { %6530 = vmatpush1.bf16.msra.mxu0 %v11126_v63  ;;  %v11218_v63 = vld [vmem:[#allocation18 + $0x1c4] ss:$16 sps:$4 sm:$0xff]  }
 0xdbc   :  { %6858 = vmatpush1.bf16.msra.mxu1 %v11129_v0  ;;  %7666 = vmatprep.subr.bf16.mxu0 %v11134_v11  ;;  %v11219_v0 = vld [vmem:[#allocation18 + $0x1c8] ss:$16 sps:$4 sm:$0xff]   ;;  %v11221_v11 = vld [vmem:[#allocation18 + $0x1cc] ss:$16 sps:$4 sm:$0xff]  }
 0xdbd   :  { %7748 = vmatprep.subr.bf16.mxu1 %v11137_v44  ;;  %v11224_v44 = vld [vmem:[#allocation18 + $0x1e4] ss:$16 sps:$4 sm:$0xff]  }
 0xdbe   :  { %6532 = vmatmul.mubr.bf16.vlgmr.msra.gmra.mrb[24].mxu0 %v3116_v13 }
 0xdbf   :  { %6860 = vmatmul.mubr.bf16.vlgmr.msra.gmra.mrb[28].mxu1 %v3116_v13  ;;  %7667 = vmatpush1.bf16.msra.mxu0 %v11132_v2  ;;  %v11227_v2 = vld [vmem:[#allocation18 + $0x1ec] ss:$16 sps:$4 sm:$0xff]   ;;  %v11222_v13 = vld [vmem:[#allocation18 + $0x1e0] ss:$16 sps:$4 sm:$0xff]  }
 0xdc0   :  { %7749 = vmatpush1.bf16.msra.mxu1 %v11135_v14  ;;  %7668 = vmatprep.subr.bf16.mxu0 %v11140_v8  ;;  %v11225_v14 = vld [vmem:[#allocation18 + $0x1e8] ss:$16 sps:$4 sm:$0xff]   ;;  %v11230_v8 = vld [vmem:[#allocation18 + $0x204] ss:$16 sps:$4 sm:$0xff]  }
 0xdc1   :  { %7750 = vmatprep.subr.bf16.mxu1 %v11143_v19  ;;  %v11233_v19 = vld [vmem:[#allocation18 + $0x20c] ss:$16 sps:$4 sm:$0xff]  }
 0xdc3   :  { %7669 = vmatpush1.bf16.msra.mxu0 %v11138_v18  ;;  %v12937_v18 = vld [vmem:[#allocation16] sm:$0xf] }
 0xdc4   :  { %7751 = vmatpush1.bf16.msra.mxu1 %v11141_v34  ;;  %7670 = vmatprep.subr.bf16.mxu0 %v11146_v61  ;;  %v3646_v34 = vsub.s32 3, %v12081_v36  ;;  %v3635_v61 = vrot.slane %v12937_v18, %v12084_v37 }
 0xdc5   :  { %7752 = vmatprep.subr.bf16.mxu1 %v11149_v32  ;;  %v3639_v32 = vrot.slane %v12937_v18, %v12165_v22 }
 0xdc7   :  { %7671 = vmatpush1.bf16.msra.mxu0 %v11144_v59  ;;  %v3647_v59 = vrot.slane %v12937_v18, %v3646_v34 }
 0xdc8   :  { %7753 = vmatpush1.bf16.msra.mxu1 %v11147_v45  ;;  %7672 = vmatprep.subr.bf16.mxu0 %v11152_v43 }
 0xdc9   :  { %7754 = vmatprep.subr.bf16.mxu1 %v11155_v17 }
 0xdcb   :  { %7673 = vmatpush1.bf16.msra.mxu0 %v11150_v56 }
 0xdcc   :  { %7755 = vmatpush1.bf16.msra.mxu1 %v11153_v58  ;;  %7674 = vmatprep.subr.bf16.mxu0 %v11158_v28 }
 0xdcd   :  { %7756 = vmatprep.subr.bf16.mxu1 %v11161_v40 }
 0xdcf   :  { %7675 = vmatpush1.bf16.msra.mxu0 %v11156_v48 }
 0xdd0   :  { %7757 = vmatpush1.bf16.msra.mxu1 %v11159_v29  ;;  %7676 = vmatprep.subr.bf16.mxu0 %v11164_v27 }
 0xdd1   :  { %7758 = vmatprep.subr.bf16.mxu1 %v11167_v23 }
 0xdd3   :  { %7677 = vmatpush1.bf16.msra.mxu0 %v11162_v25 }
 0xdd4   :  { %7759 = vmatpush1.bf16.msra.mxu1 %v11165_v4  ;;  %7678 = vmatprep.subr.bf16.mxu0 %v11170_v3 }
 0xdd5   :  { %7760 = vmatprep.subr.bf16.mxu1 %v11173_v53 }
 0xdd7   :  { %7679 = vmatpush1.bf16.msra.mxu0 %v11168_v52  ;;  %v11228_v52 = vld [vmem:[#allocation18 + $0x200] ss:$16 sps:$4 sm:$0xff]  }
 0xdd8   :  { %7761 = vmatpush1.bf16.msra.mxu1 %v11171_v38  ;;  %7680 = vmatprep.subr.bf16.mxu0 %v11176_v33  ;;  %v11231_v38 = vld [vmem:[#allocation18 + $0x208] ss:$16 sps:$4 sm:$0xff]  }
 0xdd9   :  { %7762 = vmatprep.subr.bf16.mxu1 %v11179_v24  ;;  %v11236_v24 = vld [vmem:[#allocation18 + $0x224] ss:$16 sps:$4 sm:$0xff]  }
 0xddb   :  { %7681 = vmatpush1.bf16.msra.mxu0 %v11174_v57  ;;  %v11239_v57 = vld [vmem:[#allocation18 + $0x22c] ss:$16 sps:$4 sm:$0xff]  }
 0xddc   :  { %7763 = vmatpush1.bf16.msra.mxu1 %v11177_v51  ;;  %7682 = vmatprep.subr.bf16.mxu0 %v11182_v21  ;;  %v11234_v21 = vld [vmem:[#allocation18 + $0x220] ss:$16 sps:$4 sm:$0xff]  }
 0xddd   :  { %7764 = vmatprep.subr.bf16.mxu1 %v11185_v30  ;;  %v11237_v30 = vld [vmem:[#allocation18 + $0x228] ss:$16 sps:$4 sm:$0xff]  }
 0xddf   :  { %7683 = vmatpush1.bf16.msra.mxu0 %v11180_v39  ;;  %v11242_v39 = vld [vmem:[#allocation18 + $0x244] ss:$16 sps:$4 sm:$0xff]  }
 0xde0   :  { %7765 = vmatpush1.bf16.msra.mxu1 %v11183_v6  ;;  %7684 = vmatprep.subr.bf16.mxu0 %v11188_v50  ;;  %v11245_v6 = vld [vmem:[#allocation18 + $0x24c] ss:$16 sps:$4 sm:$0xff]   ;;  %v11240_v50 = vld [vmem:[#allocation18 + $0x240] ss:$16 sps:$4 sm:$0xff]  }
 0xde1   :  { %7766 = vmatprep.subr.bf16.mxu1 %v11191_v54  ;;  %v11243_v54 = vld [vmem:[#allocation18 + $0x248] ss:$16 sps:$4 sm:$0xff]  }
 0xde3   :  { %7685 = vmatpush1.bf16.msra.mxu0 %v11186_v10  ;;  %v11248_v10 = vld [vmem:[#allocation18 + $0x264] ss:$16 sps:$4 sm:$0xff]  }
 0xde4   :  { %7767 = vmatpush1.bf16.msra.mxu1 %v11189_v47  ;;  %7686 = vmatprep.subr.bf16.mxu0 %v11194_v49  ;;  %v11251_v47 = vld [vmem:[#allocation18 + $0x26c] ss:$16 sps:$4 sm:$0xff]   ;;  %v11246_v49 = vld [vmem:[#allocation18 + $0x260] ss:$16 sps:$4 sm:$0xff]  }
 0xde5   :  { %7768 = vmatprep.subr.bf16.mxu1 %v11197_v7  ;;  %v11249_v7 = vld [vmem:[#allocation18 + $0x268] ss:$16 sps:$4 sm:$0xff]  }
 0xde7   :  { %7687 = vmatpush1.bf16.msra.mxu0 %v11192_v15  ;;  %v11254_v15 = vld [vmem:[#allocation18 + $0x284] ss:$16 sps:$4 sm:$0xff]  }
 0xde8   :  { %7769 = vmatpush1.bf16.msra.mxu1 %v11195_v9  ;;  %7688 = vmatprep.subr.bf16.mxu0 %v11200_v60  ;;  %v11257_v9 = vld [vmem:[#allocation18 + $0x28c] ss:$16 sps:$4 sm:$0xff]   ;;  %v11252_v60 = vld [vmem:[#allocation18 + $0x280] ss:$16 sps:$4 sm:$0xff]  }
 0xde9   :  { %7770 = vmatprep.subr.bf16.mxu1 %v11203_v12  ;;  %v11255_v12 = vld [vmem:[#allocation18 + $0x288] ss:$16 sps:$4 sm:$0xff]  }
 0xdeb   :  { %7689 = vmatpush1.bf16.msra.mxu0 %v11198_v62  ;;  %v11260_v62 = vld [vmem:[#allocation18 + $0x2a4] ss:$16 sps:$4 sm:$0xff]  }
 0xdec   :  { %7771 = vmatpush1.bf16.msra.mxu1 %v11201_v1  ;;  %7690 = vmatprep.subr.bf16.mxu0 %v11206_v42  ;;  %v11263_v1 = vld [vmem:[#allocation18 + $0x2ac] ss:$16 sps:$4 sm:$0xff]   ;;  %v11258_v42 = vld [vmem:[#allocation18 + $0x2a0] ss:$16 sps:$4 sm:$0xff]  }
 0xded   :  { %7772 = vmatprep.subr.bf16.mxu1 %v11209_v41  ;;  %v11261_v41 = vld [vmem:[#allocation18 + $0x2a8] ss:$16 sps:$4 sm:$0xff]  }
 0xdef   :  { %7691 = vmatpush1.bf16.msra.mxu0 %v11204_v26  ;;  %v11266_v26 = vld [vmem:[#allocation18 + $0x2c4] ss:$16 sps:$4 sm:$0xff]  }
 0xdf0   :  { %7773 = vmatpush1.bf16.msra.mxu1 %v11207_v31  ;;  %7692 = vmatprep.subr.bf16.mxu0 %v11212_v5  ;;  %v11269_v31 = vld [vmem:[#allocation18 + $0x2cc] ss:$16 sps:$4 sm:$0xff]   ;;  %v11264_v5 = vld [vmem:[#allocation18 + $0x2c0] ss:$16 sps:$4 sm:$0xff]  }
 0xdf1   :  { %7774 = vmatprep.subr.bf16.mxu1 %v11215_v46  ;;  %v11267_v46 = vld [vmem:[#allocation18 + $0x2c8] ss:$16 sps:$4 sm:$0xff]  }
 0xdf3   :  { %7693 = vmatpush1.bf16.msra.mxu0 %v11210_v55  ;;  %v11272_v55 = vld [vmem:[#allocation18 + $0x2e4] ss:$16 sps:$4 sm:$0xff]  }
 0xdf4   :  { %7775 = vmatpush1.bf16.msra.mxu1 %v11213_v16  ;;  %7694 = vmatprep.subr.bf16.mxu0 %v11218_v63  ;;  %v11275_v16 = vld [vmem:[#allocation18 + $0x2ec] ss:$16 sps:$4 sm:$0xff]   ;;  %v11273_v63 = vld [vmem:[#allocation18 + $0x2e8] ss:$16 sps:$4 sm:$0xff]  }
 0xdf5   :  { %7776 = vmatprep.subr.bf16.mxu1 %v11221_v11  ;;  %v11281_v11 = vld [vmem:[#allocation18 + $0x30c] ss:$16 sps:$4 sm:$0xff]  }
 0xdf7   :  { %7695 = vmatpush1.bf16.msra.mxu0 %v11216_v35  ;;  %v11270_v35 = vld [vmem:[#allocation18 + $0x2e0] ss:$16 sps:$4 sm:$0xff]  }
 0xdf8   :  { %7777 = vmatpush1.bf16.msra.mxu1 %v11219_v0  ;;  %7696 = vmatprep.subr.bf16.mxu0 %v11224_v44  ;;  %v11278_v0 = vld [vmem:[#allocation18 + $0x304] ss:$16 sps:$4 sm:$0xff]   ;;  %v11276_v44 = vld [vmem:[#allocation18 + $0x300] ss:$16 sps:$4 sm:$0xff]  }
 0xdf9   :  { %7778 = vmatprep.subr.bf16.mxu1 %v11227_v2  ;;  %v11279_v2 = vld [vmem:[#allocation18 + $0x308] ss:$16 sps:$4 sm:$0xff]  }
 0xdfb   :  { %7697 = vmatpush1.bf16.msra.mxu0 %v11222_v13  ;;  %v11284_v13 = vld [vmem:[#allocation18 + $0x324] ss:$16 sps:$4 sm:$0xff]  }
 0xdfc   :  { %7779 = vmatpush1.bf16.msra.mxu1 %v11225_v14  ;;  %7707 = vmatprep.subr.bf16.mxu0 %v11230_v8  ;;  %v11287_v14 = vld [vmem:[#allocation18 + $0x32c] ss:$16 sps:$4 sm:$0xff]   ;;  %v11282_v8 = vld [vmem:[#allocation18 + $0x320] ss:$16 sps:$4 sm:$0xff]  }
 0xdfd   :  { %7789 = vmatprep.subr.bf16.mxu1 %v11233_v19  ;;  %v11285_v19 = vld [vmem:[#allocation18 + $0x328] ss:$16 sps:$4 sm:$0xff]  }
 0xe91   :  { %v6533_v45 = vpop.f32.mrb[24].mxu0 }
 0xe92   :  { %v10223_v43 = vadd.f32 %v6533_v45, %v3635_v61  ;;  %v12947_v17 = vpop.f32.mrb[28].mxu1  ;;  %v6535_v56 = vpop.f32.mrb[25].mxu0  ;;  %v11290_v61 = vld [vmem:[#allocation18 + $0x344] ss:$16 sps:$4 sm:$0xff]   ;;  %v11291_v45 = vld [vmem:[#allocation18 + $0x348] ss:$16 sps:$4 sm:$0xff]  }
 0xe93   :  { %v10224_v58 = vadd.f32 %v6535_v56, %v3639_v32  ;;  %v6863_v28 = vpop.f32.mrb[29].mxu1  ;;  %v6537_v40 = vpop.f32.mrb[26].mxu0  ;;  %v11293_v32 = vld [vmem:[#allocation18 + $0x34c] ss:$16 sps:$4 sm:$0xff]  }
 0xe94   :  { %v6868_v48 = vmax.f32 %v10223_v43, 0.0  ;;  %v10226_v29 = vadd.f32 %v6863_v28, %v3647_v59  ;;  %v6865_v27 = vpop.f32.mrb[30].mxu1  ;;  %v6538_v23 = vpop.f32.mrb[27].mxu0  ;;  %v11288_v59 = vld [vmem:[#allocation18 + $0x340] ss:$16 sps:$4 sm:$0xff]  }
 0xe95   :  { %v6869_v25 = vmax.f32 %v10224_v58, 0.0  ;;  %v6866_v4 = vpop.f32.mrb[31].mxu1  ;;  %v11296_v43 = vld [vmem:[#allocation18 + $0x364] ss:$16 sps:$4 sm:$0xff]   ;;  %v11299_v56 = vld [vmem:[#allocation18 + $0x36c] ss:$16 sps:$4 sm:$0xff]  }
 0xe96   :  { %v6871_v3 = vmax.f32 %v10226_v29, 0.0  ;;  %v6872_v33 = vpack.c.bf16 %v6868_v48, %v6868_v48  ;;  %v11294_v58 = vld [vmem:[#allocation18 + $0x360] ss:$16 sps:$4 sm:$0xff]   ;;  %v11297_v28 = vld [vmem:[#allocation18 + $0x368] ss:$16 sps:$4 sm:$0xff]  }
 0xe97   :  { %v6873_v53 = vpack.c.bf16 %v6869_v25, %v6869_v25  ;;  %v11302_v40 = vld [vmem:[#allocation18 + $0x384] ss:$16 sps:$4 sm:$0xff]   ;;  %v11305_v48 = vld [vmem:[#allocation18 + $0x38c] ss:$16 sps:$4 sm:$0xff]   ;;  %v11300_v29 = vld [vmem:[#allocation18 + $0x380] ss:$16 sps:$4 sm:$0xff]  }
 0xe98   :  { %v6875_v51 = vpack.c.bf16 %v6871_v3, %v6871_v3  ;;  %v11303_v27 = vld [vmem:[#allocation18 + $0x388] ss:$16 sps:$4 sm:$0xff]   ;;  %v11308_v23 = vld [vmem:[#allocation18 + $0x3a4] ss:$16 sps:$4 sm:$0xff]   ;;  %v11311_v25 = vld [vmem:[#allocation18 + $0x3ac] ss:$16 sps:$4 sm:$0xff]  }
 0xe99   :  { %7698 = vmatprep.mubr.bf16.mxu0 %v6873_v53  ;;  %7780 = vmatprep.mubr.bf16.mxu1 %v6873_v53  ;;  %v11306_v4 = vld [vmem:[#allocation18 + $0x3a0] ss:$16 sps:$4 sm:$0xff]   ;;  %v11309_v3 = vld [vmem:[#allocation18 + $0x3a8] ss:$16 sps:$4 sm:$0xff]   ;;  %v3643_v53 = vrot.slane %v12937_v18, %v12162_v20 }
 0xe9a   :  { %7699 = vmatmul.mubr.bf16.vlgmr.msra.gmra.mrb[28].mxu0 %v6872_v33  ;;  %7781 = vmatmul.mubr.bf16.vlgmr.msra.gmra.mrb[32].mxu1 %v6872_v33  ;;  %v11312_v33 = vld [vmem:[#allocation18 + $0x3c0] ss:$16 sps:$4 sm:$0xff]   ;;  %v11321_v18 = vld [vmem:[#allocation18 + $0x3e8] ss:$16 sps:$4 sm:$0xff]  }
 0xe9b   :  { %7708 = vmatpush1.bf16.msra.mxu0 %v11228_v52  ;;  %7790 = vmatpush1.bf16.msra.mxu1 %v11231_v38  ;;  %v11314_v52 = vld [vmem:[#allocation18 + $0x3c4] ss:$16 sps:$4 sm:$0xff]   ;;  %v11317_v38 = vld [vmem:[#allocation18 + $0x3cc] ss:$16 sps:$4 sm:$0xff]  }
 0xe9c   :  { %7739 = vmatprep.mubr.bf16.mxu0 %v6875_v51  ;;  %7821 = vmatprep.mubr.bf16.mxu1 %v6875_v51  ;;  %v11320_v51 = vld [vmem:[#allocation18 + $0x3e4] ss:$16 sps:$4 sm:$0xff]  }
 0xe9d   :  { %7709 = vmatprep.subr.bf16.mxu0 %v11236_v24  ;;  %7791 = vmatprep.subr.bf16.mxu1 %v11239_v57  ;;  %v11315_v24 = vld [vmem:[#allocation18 + $0x3c8] ss:$16 sps:$4 sm:$0xff]   ;;  %v10225_v57 = vadd.f32 %v12947_v17, %v3643_v53  ;;  %v7859_v53 = vld [vmem:[#allocation21 + $0xc8] sm:$0xff] }
 0xe9e   :  { %v7866_v17 = vld [vmem:[#allocation21 + $0x100] sm:$0xff] }
 0xe9f   :  { %7710 = vmatpush1.bf16.msra.mxu0 %v11234_v21  ;;  %7792 = vmatpush1.bf16.msra.mxu1 %v11237_v30  ;;  %v11323_v21 = vld [vmem:[#allocation18 + $0x3ec] ss:$16 sps:$4 sm:$0xff]   ;;  %v7850_v30 = vld [vmem:[#allocation21 + $0x80] sm:$0xff] }
 0xea0   :  { %7711 = vmatprep.subr.bf16.mxu0 %v11242_v39  ;;  %7793 = vmatprep.subr.bf16.mxu1 %v11245_v6  ;;  %v7851_v39 = vld [vmem:[#allocation21 + $0x88] sm:$0xff]  ;;  %v7882_v6 = vld [vmem:[#allocation21 + $0x180] sm:$0xff] }
 0xea3   :  { %7712 = vmatpush1.bf16.msra.mxu0 %v11240_v50  ;;  %7794 = vmatpush1.bf16.msra.mxu1 %v11243_v54  ;;  %v7883_v50 = vld [vmem:[#allocation21 + $0x188] sm:$0xff] }
 0xea4   :  { %7713 = vmatprep.subr.bf16.mxu0 %v11248_v10  ;;  %7795 = vmatprep.subr.bf16.mxu1 %v11251_v47  ;;  %v11318_v54 = vld [vmem:[#allocation18 + $0x3e0] ss:$16 sps:$4 sm:$0xff]   ;;  %v7834_v10 = vld [vmem:[#allocation21] sm:$0xff] }
 0xea5   :  { %v7835_v47 = vld [vmem:[#allocation21 + $0x8] sm:$0xff] }
 0xea7   :  { %7714 = vmatpush1.bf16.msra.mxu0 %v11246_v49  ;;  %7796 = vmatpush1.bf16.msra.mxu1 %v11249_v7  ;;  %v6870_v49 = vmax.f32 %v10225_v57, 0.0  ;;  %v10159_v7 = vpack.c.bf16 %v7851_v39, %v7850_v30  ;;  %v7842_v57 = vld [vmem:[#allocation21 + $0x40] sm:$0xff] }
 0xea8   :  { %7715 = vmatprep.subr.bf16.mxu0 %v11254_v15  ;;  %7797 = vmatprep.subr.bf16.mxu1 %v11257_v9  ;;  %v10191_v15 = vpack.c.bf16 %v7883_v50, %v7882_v6  ;;  %v7867_v9 = vld [vmem:[#allocation21 + $0x108] sm:$0xff]  ;;  %v7874_v39 = vld [vmem:[#allocation21 + $0x140] sm:$0xff]  ;;  %v7860_v50 = vld [vmem:[#allocation21 + $0xd0] sm:$0xff] }
 0xea9   :  { %v7875_v6 = vld [vmem:[#allocation21 + $0x148] sm:$0xff] }
 0xeab   :  { %7716 = vmatpush1.bf16.msra.mxu0 %v11252_v60  ;;  %7798 = vmatpush1.bf16.msra.mxu1 %v11255_v12  ;;  %v7852_v60 = vld [vmem:[#allocation21 + $0x90] sm:$0xff]  ;;  %v7853_v12 = vld [vmem:[#allocation21 + $0x98] sm:$0xff] }
 0xeac   :  { %7717 = vmatprep.subr.bf16.mxu0 %v11260_v62  ;;  %7799 = vmatprep.subr.bf16.mxu1 %v11263_v1  ;;  %v7884_v62 = vld [vmem:[#allocation21 + $0x190] sm:$0xff]  ;;  %v7885_v1 = vld [vmem:[#allocation21 + $0x198] sm:$0xff] }
 0xeaf   :  { %7718 = vmatpush1.bf16.msra.mxu0 %v11258_v42  ;;  %7800 = vmatpush1.bf16.msra.mxu1 %v11261_v41  ;;  %v10161_v42 = vpack.c.bf16 %v7835_v47, %v7834_v10  ;;  %v10193_v41 = vpack.c.bf16 %v7867_v9, %v7866_v17  ;;  %v7893_v10 = vld [vmem:[#allocation21 + $0x1d8] sm:$0xff] }
 0xeb0   :  { %7719 = vmatprep.subr.bf16.mxu0 %v11266_v26  ;;  %7801 = vmatprep.subr.bf16.mxu1 %v11269_v31  ;;  %v7836_v26 = vld [vmem:[#allocation21 + $0x10] sm:$0xff]  ;;  %v7837_v31 = vld [vmem:[#allocation21 + $0x18] sm:$0xff] }
 0xeb3   :  { %7720 = vmatpush1.bf16.msra.mxu0 %v11264_v5  ;;  %7802 = vmatpush1.bf16.msra.mxu1 %v11267_v46  ;;  %v6874_v5 = vpack.c.bf16 %v6870_v49, %v6870_v49  ;;  %v10163_v46 = vpack.c.bf16 %v7853_v12, %v7852_v60  ;;  %v10209_v49 = vpack.c.bf16 %v7875_v6, %v7874_v39  ;;  %v7876_v60 = vld [vmem:[#allocation21 + $0x150] sm:$0xff]  ;;  %v7877_v12 = vld [vmem:[#allocation21 + $0x158] sm:$0xff] }
 0xeb4   :  { %7721 = vmatprep.subr.bf16.mxu0 %v11272_v55  ;;  %7803 = vmatprep.subr.bf16.mxu1 %v11275_v16  ;;  %v10195_v55 = vpack.c.bf16 %v7885_v1, %v7884_v62  ;;  %v7868_v16 = vld [vmem:[#allocation21 + $0x110] sm:$0xff]  ;;  %v7862_v62 = vld [vmem:[#allocation21 + $0xe0] sm:$0xff]  ;;  %v7863_v1 = vld [vmem:[#allocation21 + $0xe8] sm:$0xff] }
 0xeb7   :  { %7722 = vmatpush1.bf16.msra.mxu0 %v11270_v35  ;;  %7804 = vmatpush1.bf16.msra.mxu1 %v11273_v63  ;;  %v7869_v35 = vld [vmem:[#allocation21 + $0x118] sm:$0xff]  ;;  %v7854_v63 = vld [vmem:[#allocation21 + $0xa0] sm:$0xff] }
 0xeb8   :  { %7723 = vmatprep.subr.bf16.mxu0 %v11278_v0  ;;  %7805 = vmatprep.subr.bf16.mxu1 %v11281_v11  ;;  %v7855_v0 = vld [vmem:[#allocation21 + $0xa8] sm:$0xff]  ;;  %v7886_v11 = vld [vmem:[#allocation21 + $0x1a0] sm:$0xff] }
 0xebb   :  { %7724 = vmatpush1.bf16.msra.mxu0 %v11276_v44  ;;  %7806 = vmatpush1.bf16.msra.mxu1 %v11279_v2  ;;  %v7887_v44 = vld [vmem:[#allocation21 + $0x1a8] sm:$0xff]  ;;  %v10165_v2 = vpack.c.bf16 %v7837_v31, %v7836_v26  ;;  %v10213_v31 = vpack.c.bf16 %v7877_v12, %v7876_v60 }
 0xebc   :  { %7725 = vmatprep.subr.bf16.mxu0 %v11284_v13  ;;  %7807 = vmatprep.subr.bf16.mxu1 %v11287_v14  ;;  %v10197_v13 = vpack.c.bf16 %v7869_v35, %v7868_v16  ;;  %v7838_v14 = vld [vmem:[#allocation21 + $0x20] sm:$0xff]  ;;  %v7847_v16 = vld [vmem:[#allocation21 + $0x68] sm:$0xff] }
 0xebd   :  { %v7878_v35 = vld [vmem:[#allocation21 + $0x160] sm:$0xff] }
 0xebf   :  { %7726 = vmatpush1.bf16.msra.mxu0 %v11282_v8  ;;  %7808 = vmatpush1.bf16.msra.mxu1 %v11285_v19  ;;  %v7839_v8 = vld [vmem:[#allocation21 + $0x28] sm:$0xff]  ;;  %v10167_v19 = vpack.c.bf16 %v7855_v0, %v7854_v63 }
 0xec0   :  { %7727 = vmatprep.subr.bf16.mxu0 %v11290_v61  ;;  %7809 = vmatprep.subr.bf16.mxu1 %v11293_v32  ;;  %v10199_v61 = vpack.c.bf16 %v7887_v44, %v7886_v11  ;;  %v7870_v32 = vld [vmem:[#allocation21 + $0x120] sm:$0xff]  ;;  %v7879_v0 = vld [vmem:[#allocation21 + $0x168] sm:$0xff]  ;;  %v7864_v11 = vld [vmem:[#allocation21 + $0xf0] sm:$0xff] }
 0xec1   :  { %v7865_v44 = vld [vmem:[#allocation21 + $0xf8] sm:$0xff] }
 0xec3   :  { %7728 = vmatpush1.bf16.msra.mxu0 %v11288_v59  ;;  %7810 = vmatpush1.bf16.msra.mxu1 %v11291_v45  ;;  %v7871_v59 = vld [vmem:[#allocation21 + $0x128] sm:$0xff]  ;;  %v7856_v45 = vld [vmem:[#allocation21 + $0xb0] sm:$0xff] }
 0xec4   :  { %7729 = vmatprep.subr.bf16.mxu0 %v11296_v43  ;;  %7811 = vmatprep.subr.bf16.mxu1 %v11299_v56  ;;  %v7857_v43 = vld [vmem:[#allocation21 + $0xb8] sm:$0xff]  ;;  %v7888_v56 = vld [vmem:[#allocation21 + $0x1b0] sm:$0xff] }
 0xec7   :  { %7730 = vmatpush1.bf16.msra.mxu0 %v11294_v58  ;;  %7812 = vmatpush1.bf16.msra.mxu1 %v11297_v28  ;;  %v7889_v58 = vld [vmem:[#allocation21 + $0x1b8] sm:$0xff]  ;;  %v10169_v28 = vpack.c.bf16 %v7839_v8, %v7838_v14  ;;  %v7896_v14 = vld [vmem:[#allocation21 + $0x1f0] sm:$0xff] }
 0xec8   :  { %7731 = vmatprep.subr.bf16.mxu0 %v11302_v40  ;;  %7813 = vmatprep.subr.bf16.mxu1 %v11305_v48  ;;  %v10201_v40 = vpack.c.bf16 %v7871_v59, %v7870_v32  ;;  %v7840_v48 = vld [vmem:[#allocation21 + $0x30] sm:$0xff]  ;;  %v7897_v8 = vld [vmem:[#allocation21 + $0x1f8] sm:$0xff] }
 0xec9   :  { %v7849_v32 = vld [vmem:[#allocation21 + $0x78] sm:$0xff]  ;;  %v7880_v59 = vld [vmem:[#allocation21 + $0x170] sm:$0xff] }
 0xecb   :  { %7732 = vmatpush1.bf16.msra.mxu0 %v11300_v29  ;;  %7814 = vmatpush1.bf16.msra.mxu1 %v11303_v27  ;;  %v7841_v29 = vld [vmem:[#allocation21 + $0x38] sm:$0xff]  ;;  %v10171_v27 = vpack.c.bf16 %v7857_v43, %v7856_v45 }
 0xecc   :  { %7733 = vmatprep.subr.bf16.mxu0 %v11308_v23  ;;  %7815 = vmatprep.subr.bf16.mxu1 %v11311_v25  ;;  %v10203_v23 = vpack.c.bf16 %v7889_v58, %v7888_v56  ;;  %v7872_v25 = vld [vmem:[#allocation21 + $0x130] sm:$0xff]  ;;  %v7881_v45 = vld [vmem:[#allocation21 + $0x178] sm:$0xff] }
 0xecd   :  { %v10221_v56 = vpack.c.bf16 %v7881_v45, %v7880_v59  ;;  %v7004_v58 = vld [vmem:[#allocation19] sm:$0xf] }
 0xecf   :  { %7734 = vmatpush1.bf16.msra.mxu0 %v11306_v4  ;;  %7816 = vmatpush1.bf16.msra.mxu1 %v11309_v3  ;;  %v7873_v4 = vld [vmem:[#allocation21 + $0x138] sm:$0xff]  ;;  %v7858_v3 = vld [vmem:[#allocation21 + $0xc0] sm:$0xff] }
 0xed0   :  { %7735 = vmatprep.subr.bf16.mxu0 %v11314_v52  ;;  %7817 = vmatprep.subr.bf16.mxu1 %v11317_v38  ;;  %v7890_v52 = vld [vmem:[#allocation21 + $0x1c0] sm:$0xff]  ;;  %v7891_v38 = vld [vmem:[#allocation21 + $0x1c8] sm:$0xff] }
 0xed1   :  { %v10207_v30 = vpack.c.bf16 %v7891_v38, %v7890_v52 }
 0xed3   :  { %7736 = vmatpush1.bf16.msra.mxu0 %v11312_v33  ;;  %7818 = vmatpush1.bf16.msra.mxu1 %v11315_v24  ;;  %v10173_v33 = vpack.c.bf16 %v7841_v29, %v7840_v48  ;;  %v10205_v24 = vpack.c.bf16 %v7873_v4, %v7872_v25  ;;  %v7013_v48 = vrot.slane %v7004_v58, %v12165_v22 }
 0xed4   :  { %7737 = vmatprep.subr.bf16.mxu0 %v11320_v51  ;;  %7819 = vmatprep.subr.bf16.mxu1 %v11323_v21  ;;  %v7843_v51 = vld [vmem:[#allocation21 + $0x48] sm:$0xff]  ;;  %v10175_v21 = vpack.c.bf16 %v7859_v53, %v7858_v3  ;;  %v7021_v29 = vrot.slane %v7004_v58, %v3646_v34  ;;  %v8750_v34 = vld [vmem:[#allocation22] ss:$0 sm:$0xff] }
 0xed5   :  { %v10177_v47 = vpack.c.bf16 %v7843_v51, %v7842_v57 }
 0xed7   :  { %7738 = vmatpush1.bf16.msra.mxu0 %v11318_v54  ;;  %7820 = vmatpush1.bf16.msra.mxu1 %v11321_v18  ;;  %v7861_v54 = vld [vmem:[#allocation21 + $0xd8] sm:$0xff]  ;;  %v7892_v18 = vld [vmem:[#allocation21 + $0x1d0] sm:$0xff] }
 0xed8   :  { %10160 = vmatprep.subr.bf16.mxu0 %v10159_v7  ;;  %10192 = vmatprep.subr.bf16.mxu1 %v10191_v15  ;;  %v7844_v7 = vld [vmem:[#allocation21 + $0x50] sm:$0xff]  ;;  %v7845_v15 = vld [vmem:[#allocation21 + $0x58] sm:$0xff]  ;;  %v10179_v17 = vpack.c.bf16 %v7861_v54, %v7860_v50  ;;  %v10211_v9 = vpack.c.bf16 %v7893_v10, %v7892_v18 }
 0xed9   :  { %v10181_v26 = vpack.c.bf16 %v7845_v15, %v7844_v7 }
 0xeda   :  { %7740 = vmatmul.mubr.bf16.vlgmr.msra.gmra.mrb[28].mxu0 %v6874_v5  ;;  %7822 = vmatmul.mubr.bf16.vlgmr.msra.gmra.mrb[32].mxu1 %v6874_v5  ;;  %v10183_v5 = vpack.c.bf16 %v7863_v1, %v7862_v62 }
 0xedb   :  { %10162 = vmatpush3.bf16.msra.mxu0 %v10161_v42  ;;  %10194 = vmatpush3.bf16.msra.mxu1 %v10193_v41  ;;  %v7894_v42 = vld [vmem:[#allocation21 + $0x1e0] sm:$0xff]  ;;  %v7895_v41 = vld [vmem:[#allocation21 + $0x1e8] sm:$0xff] }
 0xedc   :  { %10164 = vmatprep.subr.bf16.mxu0 %v10163_v46  ;;  %10196 = vmatprep.subr.bf16.mxu1 %v10195_v55  ;;  %v10215_v46 = vpack.c.bf16 %v7895_v41, %v7894_v42  ;;  %v7846_v55 = vld [vmem:[#allocation21 + $0x60] sm:$0xff] }
 0xedd   :  { %v10185_v63 = vpack.c.bf16 %v7847_v16, %v7846_v55 }
 0xedf   :  { %10166 = vmatpush3.bf16.msra.mxu0 %v10165_v2  ;;  %10198 = vmatpush3.bf16.msra.mxu1 %v10197_v13  ;;  %v10217_v2 = vpack.c.bf16 %v7879_v0, %v7878_v35  ;;  %v10187_v13 = vpack.c.bf16 %v7865_v44, %v7864_v11 }
 0xee0   :  { %10168 = vmatprep.subr.bf16.mxu0 %v10167_v19  ;;  %10200 = vmatprep.subr.bf16.mxu1 %v10199_v61  ;;  %v7848_v19 = vld [vmem:[#allocation21 + $0x70] sm:$0xff]  ;;  %v10219_v61 = vpack.c.bf16 %v7897_v8, %v7896_v14 }
 0xee1   :  { %v10189_v43 = vpack.c.bf16 %v7849_v32, %v7848_v19 }
 0xee3   :  { %10170 = vmatpush3.bf16.msra.mxu0 %v10169_v28  ;;  %10202 = vmatpush3.bf16.msra.mxu1 %v10201_v40  ;;  %v7009_v28 = vrot.slane %v7004_v58, %v12084_v37  ;;  %v7017_v40 = vrot.slane %v7004_v58, %v12162_v20 }
 0xee4   :  { %10172 = vmatprep.subr.bf16.mxu0 %v10171_v27  ;;  %10204 = vmatprep.subr.bf16.mxu1 %v10203_v23 }
 0xee7   :  { %10174 = vmatpush3.bf16.msra.mxu0 %v10173_v33  ;;  %10206 = vmatpush3.bf16.msra.mxu1 %v10205_v24 }
 0xee8   :  { %10176 = vmatprep.subr.bf16.mxu0 %v10175_v21  ;;  %10208 = vmatprep.subr.bf16.mxu1 %v10207_v30 }
 0xeeb   :  { %10178 = vmatpush3.bf16.msra.mxu0 %v10177_v47  ;;  %10210 = vmatpush3.bf16.msra.mxu1 %v10209_v49 }
 0xeec   :  { %10180 = vmatprep.subr.bf16.mxu0 %v10179_v17  ;;  %10212 = vmatprep.subr.bf16.mxu1 %v10211_v9 }
 0xeef   :  { %10182 = vmatpush3.bf16.msra.mxu0 %v10181_v26  ;;  %10214 = vmatpush3.bf16.msra.mxu1 %v10213_v31 }
 0xef0   :  { %10184 = vmatprep.subr.bf16.mxu0 %v10183_v5  ;;  %10216 = vmatprep.subr.bf16.mxu1 %v10215_v46 }
 0xef3   :  { %10186 = vmatpush3.bf16.msra.mxu0 %v10185_v63  ;;  %10218 = vmatpush3.bf16.msra.mxu1 %v10217_v2 }
 0xef4   :  { %10188 = vmatprep.subr.bf16.mxu0 %v10187_v13  ;;  %10220 = vmatprep.subr.bf16.mxu1 %v10219_v61 }
 0xef7   :  { %10190 = vmatpush3.bf16.msra.mxu0 %v10189_v43  ;;  %10222 = vmatpush3.bf16.msra.mxu1 %v10221_v56 }
 0xfad   :  { %v7741_v27 = vpop.f32.mrb[28].mxu0  ;;  %v7823_v23 = vpop.f32.mrb[32].mxu1 }
 0xfae   :  { %v10227_v25 = vadd.f32 %v7741_v27, %v7009_v28  ;;  %v10229_v4 = vadd.f32 %v7823_v23, %v7017_v40  ;;  %v7743_v3 = vpop.f32.mrb[29].mxu0  ;;  %v7825_v53 = vpop.f32.mrb[33].mxu1 }
 0xfaf   :  { %v10228_v52 = vadd.f32 %v7743_v3, %v7013_v48  ;;  %v10230_v38 = vadd.f32 %v7825_v53, %v7021_v29  ;;  %v7745_v33 = vpop.f32.mrb[30].mxu0  ;;  %v7827_v24 = vpop.f32.mrb[34].mxu1 }
 0xfb0   :  { %v7746_v57 = vpop.f32.mrb[31].mxu0  ;;  %v7828_v51 = vpop.f32.mrb[35].mxu1  ;;  %v7830_v20 = vmax.f32 %v10227_v25, 0.0  ;;  %v7832_v30 = vmax.f32 %v10229_v4, 0.0 }
 0xfb1   :  { %v7831_v37 = vmax.f32 %v10228_v52, 0.0  ;;  %v7833_v21 = vmax.f32 %v10230_v38, 0.0 }
 0xfb3   :  { %7969 = vmatprep.mubr.f32.mxu0 %v7831_v37  ;;  %8039 = vmatprep.mubr.f32.mxu1 %v7833_v21 }
 0xfb4   :  { %7970 = vmatmul.mubr.f32.vlgmr.msra.gmra.mrb[22].mxu0 %v7830_v20  ;;  %8040 = vmatmul.mubr.f32.vlgmr.msra.gmra.mrb[26].mxu1 %v7832_v30 }
0x1087   :  { %v9105_v36 = vpop.f32.mrb[22].mxu0  ;;  %v9140_v22 = vpop.f32.mrb[26].mxu1 }
0x1088   :  { %v9106_v39 = vpop.f32.mrb[23].mxu0  ;;  %v9141_v6 = vpop.f32.mrb[27].mxu1 }
0x1089   :  { %v9107_v50 = vadd.f32 %v9106_v39, %v9105_v36  ;;  %v9142_v54 = vadd.f32 %v9141_v6, %v9140_v22 }
0x108b   :  { %v7972_v18 = vadd.f32 %v9107_v50, %v8750_v34 }
0x108d   :  { %v8042_v10 = vadd.f32 %v9142_v54, %v7972_v18 }
0x108f   :  { %8045 = vst [vmem:[%s12975_s15] sm:$0xf] %v8042_v10 }
0x1090   :  { %8050 = vsyncpa [#allocation3], 1 }
0x1091   :  { %8051 = vsyncpa [#allocation5], 1 }
0x1092   :  { %8052 = vsyncpa [#allocation8], 1 }
0x1093   :  { %8053 = vsyncpa [#allocation11], 1 }
0x1094   :  { %8054 = vsyncpa [#allocation14], 1 }
0x1095   :  { %8055 = vsyncpa [#allocation17], 1 }
0x1096   :  { %8056 = vsyncpa [#allocation20], 1 }
0x1097   :  { %8057 = vsyncpa [#allocation23], 1 }

</bundles_post_ra>
